<compile_context>
chip_gen: v7x
topology: tpu7x:2x2x1
jax: 0.10.0
libtpu: 0.0.40
codegen_flags: <defaults>
</compile_context>

<pallas_src>
import jax
import jax.numpy as jnp
from jax.experimental import pallas as pl
from jax.experimental.pallas import tpu as pltpu


def _pick_row_tile(H, W, min_rows=64):
    """Smallest divisor TR of H with TR*W >= min_rows and >= 2 tiles
    (pipeline depth without under-filling the MXU M dim); else full image."""
    for d in range(1, H):
        if H % d == 0 and d * W >= min_rows:
            return d
    return H


# -----------------------------------------------------------------------------
# Fused kernel: per (image n, row tile r) computes all four branch outputs for
# TR output rows and writes them into disjoint channel slices of the output.
# x_ref is the zero-padded (H+4, W+4, Cin) image (block constant along r, so
# it is DMA'd from HBM only once per image).
# -----------------------------------------------------------------------------
def _inception_kernel(x_ref, w1_ref, wm_ref, w2b_ref, w3b_ref, w4_ref,
                      bm_ref, bcat_ref, o_ref):
    Hp, Wp, Cin = x_ref.shape
    H, W = Hp - 4, Wp - 4
    TR = o_ref.shape[0]
    c1 = w1_ref.shape[1]
    c2a, c2b = w2b_ref.shape[1], w2b_ref.shape[2]
    c3a, c3b = w3b_ref.shape[1], w3b_ref.shape[2]
    c4 = w4_ref.shape[1]
    Cm = c2a + c3a
    f32 = jnp.float32

    r = pl.program_id(1)
    row0 = r * TR                                   # tile start (padded coords)

    # (TR+4, W+4, Cin) zero-padded slab: this row tile + 2-row halo.
    slab = x_ref[pl.ds(row0, TR + 4)]

    # Mask of real (non-padding) pixels inside the slab.
    prow = row0 + jax.lax.broadcasted_iota(jnp.int32, (TR + 4, Wp, 1), 0)
    pcol = jax.lax.broadcasted_iota(jnp.int32, (TR + 4, Wp, 1), 1)
    valid = (prow >= 2) & (prow < H + 2) & (pcol >= 2) & (pcol < W + 2)

    # ---- shared branch-2/3 1x1 reductions (with halo); zero at padding so the
    #      subsequent spatial convs see zero-padded `mid`, matching the module.
    mid = jnp.dot(slab.reshape((TR + 4) * Wp, Cin), wm_ref[...],
                  preferred_element_type=f32)
    mid = jnp.maximum(mid + bm_ref[...], 0.0).reshape(TR + 4, Wp, Cm)
    mid = jnp.where(valid, mid, 0.0).astype(jnp.bfloat16)
    mid2 = mid[:, :, :c2a]
    mid3 = mid[:, :, c2a:]

    # ---- branch 1: 1x1 conv on x ----
    x_tile = slab[2:2 + TR, 2:2 + W, :].reshape(TR * W, Cin)
    o1 = jnp.dot(x_tile, w1_ref[...], preferred_element_type=f32)
    o1 = jnp.maximum(o1 + bcat_ref[:, :c1], 0.0)
    o_ref[:, :, :c1] = o1.reshape(TR, W, c1).astype(o_ref.dtype)

    # ---- branch 2: 3x3 conv on mid2 (9 shifted-slice matmuls, f32 acc) ----
    acc2 = jnp.zeros((TR * W, c2b), f32)
    for ki in range(3):
        for kj in range(3):
            win = mid2[1 + ki:1 + ki + TR, 1 + kj:1 + kj + W, :]
            acc2 = acc2 + jnp.dot(win.reshape(TR * W, c2a),
                                  w2b_ref[ki * 3 + kj],
                                  preferred_element_type=f32)
    o2 = jnp.maximum(acc2 + bcat_ref[:, c1:c1 + c2b], 0.0)
    o_ref[:, :, c1:c1 + c2b] = o2.reshape(TR, W, c2b).astype(o_ref.dtype)

    # ---- branch 3: 5x5 conv on mid3 (25 shifted-slice matmuls) ----
    acc3 = jnp.zeros((TR * W, c3b), f32)
    for ki in range(5):
        for kj in range(5):
            win = mid3[ki:ki + TR, kj:kj + W, :]
            acc3 = acc3 + jnp.dot(win.reshape(TR * W, c3a),
                                  w3b_ref[ki * 5 + kj],
                                  preferred_element_type=f32)
    o3 = jnp.maximum(acc3 + bcat_ref[:, c1 + c2b:c1 + c2b + c3b], 0.0)
    o_ref[:, :, c1 + c2b:c1 + c2b + c3b] = (
        o3.reshape(TR, W, c3b).astype(o_ref.dtype))

    # ---- branch 4: 3x3/s1/p1 maxpool (separable, -inf at padding) + 1x1 ----
    xf = jnp.where(valid, slab.astype(f32), -jnp.inf)
    rmax = jnp.maximum(jnp.maximum(xf[:, 1:1 + W, :], xf[:, 2:2 + W, :]),
                       xf[:, 3:3 + W, :])
    pooled = jnp.maximum(jnp.maximum(rmax[1:1 + TR], rmax[2:2 + TR]),
                         rmax[3:3 + TR])                     # (TR, W, Cin)
    o4 = jnp.dot(pooled.astype(jnp.bfloat16).reshape(TR * W, Cin),
                 w4_ref[...], preferred_element_type=f32)
    o4 = jnp.maximum(o4 + bcat_ref[:, c1 + c2b + c3b:], 0.0)
    o_ref[:, :, c1 + c2b + c3b:] = o4.reshape(TR, W, c4).astype(o_ref.dtype)


# -----------------------------------------------------------------------------
# Wrapper (NCHW at the API, like the PyTorch module).
# -----------------------------------------------------------------------------
def inception_block(x_nchw, p):
    x = jnp.transpose(x_nchw, (0, 2, 3, 1)).astype(jnp.bfloat16)   # NCHW->NHWC
    N, H, W, Cin = x.shape
    c1 = p["w1"].shape[1]
    c2a, c2b = p["w2b"].shape[2], p["w2b"].shape[3]
    c3a, c3b = p["w3b"].shape[2], p["w3b"].shape[3]
    c4 = p["w4"].shape[1]
    Cm, Ct = c2a + c3a, c1 + c2b + c3b + c4
    TR = _pick_row_tile(H, W)

    # TODO(synk): fold this zero pad and the NCHW<->NHWC transposes into the
    # kernel's load/store (index_map / in-kernel scratch pad) to save the
    # remaining extra HBM passes over x / out.
    xp = jnp.pad(x, ((0, 0), (2, 2), (2, 2), (0, 0)))

    bf = jnp.bfloat16
    w1 = p["w1"].astype(bf)
    wm = jnp.concatenate([p["w2a"], p["w3a"]], axis=1).astype(bf)    # (Cin,Cm)
    w2b = p["w2b"].reshape(9, c2a, c2b).astype(bf)
    w3b = p["w3b"].reshape(25, c3a, c3b).astype(bf)
    w4 = p["w4"].astype(bf)
    bm = jnp.concatenate([p["b2a"], p["b3a"]]).reshape(1, Cm).astype(jnp.float32)
    bcat = jnp.concatenate([p["b1"], p["b2b"], p["b3b"], p["b4"]]
                           ).reshape(1, Ct).astype(jnp.float32)

    flops = 2 * N * H * W * (Cin * (c1 + Cm + c4)
                             + 9 * c2a * c2b + 25 * c3a * c3b)
    bytes_accessed = (2 * xp.size + 4 * N * H * W * Ct
                      + 2 * (w1.size + wm.size + w2b.size + w3b.size + w4.size)
                      + 4 * (Cm + Ct))

    out = pl.pallas_call(
        _inception_kernel,
        out_shape=jax.ShapeDtypeStruct((N, H, W, Ct), jnp.float32),
        grid=(N, H // TR),
        in_specs=[
            pl.BlockSpec((None, H + 4, W + 4, Cin), lambda n, r: (n, 0, 0, 0)),
            pl.BlockSpec((Cin, c1), lambda n, r: (0, 0)),
            pl.BlockSpec((Cin, Cm), lambda n, r: (0, 0)),
            pl.BlockSpec((9, c2a, c2b), lambda n, r: (0, 0, 0)),
            pl.BlockSpec((25, c3a, c3b), lambda n, r: (0, 0, 0)),
            pl.BlockSpec((Cin, c4), lambda n, r: (0, 0)),
            pl.BlockSpec((1, Cm), lambda n, r: (0, 0)),
            pl.BlockSpec((1, Ct), lambda n, r: (0, 0)),
        ],
        out_specs=pl.BlockSpec((None, TR, W, Ct), lambda n, r: (n, r, 0, 0)),
        compiler_params=pltpu.CompilerParams(
            dimension_semantics=("parallel", "arbitrary")),
        cost_estimate=pl.CostEstimate(flops=flops, transcendentals=0,
                                      bytes_accessed=bytes_accessed),
    )(xp, w1, wm, w2b, w3b, w4, bm, bcat)
    return jnp.transpose(out, (0, 3, 1, 2))                        # NHWC->NCHW


# -----------------------------------------------------------------------------
# Deterministic parameter init (matches nn.Conv2d shapes; kaiming-uniform-like)
# -----------------------------------------------------------------------------
def init_params(key, cin, c1, c2a, c2b, c3a, c3b, c4):
    def conv_init(key, k, ci, co):
        kw, kb = jax.random.split(key)
        bound = 1.0 / float(ci * k * k) ** 0.5
        w = jax.random.uniform(kw, (k, k, ci, co), jnp.float32, -bound, bound)
        b = jax.random.uniform(kb, (co,), jnp.float32, -bound, bound)
        return w, b

    keys = jax.random.split(key, 6)
    w1, b1 = conv_init(keys[0], 1, cin, c1)
    w2a, b2a = conv_init(keys[1], 1, cin, c2a)
    w2b, b2b = conv_init(keys[2], 3, c2a, c2b)
    w3a, b3a = conv_init(keys[3], 1, cin, c3a)
    w3b, b3b = conv_init(keys[4], 5, c3a, c3b)
    w4, b4 = conv_init(keys[5], 1, cin, c4)
    return dict(
        w1=w1.reshape(cin, c1), b1=b1,
        w2a=w2a.reshape(cin, c2a), b2a=b2a,
        w2b=w2b, b2b=b2b,
        w3a=w3a.reshape(cin, c3a), b3a=b3a,
        w3b=w3b, b3b=b3b,
        w4=w4.reshape(cin, c4), b4=b4,
    )


# -----------------------------------------------------------------------------
# Pure-JAX reference (sanity check; default MXU precision, like the kernel).
# -----------------------------------------------------------------------------
def reference(x_nchw, p):
    x = jnp.transpose(x_nchw, (0, 2, 3, 1))
    dn = ("NHWC", "HWIO", "NHWC")

    def conv(xx, w, b, pad):
        y = jax.lax.conv_general_dilated(
            xx, w, (1, 1), [(pad, pad), (pad, pad)], dimension_numbers=dn)
        return jax.nn.relu(y + b)

    out1 = conv(x, p["w1"][None, None], p["b1"], 0)
    out2 = conv(conv(x, p["w2a"][None, None], p["b2a"], 0), p["w2b"], p["b2b"], 1)
    out3 = conv(conv(x, p["w3a"][None, None], p["b3a"], 0), p["w3b"], p["b3b"], 2)
    pooled = jax.lax.reduce_window(
        x, -jnp.inf, jax.lax.max, (1, 3, 3, 1), (1, 1, 1, 1),
        [(0, 0), (1, 1), (1, 1), (0, 0)])
    out4 = conv(pooled, p["w4"][None, None], p["b4"], 0)
    out = jnp.concatenate([out1, out2, out3, out4], axis=-1)
    return jnp.transpose(out, (0, 3, 1, 2))


if __name__ == "__main__":
    key = jax.random.PRNGKey(0)
    k_x, k_p = jax.random.split(key)

    # Small shapes consistent with the module: NCHW input.
    N, Cin, H, W = 2, 4, 16, 16
    x = jax.random.normal(k_x, (N, Cin, H, W), jnp.float32)

    # inceptionv1_block(in=4, out1=4, out2_s1=4, out2_s2=8, out3_s1=4,
    #                   out3_s2=8, out4=4)
    params = init_params(k_p, Cin, 4, 4, 8, 4, 8, 4)

    out = jax.jit(inception_block)(x, params)
    out = jax.block_until_ready(out)
    assert out.shape == (N, 4 + 8 + 8 + 4, H, W), out.shape

    ref = jax.block_until_ready(reference(x, params))
    assert jnp.allclose(out, ref, atol=3e-2, rtol=3e-2), \
        float(jnp.max(jnp.abs(out - ref)))

    print("KERNEL_OK")
</pallas_src>

<mosaic_0001>
module attributes {stable_mosaic.version = 11 : i64} {
  func.func @_inception_kernel(%arg0: i32, %arg1: i32, %arg2: memref<1x20x20x4xbf16, #tpu.memory_space<vmem>>, %arg3: memref<4x4xbf16, #tpu.memory_space<vmem>>, %arg4: memref<4x8xbf16, #tpu.memory_space<vmem>>, %arg5: memref<9x4x8xbf16, #tpu.memory_space<vmem>>, %arg6: memref<25x4x8xbf16, #tpu.memory_space<vmem>>, %arg7: memref<4x4xbf16, #tpu.memory_space<vmem>>, %arg8: memref<1x8xf32, #tpu.memory_space<vmem>>, %arg9: memref<1x24xf32, #tpu.memory_space<vmem>>, %arg10: memref<1x4x16x24xf32, #tpu.memory_space<vmem>>) attributes {dimension_semantics = [#tpu.dimension_semantics<parallel>, #tpu.dimension_semantics<arbitrary>], iteration_bounds = array<i64: 2, 4>, scalar_prefetch = 0 : i64, scratch_operands = 0 : i64, tpu.core_type = #tpu.core_type<tc>, window_params = [{transform_indices = @transform_0, window_bounds = array<i64: 1, 20, 20, 4>}, {pipeline_mode = #tpu.pipeline_mode<synchronous>, transform_indices = @transform_1, window_bounds = array<i64: 4, 4>}, {pipeline_mode = #tpu.pipeline_mode<synchronous>, transform_indices = @transform_2, window_bounds = array<i64: 4, 8>}, {pipeline_mode = #tpu.pipeline_mode<synchronous>, transform_indices = @transform_3, window_bounds = array<i64: 9, 4, 8>}, {pipeline_mode = #tpu.pipeline_mode<synchronous>, transform_indices = @transform_4, window_bounds = array<i64: 25, 4, 8>}, {pipeline_mode = #tpu.pipeline_mode<synchronous>, transform_indices = @transform_5, window_bounds = array<i64: 4, 4>}, {pipeline_mode = #tpu.pipeline_mode<synchronous>, transform_indices = @transform_6, window_bounds = array<i64: 1, 8>}, {pipeline_mode = #tpu.pipeline_mode<synchronous>, transform_indices = @transform_7, window_bounds = array<i64: 1, 24>}, {transform_indices = @transform_8, window_bounds = array<i64: 1, 4, 16, 24>}]} {
    %c4_i32 = arith.constant 4 : i32
    %0 = arith.muli %arg1, %c4_i32 : i32
    %c0 = arith.constant 0 : index
    %1 = arith.index_cast %0 : i32 to index
    %c0_0 = arith.constant 0 : index
    %c0_1 = arith.constant 0 : index
    %2 = vector.load %arg2[%c0, %1, %c0_0, %c0_1] : memref<1x20x20x4xbf16, #tpu.memory_space<vmem>>, vector<1x8x20x4xbf16>
    %3 = vector.shape_cast %2 : vector<1x8x20x4xbf16> to vector<8x20x4xbf16>
    %4 = tpu.iota {dimensions = array<i32: 0>} : vector<8x20x1xi32>
    %5 = vector.broadcast %0 : i32 to vector<8x20x1xi32>
    %6 = arith.addi %5, %4 : vector<8x20x1xi32>
    %7 = tpu.iota {dimensions = array<i32: 1>} : vector<8x20x1xi32>
    %c2_i32 = arith.constant 2 : i32
    %8 = vector.broadcast %c2_i32 : i32 to vector<8x20x1xi32>
    %9 = arith.cmpi sge, %6, %8 : vector<8x20x1xi32>
    %c18_i32 = arith.constant 18 : i32
    %10 = vector.broadcast %c18_i32 : i32 to vector<8x20x1xi32>
    %11 = arith.cmpi slt, %6, %10 : vector<8x20x1xi32>
    %12 = arith.andi %9, %11 : vector<8x20x1xi1>
    %c2_i32_2 = arith.constant 2 : i32
    %13 = vector.broadcast %c2_i32_2 : i32 to vector<8x20x1xi32>
    %14 = arith.cmpi sge, %7, %13 : vector<8x20x1xi32>
    %15 = arith.andi %12, %14 : vector<8x20x1xi1>
    %c18_i32_3 = arith.constant 18 : i32
    %16 = vector.broadcast %c18_i32_3 : i32 to vector<8x20x1xi32>
    %17 = arith.cmpi slt, %7, %16 : vector<8x20x1xi32>
    %18 = arith.andi %15, %17 : vector<8x20x1xi1>
    %19 = vector.shape_cast %3 : vector<8x20x4xbf16> to vector<160x4xbf16>
    %c0_4 = arith.constant 0 : index
    %c0_5 = arith.constant 0 : index
    %20 = vector.load %arg4[%c0_4, %c0_5] : memref<4x8xbf16, #tpu.memory_space<vmem>>, vector<4x8xbf16>
    %cst = arith.constant dense<0.000000e+00> : vector<160x8xf32>
    %21 = tpu.matmul %19, %20, %cst {dimension_numbers = #tpu.dot_dimension_numbers<[1], [0], [0], [1], [0, 0, 1, 1], [], []>} : vector<160x4xbf16>, vector<4x8xbf16>, vector<160x8xf32> -> vector<160x8xf32>
    %c0_6 = arith.constant 0 : index
    %c0_7 = arith.constant 0 : index
    %22 = vector.load %arg8[%c0_6, %c0_7] : memref<1x8xf32, #tpu.memory_space<vmem>>, vector<1x8xf32>
    %23 = vector.broadcast %22 : vector<1x8xf32> to vector<160x8xf32>
    %24 = arith.addf %21, %23 : vector<160x8xf32>
    %cst_8 = arith.constant 0.000000e+00 : f32
    %25 = vector.broadcast %cst_8 : f32 to vector<160x8xf32>
    %26 = arith.maximumf %24, %25 : vector<160x8xf32>
    %27 = vector.shape_cast %26 : vector<160x8xf32> to vector<8x20x8xf32>
    %cst_9 = arith.constant 0.000000e+00 : f32
    %28 = vector.shape_cast %18 : vector<8x20x1xi1> to vector<8x20x1xi1>
    %29 = vector.broadcast %28 : vector<8x20x1xi1> to vector<8x20x8xi1>
    %30 = vector.broadcast %cst_9 : f32 to vector<8x20x8xf32>
    %31 = arith.select %29, %27, %30 : vector<8x20x8xi1>, vector<8x20x8xf32>
    %32 = arith.truncf %31 : vector<8x20x8xf32> to vector<8x20x8xbf16>
    %33 = vector.extract_strided_slice %32 {offsets = [0, 0, 0], sizes = [8, 20, 4], strides = [1, 1, 1]} : vector<8x20x8xbf16> to vector<8x20x4xbf16>
    %34 = vector.extract_strided_slice %32 {offsets = [0, 0, 4], sizes = [8, 20, 4], strides = [1, 1, 1]} : vector<8x20x8xbf16> to vector<8x20x4xbf16>
    %35 = vector.extract_strided_slice %3 {offsets = [2, 2, 0], sizes = [4, 16, 4], strides = [1, 1, 1]} : vector<8x20x4xbf16> to vector<4x16x4xbf16>
    %36 = vector.shape_cast %35 : vector<4x16x4xbf16> to vector<64x4xbf16>
    %c0_10 = arith.constant 0 : index
    %c0_11 = arith.constant 0 : index
    %37 = vector.load %arg3[%c0_10, %c0_11] : memref<4x4xbf16, #tpu.memory_space<vmem>>, vector<4x4xbf16>
    %cst_12 = arith.constant dense<0.000000e+00> : vector<64x4xf32>
    %38 = tpu.matmul %36, %37, %cst_12 {dimension_numbers = #tpu.dot_dimension_numbers<[1], [0], [0], [1], [0, 0, 1, 1], [], []>} : vector<64x4xbf16>, vector<4x4xbf16>, vector<64x4xf32> -> vector<64x4xf32>
    %c0_13 = arith.constant 0 : index
    %c0_14 = arith.constant 0 : index
    %39 = vector.load %arg9[%c0_13, %c0_14] : memref<1x24xf32, #tpu.memory_space<vmem>>, vector<1x4xf32>
    %40 = vector.broadcast %39 : vector<1x4xf32> to vector<64x4xf32>
    %41 = arith.addf %38, %40 : vector<64x4xf32>
    %cst_15 = arith.constant 0.000000e+00 : f32
    %42 = vector.broadcast %cst_15 : f32 to vector<64x4xf32>
    %43 = arith.maximumf %41, %42 : vector<64x4xf32>
    %44 = vector.shape_cast %43 : vector<64x4xf32> to vector<4x16x4xf32>
    %c0_16 = arith.constant 0 : index
    %c0_17 = arith.constant 0 : index
    %c0_18 = arith.constant 0 : index
    %c0_19 = arith.constant 0 : index
    %45 = vector.load %arg10[%c0_16, %c0_17, %c0_18, %c0_19] : memref<1x4x16x24xf32, #tpu.memory_space<vmem>>, vector<1x4x16x4xf32>
    %46 = vector.shape_cast %45 : vector<1x4x16x4xf32> to vector<4x16x4xf32>
    %47 = vector.shape_cast %44 : vector<4x16x4xf32> to vector<1x4x16x4xf32>
    tpu.vector_store %arg10[%c0_16, %c0_17, %c0_18, %c0_19], %47 {strides = array<i32>} : memref<1x4x16x24xf32, #tpu.memory_space<vmem>>, vector<1x4x16x4xf32>,
    %cst_20 = arith.constant 0.000000e+00 : f32
    %48 = vector.broadcast %cst_20 : f32 to vector<64x8xf32>
    %49 = vector.extract_strided_slice %33 {offsets = [1, 1, 0], sizes = [4, 16, 4], strides = [1, 1, 1]} : vector<8x20x4xbf16> to vector<4x16x4xbf16>
    %50 = vector.shape_cast %49 : vector<4x16x4xbf16> to vector<64x4xbf16>
    %c0_21 = arith.constant 0 : index
    %c0_22 = arith.constant 0 : index
    %c0_23 = arith.constant 0 : index
    %51 = vector.load %arg5[%c0_21, %c0_22, %c0_23] : memref<9x4x8xbf16, #tpu.memory_space<vmem>>, vector<1x4x8xbf16>
    %52 = vector.shape_cast %51 : vector<1x4x8xbf16> to vector<4x8xbf16>
    %cst_24 = arith.constant dense<0.000000e+00> : vector<64x8xf32>
    %53 = tpu.matmul %50, %52, %cst_24 {dimension_numbers = #tpu.dot_dimension_numbers<[1], [0], [0], [1], [0, 0, 1, 1], [], []>} : vector<64x4xbf16>, vector<4x8xbf16>, vector<64x8xf32> -> vector<64x8xf32>
    %54 = arith.addf %48, %53 : vector<64x8xf32>
    %55 = vector.extract_strided_slice %33 {offsets = [1, 2, 0], sizes = [4, 16, 4], strides = [1, 1, 1]} : vector<8x20x4xbf16> to vector<4x16x4xbf16>
    %56 = vector.shape_cast %55 : vector<4x16x4xbf16> to vector<64x4xbf16>
    %c1 = arith.constant 1 : index
    %c0_25 = arith.constant 0 : index
    %c0_26 = arith.constant 0 : index
    %57 = vector.load %arg5[%c1, %c0_25, %c0_26] : memref<9x4x8xbf16, #tpu.memory_space<vmem>>, vector<1x4x8xbf16>
    %58 = vector.shape_cast %57 : vector<1x4x8xbf16> to vector<4x8xbf16>
    %cst_27 = arith.constant dense<0.000000e+00> : vector<64x8xf32>
    %59 = tpu.matmul %56, %58, %cst_27 {dimension_numbers = #tpu.dot_dimension_numbers<[1], [0], [0], [1], [0, 0, 1, 1], [], []>} : vector<64x4xbf16>, vector<4x8xbf16>, vector<64x8xf32> -> vector<64x8xf32>
    %60 = arith.addf %54, %59 : vector<64x8xf32>
    %61 = vector.extract_strided_slice %33 {offsets = [1, 3, 0], sizes = [4, 16, 4], strides = [1, 1, 1]} : vector<8x20x4xbf16> to vector<4x16x4xbf16>
    %62 = vector.shape_cast %61 : vector<4x16x4xbf16> to vector<64x4xbf16>
    %c2 = arith.constant 2 : index
    %c0_28 = arith.constant 0 : index
    %c0_29 = arith.constant 0 : index
    %63 = vector.load %arg5[%c2, %c0_28, %c0_29] : memref<9x4x8xbf16, #tpu.memory_space<vmem>>, vector<1x4x8xbf16>
    %64 = vector.shape_cast %63 : vector<1x4x8xbf16> to vector<4x8xbf16>
    %cst_30 = arith.constant dense<0.000000e+00> : vector<64x8xf32>
    %65 = tpu.matmul %62, %64, %cst_30 {dimension_numbers = #tpu.dot_dimension_numbers<[1], [0], [0], [1], [0, 0, 1, 1], [], []>} : vector<64x4xbf16>, vector<4x8xbf16>, vector<64x8xf32> -> vector<64x8xf32>
    %66 = arith.addf %60, %65 : vector<64x8xf32>
    %67 = vector.extract_strided_slice %33 {offsets = [2, 1, 0], sizes = [4, 16, 4], strides = [1, 1, 1]} : vector<8x20x4xbf16> to vector<4x16x4xbf16>
    %68 = vector.shape_cast %67 : vector<4x16x4xbf16> to vector<64x4xbf16>
    %c3 = arith.constant 3 : index
    %c0_31 = arith.constant 0 : index
    %c0_32 = arith.constant 0 : index
    %69 = vector.load %arg5[%c3, %c0_31, %c0_32] : memref<9x4x8xbf16, #tpu.memory_space<vmem>>, vector<1x4x8xbf16>
    %70 = vector.shape_cast %69 : vector<1x4x8xbf16> to vector<4x8xbf16>
    %cst_33 = arith.constant dense<0.000000e+00> : vector<64x8xf32>
    %71 = tpu.matmul %68, %70, %cst_33 {dimension_numbers = #tpu.dot_dimension_numbers<[1], [0], [0], [1], [0, 0, 1, 1], [], []>} : vector<64x4xbf16>, vector<4x8xbf16>, vector<64x8xf32> -> vector<64x8xf32>
    %72 = arith.addf %66, %71 : vector<64x8xf32>
    %73 = vector.extract_strided_slice %33 {offsets = [2, 2, 0], sizes = [4, 16, 4], strides = [1, 1, 1]} : vector<8x20x4xbf16> to vector<4x16x4xbf16>
    %74 = vector.shape_cast %73 : vector<4x16x4xbf16> to vector<64x4xbf16>
    %c4 = arith.constant 4 : index
    %c0_34 = arith.constant 0 : index
    %c0_35 = arith.constant 0 : index
    %75 = vector.load %arg5[%c4, %c0_34, %c0_35] : memref<9x4x8xbf16, #tpu.memory_space<vmem>>, vector<1x4x8xbf16>
    %76 = vector.shape_cast %75 : vector<1x4x8xbf16> to vector<4x8xbf16>
    %cst_36 = arith.constant dense<0.000000e+00> : vector<64x8xf32>
    %77 = tpu.matmul %74, %76, %cst_36 {dimension_numbers = #tpu.dot_dimension_numbers<[1], [0], [0], [1], [0, 0, 1, 1], [], []>} : vector<64x4xbf16>, vector<4x8xbf16>, vector<64x8xf32> -> vector<64x8xf32>
    %78 = arith.addf %72, %77 : vector<64x8xf32>
    %79 = vector.extract_strided_slice %33 {offsets = [2, 3, 0], sizes = [4, 16, 4], strides = [1, 1, 1]} : vector<8x20x4xbf16> to vector<4x16x4xbf16>
    %80 = vector.shape_cast %79 : vector<4x16x4xbf16> to vector<64x4xbf16>
    %c5 = arith.constant 5 : index
    %c0_37 = arith.constant 0 : index
    %c0_38 = arith.constant 0 : index
    %81 = vector.load %arg5[%c5, %c0_37, %c0_38] : memref<9x4x8xbf16, #tpu.memory_space<vmem>>, vector<1x4x8xbf16>
    %82 = vector.shape_cast %81 : vector<1x4x8xbf16> to vector<4x8xbf16>
    %cst_39 = arith.constant dense<0.000000e+00> : vector<64x8xf32>
    %83 = tpu.matmul %80, %82, %cst_39 {dimension_numbers = #tpu.dot_dimension_numbers<[1], [0], [0], [1], [0, 0, 1, 1], [], []>} : vector<64x4xbf16>, vector<4x8xbf16>, vector<64x8xf32> -> vector<64x8xf32>
    %84 = arith.addf %78, %83 : vector<64x8xf32>
    %85 = vector.extract_strided_slice %33 {offsets = [3, 1, 0], sizes = [4, 16, 4], strides = [1, 1, 1]} : vector<8x20x4xbf16> to vector<4x16x4xbf16>
    %86 = vector.shape_cast %85 : vector<4x16x4xbf16> to vector<64x4xbf16>
    %c6 = arith.constant 6 : index
    %c0_40 = arith.constant 0 : index
    %c0_41 = arith.constant 0 : index
    %87 = vector.load %arg5[%c6, %c0_40, %c0_41] : memref<9x4x8xbf16, #tpu.memory_space<vmem>>, vector<1x4x8xbf16>
    %88 = vector.shape_cast %87 : vector<1x4x8xbf16> to vector<4x8xbf16>
    %cst_42 = arith.constant dense<0.000000e+00> : vector<64x8xf32>
    %89 = tpu.matmul %86, %88, %cst_42 {dimension_numbers = #tpu.dot_dimension_numbers<[1], [0], [0], [1], [0, 0, 1, 1], [], []>} : vector<64x4xbf16>, vector<4x8xbf16>, vector<64x8xf32> -> vector<64x8xf32>
    %90 = arith.addf %84, %89 : vector<64x8xf32>
    %91 = vector.extract_strided_slice %33 {offsets = [3, 2, 0], sizes = [4, 16, 4], strides = [1, 1, 1]} : vector<8x20x4xbf16> to vector<4x16x4xbf16>
    %92 = vector.shape_cast %91 : vector<4x16x4xbf16> to vector<64x4xbf16>
    %c7 = arith.constant 7 : index
    %c0_43 = arith.constant 0 : index
    %c0_44 = arith.constant 0 : index
    %93 = vector.load %arg5[%c7, %c0_43, %c0_44] : memref<9x4x8xbf16, #tpu.memory_space<vmem>>, vector<1x4x8xbf16>
    %94 = vector.shape_cast %93 : vector<1x4x8xbf16> to vector<4x8xbf16>
    %cst_45 = arith.constant dense<0.000000e+00> : vector<64x8xf32>
    %95 = tpu.matmul %92, %94, %cst_45 {dimension_numbers = #tpu.dot_dimension_numbers<[1], [0], [0], [1], [0, 0, 1, 1], [], []>} : vector<64x4xbf16>, vector<4x8xbf16>, vector<64x8xf32> -> vector<64x8xf32>
    %96 = arith.addf %90, %95 : vector<64x8xf32>
    %97 = vector.extract_strided_slice %33 {offsets = [3, 3, 0], sizes = [4, 16, 4], strides = [1, 1, 1]} : vector<8x20x4xbf16> to vector<4x16x4xbf16>
    %98 = vector.shape_cast %97 : vector<4x16x4xbf16> to vector<64x4xbf16>
    %c8 = arith.constant 8 : index
    %c0_46 = arith.constant 0 : index
    %c0_47 = arith.constant 0 : index
    %99 = vector.load %arg5[%c8, %c0_46, %c0_47] : memref<9x4x8xbf16, #tpu.memory_space<vmem>>, vector<1x4x8xbf16>
    %100 = vector.shape_cast %99 : vector<1x4x8xbf16> to vector<4x8xbf16>
    %cst_48 = arith.constant dense<0.000000e+00> : vector<64x8xf32>
    %101 = tpu.matmul %98, %100, %cst_48 {dimension_numbers = #tpu.dot_dimension_numbers<[1], [0], [0], [1], [0, 0, 1, 1], [], []>} : vector<64x4xbf16>, vector<4x8xbf16>, vector<64x8xf32> -> vector<64x8xf32>
    %102 = arith.addf %96, %101 : vector<64x8xf32>
    %c0_49 = arith.constant 0 : index
    %c4_50 = arith.constant 4 : index
    %103 = vector.load %arg9[%c0_49, %c4_50] : memref<1x24xf32, #tpu.memory_space<vmem>>, vector<1x8xf32>
    %104 = vector.broadcast %103 : vector<1x8xf32> to vector<64x8xf32>
    %105 = arith.addf %102, %104 : vector<64x8xf32>
    %cst_51 = arith.constant 0.000000e+00 : f32
    %106 = vector.broadcast %cst_51 : f32 to vector<64x8xf32>
    %107 = arith.maximumf %105, %106 : vector<64x8xf32>
    %108 = vector.shape_cast %107 : vector<64x8xf32> to vector<4x16x8xf32>
    %c0_52 = arith.constant 0 : index
    %c0_53 = arith.constant 0 : index
    %c0_54 = arith.constant 0 : index
    %c4_55 = arith.constant 4 : index
    %109 = vector.load %arg10[%c0_52, %c0_53, %c0_54, %c4_55] : memref<1x4x16x24xf32, #tpu.memory_space<vmem>>, vector<1x4x16x8xf32>
    %110 = vector.shape_cast %109 : vector<1x4x16x8xf32> to vector<4x16x8xf32>
    %111 = vector.shape_cast %108 : vector<4x16x8xf32> to vector<1x4x16x8xf32>
    tpu.vector_store %arg10[%c0_52, %c0_53, %c0_54, %c4_55], %111 {strides = array<i32>} : memref<1x4x16x24xf32, #tpu.memory_space<vmem>>, vector<1x4x16x8xf32>,
    %cst_56 = arith.constant 0.000000e+00 : f32
    %112 = vector.broadcast %cst_56 : f32 to vector<64x8xf32>
    %113 = vector.extract_strided_slice %34 {offsets = [0, 0, 0], sizes = [4, 16, 4], strides = [1, 1, 1]} : vector<8x20x4xbf16> to vector<4x16x4xbf16>
    %114 = vector.shape_cast %113 : vector<4x16x4xbf16> to vector<64x4xbf16>
    %c0_57 = arith.constant 0 : index
    %c0_58 = arith.constant 0 : index
    %c0_59 = arith.constant 0 : index
    %115 = vector.load %arg6[%c0_57, %c0_58, %c0_59] : memref<25x4x8xbf16, #tpu.memory_space<vmem>>, vector<1x4x8xbf16>
    %116 = vector.shape_cast %115 : vector<1x4x8xbf16> to vector<4x8xbf16>
    %cst_60 = arith.constant dense<0.000000e+00> : vector<64x8xf32>
    %117 = tpu.matmul %114, %116, %cst_60 {dimension_numbers = #tpu.dot_dimension_numbers<[1], [0], [0], [1], [0, 0, 1, 1], [], []>} : vector<64x4xbf16>, vector<4x8xbf16>, vector<64x8xf32> -> vector<64x8xf32>
    %118 = arith.addf %112, %117 : vector<64x8xf32>
    %119 = vector.extract_strided_slice %34 {offsets = [0, 1, 0], sizes = [4, 16, 4], strides = [1, 1, 1]} : vector<8x20x4xbf16> to vector<4x16x4xbf16>
    %120 = vector.shape_cast %119 : vector<4x16x4xbf16> to vector<64x4xbf16>
    %c1_61 = arith.constant 1 : index
    %c0_62 = arith.constant 0 : index
    %c0_63 = arith.constant 0 : index
    %121 = vector.load %arg6[%c1_61, %c0_62, %c0_63] : memref<25x4x8xbf16, #tpu.memory_space<vmem>>, vector<1x4x8xbf16>
    %122 = vector.shape_cast %121 : vector<1x4x8xbf16> to vector<4x8xbf16>
    %cst_64 = arith.constant dense<0.000000e+00> : vector<64x8xf32>
    %123 = tpu.matmul %120, %122, %cst_64 {dimension_numbers = #tpu.dot_dimension_numbers<[1], [0], [0], [1], [0, 0, 1, 1], [], []>} : vector<64x4xbf16>, vector<4x8xbf16>, vector<64x8xf32> -> vector<64x8xf32>
    %124 = arith.addf %118, %123 : vector<64x8xf32>
    %125 = vector.extract_strided_slice %34 {offsets = [0, 2, 0], sizes = [4, 16, 4], strides = [1, 1, 1]} : vector<8x20x4xbf16> to vector<4x16x4xbf16>
    %126 = vector.shape_cast %125 : vector<4x16x4xbf16> to vector<64x4xbf16>
    %c2_65 = arith.constant 2 : index
    %c0_66 = arith.constant 0 : index
    %c0_67 = arith.constant 0 : index
    %127 = vector.load %arg6[%c2_65, %c0_66, %c0_67] : memref<25x4x8xbf16, #tpu.memory_space<vmem>>, vector<1x4x8xbf16>
    %128 = vector.shape_cast %127 : vector<1x4x8xbf16> to vector<4x8xbf16>
    %cst_68 = arith.constant dense<0.000000e+00> : vector<64x8xf32>
    %129 = tpu.matmul %126, %128, %cst_68 {dimension_numbers = #tpu.dot_dimension_numbers<[1], [0], [0], [1], [0, 0, 1, 1], [], []>} : vector<64x4xbf16>, vector<4x8xbf16>, vector<64x8xf32> -> vector<64x8xf32>
    %130 = arith.addf %124, %129 : vector<64x8xf32>
    %131 = vector.extract_strided_slice %34 {offsets = [0, 3, 0], sizes = [4, 16, 4], strides = [1, 1, 1]} : vector<8x20x4xbf16> to vector<4x16x4xbf16>
    %132 = vector.shape_cast %131 : vector<4x16x4xbf16> to vector<64x4xbf16>
    %c3_69 = arith.constant 3 : index
    %c0_70 = arith.constant 0 : index
    %c0_71 = arith.constant 0 : index
    %133 = vector.load %arg6[%c3_69, %c0_70, %c0_71] : memref<25x4x8xbf16, #tpu.memory_space<vmem>>, vector<1x4x8xbf16>
    %134 = vector.shape_cast %133 : vector<1x4x8xbf16> to vector<4x8xbf16>
    %cst_72 = arith.constant dense<0.000000e+00> : vector<64x8xf32>
    %135 = tpu.matmul %132, %134, %cst_72 {dimension_numbers = #tpu.dot_dimension_numbers<[1], [0], [0], [1], [0, 0, 1, 1], [], []>} : vector<64x4xbf16>, vector<4x8xbf16>, vector<64x8xf32> -> vector<64x8xf32>
    %136 = arith.addf %130, %135 : vector<64x8xf32>
    %137 = vector.extract_strided_slice %34 {offsets = [0, 4, 0], sizes = [4, 16, 4], strides = [1, 1, 1]} : vector<8x20x4xbf16> to vector<4x16x4xbf16>
    %138 = vector.shape_cast %137 : vector<4x16x4xbf16> to vector<64x4xbf16>
    %c4_73 = arith.constant 4 : index
    %c0_74 = arith.constant 0 : index
    %c0_75 = arith.constant 0 : index
    %139 = vector.load %arg6[%c4_73, %c0_74, %c0_75] : memref<25x4x8xbf16, #tpu.memory_space<vmem>>, vector<1x4x8xbf16>
    %140 = vector.shape_cast %139 : vector<1x4x8xbf16> to vector<4x8xbf16>
    %cst_76 = arith.constant dense<0.000000e+00> : vector<64x8xf32>
    %141 = tpu.matmul %138, %140, %cst_76 {dimension_numbers = #tpu.dot_dimension_numbers<[1], [0], [0], [1], [0, 0, 1, 1], [], []>} : vector<64x4xbf16>, vector<4x8xbf16>, vector<64x8xf32> -> vector<64x8xf32>
    %142 = arith.addf %136, %141 : vector<64x8xf32>
    %143 = vector.extract_strided_slice %34 {offsets = [1, 0, 0], sizes = [4, 16, 4], strides = [1, 1, 1]} : vector<8x20x4xbf16> to vector<4x16x4xbf16>
    %144 = vector.shape_cast %143 : vector<4x16x4xbf16> to vector<64x4xbf16>
    %c5_77 = arith.constant 5 : index
    %c0_78 = arith.constant 0 : index
    %c0_79 = arith.constant 0 : index
    %145 = vector.load %arg6[%c5_77, %c0_78, %c0_79] : memref<25x4x8xbf16, #tpu.memory_space<vmem>>, vector<1x4x8xbf16>
    %146 = vector.shape_cast %145 : vector<1x4x8xbf16> to vector<4x8xbf16>
    %cst_80 = arith.constant dense<0.000000e+00> : vector<64x8xf32>
    %147 = tpu.matmul %144, %146, %cst_80 {dimension_numbers = #tpu.dot_dimension_numbers<[1], [0], [0], [1], [0, 0, 1, 1], [], []>} : vector<64x4xbf16>, vector<4x8xbf16>, vector<64x8xf32> -> vector<64x8xf32>
    %148 = arith.addf %142, %147 : vector<64x8xf32>
    %149 = vector.extract_strided_slice %34 {offsets = [1, 1, 0], sizes = [4, 16, 4], strides = [1, 1, 1]} : vector<8x20x4xbf16> to vector<4x16x4xbf16>
    %150 = vector.shape_cast %149 : vector<4x16x4xbf16> to vector<64x4xbf16>
    %c6_81 = arith.constant 6 : index
    %c0_82 = arith.constant 0 : index
    %c0_83 = arith.constant 0 : index
    %151 = vector.load %arg6[%c6_81, %c0_82, %c0_83] : memref<25x4x8xbf16, #tpu.memory_space<vmem>>, vector<1x4x8xbf16>
    %152 = vector.shape_cast %151 : vector<1x4x8xbf16> to vector<4x8xbf16>
    %cst_84 = arith.constant dense<0.000000e+00> : vector<64x8xf32>
    %153 = tpu.matmul %150, %152, %cst_84 {dimension_numbers = #tpu.dot_dimension_numbers<[1], [0], [0], [1], [0, 0, 1, 1], [], []>} : vector<64x4xbf16>, vector<4x8xbf16>, vector<64x8xf32> -> vector<64x8xf32>
    %154 = arith.addf %148, %153 : vector<64x8xf32>
    %155 = vector.extract_strided_slice %34 {offsets = [1, 2, 0], sizes = [4, 16, 4], strides = [1, 1, 1]} : vector<8x20x4xbf16> to vector<4x16x4xbf16>
    %156 = vector.shape_cast %155 : vector<4x16x4xbf16> to vector<64x4xbf16>
    %c7_85 = arith.constant 7 : index
    %c0_86 = arith.constant 0 : index
    %c0_87 = arith.constant 0 : index
    %157 = vector.load %arg6[%c7_85, %c0_86, %c0_87] : memref<25x4x8xbf16, #tpu.memory_space<vmem>>, vector<1x4x8xbf16>
    %158 = vector.shape_cast %157 : vector<1x4x8xbf16> to vector<4x8xbf16>
    %cst_88 = arith.constant dense<0.000000e+00> : vector<64x8xf32>
    %159 = tpu.matmul %156, %158, %cst_88 {dimension_numbers = #tpu.dot_dimension_numbers<[1], [0], [0], [1], [0, 0, 1, 1], [], []>} : vector<64x4xbf16>, vector<4x8xbf16>, vector<64x8xf32> -> vector<64x8xf32>
    %160 = arith.addf %154, %159 : vector<64x8xf32>
    %161 = vector.extract_strided_slice %34 {offsets = [1, 3, 0], sizes = [4, 16, 4], strides = [1, 1, 1]} : vector<8x20x4xbf16> to vector<4x16x4xbf16>
    %162 = vector.shape_cast %161 : vector<4x16x4xbf16> to vector<64x4xbf16>
    %c8_89 = arith.constant 8 : index
    %c0_90 = arith.constant 0 : index
    %c0_91 = arith.constant 0 : index
    %163 = vector.load %arg6[%c8_89, %c0_90, %c0_91] : memref<25x4x8xbf16, #tpu.memory_space<vmem>>, vector<1x4x8xbf16>
    %164 = vector.shape_cast %163 : vector<1x4x8xbf16> to vector<4x8xbf16>
    %cst_92 = arith.constant dense<0.000000e+00> : vector<64x8xf32>
    %165 = tpu.matmul %162, %164, %cst_92 {dimension_numbers = #tpu.dot_dimension_numbers<[1], [0], [0], [1], [0, 0, 1, 1], [], []>} : vector<64x4xbf16>, vector<4x8xbf16>, vector<64x8xf32> -> vector<64x8xf32>
    %166 = arith.addf %160, %165 : vector<64x8xf32>
    %167 = vector.extract_strided_slice %34 {offsets = [1, 4, 0], sizes = [4, 16, 4], strides = [1, 1, 1]} : vector<8x20x4xbf16> to vector<4x16x4xbf16>
    %168 = vector.shape_cast %167 : vector<4x16x4xbf16> to vector<64x4xbf16>
    %c9 = arith.constant 9 : index
    %c0_93 = arith.constant 0 : index
    %c0_94 = arith.constant 0 : index
    %169 = vector.load %arg6[%c9, %c0_93, %c0_94] : memref<25x4x8xbf16, #tpu.memory_space<vmem>>, vector<1x4x8xbf16>
    %170 = vector.shape_cast %169 : vector<1x4x8xbf16> to vector<4x8xbf16>
    %cst_95 = arith.constant dense<0.000000e+00> : vector<64x8xf32>
    %171 = tpu.matmul %168, %170, %cst_95 {dimension_numbers = #tpu.dot_dimension_numbers<[1], [0], [0], [1], [0, 0, 1, 1], [], []>} : vector<64x4xbf16>, vector<4x8xbf16>, vector<64x8xf32> -> vector<64x8xf32>
    %172 = arith.addf %166, %171 : vector<64x8xf32>
    %173 = vector.extract_strided_slice %34 {offsets = [2, 0, 0], sizes = [4, 16, 4], strides = [1, 1, 1]} : vector<8x20x4xbf16> to vector<4x16x4xbf16>
    %174 = vector.shape_cast %173 : vector<4x16x4xbf16> to vector<64x4xbf16>
    %c10 = arith.constant 10 : index
    %c0_96 = arith.constant 0 : index
    %c0_97 = arith.constant 0 : index
    %175 = vector.load %arg6[%c10, %c0_96, %c0_97] : memref<25x4x8xbf16, #tpu.memory_space<vmem>>, vector<1x4x8xbf16>
    %176 = vector.shape_cast %175 : vector<1x4x8xbf16> to vector<4x8xbf16>
    %cst_98 = arith.constant dense<0.000000e+00> : vector<64x8xf32>
    %177 = tpu.matmul %174, %176, %cst_98 {dimension_numbers = #tpu.dot_dimension_numbers<[1], [0], [0], [1], [0, 0, 1, 1], [], []>} : vector<64x4xbf16>, vector<4x8xbf16>, vector<64x8xf32> -> vector<64x8xf32>
    %178 = arith.addf %172, %177 : vector<64x8xf32>
    %179 = vector.extract_strided_slice %34 {offsets = [2, 1, 0], sizes = [4, 16, 4], strides = [1, 1, 1]} : vector<8x20x4xbf16> to vector<4x16x4xbf16>
    %180 = vector.shape_cast %179 : vector<4x16x4xbf16> to vector<64x4xbf16>
    %c11 = arith.constant 11 : index
    %c0_99 = arith.constant 0 : index
    %c0_100 = arith.constant 0 : index
    %181 = vector.load %arg6[%c11, %c0_99, %c0_100] : memref<25x4x8xbf16, #tpu.memory_space<vmem>>, vector<1x4x8xbf16>
    %182 = vector.shape_cast %181 : vector<1x4x8xbf16> to vector<4x8xbf16>
    %cst_101 = arith.constant dense<0.000000e+00> : vector<64x8xf32>
    %183 = tpu.matmul %180, %182, %cst_101 {dimension_numbers = #tpu.dot_dimension_numbers<[1], [0], [0], [1], [0, 0, 1, 1], [], []>} : vector<64x4xbf16>, vector<4x8xbf16>, vector<64x8xf32> -> vector<64x8xf32>
    %184 = arith.addf %178, %183 : vector<64x8xf32>
    %185 = vector.extract_strided_slice %34 {offsets = [2, 2, 0], sizes = [4, 16, 4], strides = [1, 1, 1]} : vector<8x20x4xbf16> to vector<4x16x4xbf16>
    %186 = vector.shape_cast %185 : vector<4x16x4xbf16> to vector<64x4xbf16>
    %c12 = arith.constant 12 : index
    %c0_102 = arith.constant 0 : index
    %c0_103 = arith.constant 0 : index
    %187 = vector.load %arg6[%c12, %c0_102, %c0_103] : memref<25x4x8xbf16, #tpu.memory_space<vmem>>, vector<1x4x8xbf16>
    %188 = vector.shape_cast %187 : vector<1x4x8xbf16> to vector<4x8xbf16>
    %cst_104 = arith.constant dense<0.000000e+00> : vector<64x8xf32>
    %189 = tpu.matmul %186, %188, %cst_104 {dimension_numbers = #tpu.dot_dimension_numbers<[1], [0], [0], [1], [0, 0, 1, 1], [], []>} : vector<64x4xbf16>, vector<4x8xbf16>, vector<64x8xf32> -> vector<64x8xf32>
    %190 = arith.addf %184, %189 : vector<64x8xf32>
    %191 = vector.extract_strided_slice %34 {offsets = [2, 3, 0], sizes = [4, 16, 4], strides = [1, 1, 1]} : vector<8x20x4xbf16> to vector<4x16x4xbf16>
    %192 = vector.shape_cast %191 : vector<4x16x4xbf16> to vector<64x4xbf16>
    %c13 = arith.constant 13 : index
    %c0_105 = arith.constant 0 : index
    %c0_106 = arith.constant 0 : index
    %193 = vector.load %arg6[%c13, %c0_105, %c0_106] : memref<25x4x8xbf16, #tpu.memory_space<vmem>>, vector<1x4x8xbf16>
    %194 = vector.shape_cast %193 : vector<1x4x8xbf16> to vector<4x8xbf16>
    %cst_107 = arith.constant dense<0.000000e+00> : vector<64x8xf32>
    %195 = tpu.matmul %192, %194, %cst_107 {dimension_numbers = #tpu.dot_dimension_numbers<[1], [0], [0], [1], [0, 0, 1, 1], [], []>} : vector<64x4xbf16>, vector<4x8xbf16>, vector<64x8xf32> -> vector<64x8xf32>
    %196 = arith.addf %190, %195 : vector<64x8xf32>
    %197 = vector.extract_strided_slice %34 {offsets = [2, 4, 0], sizes = [4, 16, 4], strides = [1, 1, 1]} : vector<8x20x4xbf16> to vector<4x16x4xbf16>
    %198 = vector.shape_cast %197 : vector<4x16x4xbf16> to vector<64x4xbf16>
    %c14 = arith.constant 14 : index
    %c0_108 = arith.constant 0 : index
    %c0_109 = arith.constant 0 : index
    %199 = vector.load %arg6[%c14, %c0_108, %c0_109] : memref<25x4x8xbf16, #tpu.memory_space<vmem>>, vector<1x4x8xbf16>
    %200 = vector.shape_cast %199 : vector<1x4x8xbf16> to vector<4x8xbf16>
    %cst_110 = arith.constant dense<0.000000e+00> : vector<64x8xf32>
    %201 = tpu.matmul %198, %200, %cst_110 {dimension_numbers = #tpu.dot_dimension_numbers<[1], [0], [0], [1], [0, 0, 1, 1], [], []>} : vector<64x4xbf16>, vector<4x8xbf16>, vector<64x8xf32> -> vector<64x8xf32>
    %202 = arith.addf %196, %201 : vector<64x8xf32>
    %203 = vector.extract_strided_slice %34 {offsets = [3, 0, 0], sizes = [4, 16, 4], strides = [1, 1, 1]} : vector<8x20x4xbf16> to vector<4x16x4xbf16>
    %204 = vector.shape_cast %203 : vector<4x16x4xbf16> to vector<64x4xbf16>
    %c15 = arith.constant 15 : index
    %c0_111 = arith.constant 0 : index
    %c0_112 = arith.constant 0 : index
    %205 = vector.load %arg6[%c15, %c0_111, %c0_112] : memref<25x4x8xbf16, #tpu.memory_space<vmem>>, vector<1x4x8xbf16>
    %206 = vector.shape_cast %205 : vector<1x4x8xbf16> to vector<4x8xbf16>
    %cst_113 = arith.constant dense<0.000000e+00> : vector<64x8xf32>
    %207 = tpu.matmul %204, %206, %cst_113 {dimension_numbers = #tpu.dot_dimension_numbers<[1], [0], [0], [1], [0, 0, 1, 1], [], []>} : vector<64x4xbf16>, vector<4x8xbf16>, vector<64x8xf32> -> vector<64x8xf32>
    %208 = arith.addf %202, %207 : vector<64x8xf32>
    %209 = vector.extract_strided_slice %34 {offsets = [3, 1, 0], sizes = [4, 16, 4], strides = [1, 1, 1]} : vector<8x20x4xbf16> to vector<4x16x4xbf16>
    %210 = vector.shape_cast %209 : vector<4x16x4xbf16> to vector<64x4xbf16>
    %c16 = arith.constant 16 : index
    %c0_114 = arith.constant 0 : index
    %c0_115 = arith.constant 0 : index
    %211 = vector.load %arg6[%c16, %c0_114, %c0_115] : memref<25x4x8xbf16, #tpu.memory_space<vmem>>, vector<1x4x8xbf16>
    %212 = vector.shape_cast %211 : vector<1x4x8xbf16> to vector<4x8xbf16>
    %cst_116 = arith.constant dense<0.000000e+00> : vector<64x8xf32>
    %213 = tpu.matmul %210, %212, %cst_116 {dimension_numbers = #tpu.dot_dimension_numbers<[1], [0], [0], [1], [0, 0, 1, 1], [], []>} : vector<64x4xbf16>, vector<4x8xbf16>, vector<64x8xf32> -> vector<64x8xf32>
    %214 = arith.addf %208, %213 : vector<64x8xf32>
    %215 = vector.extract_strided_slice %34 {offsets = [3, 2, 0], sizes = [4, 16, 4], strides = [1, 1, 1]} : vector<8x20x4xbf16> to vector<4x16x4xbf16>
    %216 = vector.shape_cast %215 : vector<4x16x4xbf16> to vector<64x4xbf16>
    %c17 = arith.constant 17 : index
    %c0_117 = arith.constant 0 : index
    %c0_118 = arith.constant 0 : index
    %217 = vector.load %arg6[%c17, %c0_117, %c0_118] : memref<25x4x8xbf16, #tpu.memory_space<vmem>>, vector<1x4x8xbf16>
    %218 = vector.shape_cast %217 : vector<1x4x8xbf16> to vector<4x8xbf16>
    %cst_119 = arith.constant dense<0.000000e+00> : vector<64x8xf32>
    %219 = tpu.matmul %216, %218, %cst_119 {dimension_numbers = #tpu.dot_dimension_numbers<[1], [0], [0], [1], [0, 0, 1, 1], [], []>} : vector<64x4xbf16>, vector<4x8xbf16>, vector<64x8xf32> -> vector<64x8xf32>
    %220 = arith.addf %214, %219 : vector<64x8xf32>
    %221 = vector.extract_strided_slice %34 {offsets = [3, 3, 0], sizes = [4, 16, 4], strides = [1, 1, 1]} : vector<8x20x4xbf16> to vector<4x16x4xbf16>
    %222 = vector.shape_cast %221 : vector<4x16x4xbf16> to vector<64x4xbf16>
    %c18 = arith.constant 18 : index
    %c0_120 = arith.constant 0 : index
    %c0_121 = arith.constant 0 : index
    %223 = vector.load %arg6[%c18, %c0_120, %c0_121] : memref<25x4x8xbf16, #tpu.memory_space<vmem>>, vector<1x4x8xbf16>
    %224 = vector.shape_cast %223 : vector<1x4x8xbf16> to vector<4x8xbf16>
    %cst_122 = arith.constant dense<0.000000e+00> : vector<64x8xf32>
    %225 = tpu.matmul %222, %224, %cst_122 {dimension_numbers = #tpu.dot_dimension_numbers<[1], [0], [0], [1], [0, 0, 1, 1], [], []>} : vector<64x4xbf16>, vector<4x8xbf16>, vector<64x8xf32> -> vector<64x8xf32>
    %226 = arith.addf %220, %225 : vector<64x8xf32>
    %227 = vector.extract_strided_slice %34 {offsets = [3, 4, 0], sizes = [4, 16, 4], strides = [1, 1, 1]} : vector<8x20x4xbf16> to vector<4x16x4xbf16>
    %228 = vector.shape_cast %227 : vector<4x16x4xbf16> to vector<64x4xbf16>
    %c19 = arith.constant 19 : index
    %c0_123 = arith.constant 0 : index
    %c0_124 = arith.constant 0 : index
    %229 = vector.load %arg6[%c19, %c0_123, %c0_124] : memref<25x4x8xbf16, #tpu.memory_space<vmem>>, vector<1x4x8xbf16>
    %230 = vector.shape_cast %229 : vector<1x4x8xbf16> to vector<4x8xbf16>
    %cst_125 = arith.constant dense<0.000000e+00> : vector<64x8xf32>
    %231 = tpu.matmul %228, %230, %cst_125 {dimension_numbers = #tpu.dot_dimension_numbers<[1], [0], [0], [1], [0, 0, 1, 1], [], []>} : vector<64x4xbf16>, vector<4x8xbf16>, vector<64x8xf32> -> vector<64x8xf32>
    %232 = arith.addf %226, %231 : vector<64x8xf32>
    %233 = vector.extract_strided_slice %34 {offsets = [4, 0, 0], sizes = [4, 16, 4], strides = [1, 1, 1]} : vector<8x20x4xbf16> to vector<4x16x4xbf16>
    %234 = vector.shape_cast %233 : vector<4x16x4xbf16> to vector<64x4xbf16>
    %c20 = arith.constant 20 : index
    %c0_126 = arith.constant 0 : index
    %c0_127 = arith.constant 0 : index
    %235 = vector.load %arg6[%c20, %c0_126, %c0_127] : memref<25x4x8xbf16, #tpu.memory_space<vmem>>, vector<1x4x8xbf16>
    %236 = vector.shape_cast %235 : vector<1x4x8xbf16> to vector<4x8xbf16>
    %cst_128 = arith.constant dense<0.000000e+00> : vector<64x8xf32>
    %237 = tpu.matmul %234, %236, %cst_128 {dimension_numbers = #tpu.dot_dimension_numbers<[1], [0], [0], [1], [0, 0, 1, 1], [], []>} : vector<64x4xbf16>, vector<4x8xbf16>, vector<64x8xf32> -> vector<64x8xf32>
    %238 = arith.addf %232, %237 : vector<64x8xf32>
    %239 = vector.extract_strided_slice %34 {offsets = [4, 1, 0], sizes = [4, 16, 4], strides = [1, 1, 1]} : vector<8x20x4xbf16> to vector<4x16x4xbf16>
    %240 = vector.shape_cast %239 : vector<4x16x4xbf16> to vector<64x4xbf16>
    %c21 = arith.constant 21 : index
    %c0_129 = arith.constant 0 : index
    %c0_130 = arith.constant 0 : index
    %241 = vector.load %arg6[%c21, %c0_129, %c0_130] : memref<25x4x8xbf16, #tpu.memory_space<vmem>>, vector<1x4x8xbf16>
    %242 = vector.shape_cast %241 : vector<1x4x8xbf16> to vector<4x8xbf16>
    %cst_131 = arith.constant dense<0.000000e+00> : vector<64x8xf32>
    %243 = tpu.matmul %240, %242, %cst_131 {dimension_numbers = #tpu.dot_dimension_numbers<[1], [0], [0], [1], [0, 0, 1, 1], [], []>} : vector<64x4xbf16>, vector<4x8xbf16>, vector<64x8xf32> -> vector<64x8xf32>
    %244 = arith.addf %238, %243 : vector<64x8xf32>
    %245 = vector.extract_strided_slice %34 {offsets = [4, 2, 0], sizes = [4, 16, 4], strides = [1, 1, 1]} : vector<8x20x4xbf16> to vector<4x16x4xbf16>
    %246 = vector.shape_cast %245 : vector<4x16x4xbf16> to vector<64x4xbf16>
    %c22 = arith.constant 22 : index
    %c0_132 = arith.constant 0 : index
    %c0_133 = arith.constant 0 : index
    %247 = vector.load %arg6[%c22, %c0_132, %c0_133] : memref<25x4x8xbf16, #tpu.memory_space<vmem>>, vector<1x4x8xbf16>
    %248 = vector.shape_cast %247 : vector<1x4x8xbf16> to vector<4x8xbf16>
    %cst_134 = arith.constant dense<0.000000e+00> : vector<64x8xf32>
    %249 = tpu.matmul %246, %248, %cst_134 {dimension_numbers = #tpu.dot_dimension_numbers<[1], [0], [0], [1], [0, 0, 1, 1], [], []>} : vector<64x4xbf16>, vector<4x8xbf16>, vector<64x8xf32> -> vector<64x8xf32>
    %250 = arith.addf %244, %249 : vector<64x8xf32>
    %251 = vector.extract_strided_slice %34 {offsets = [4, 3, 0], sizes = [4, 16, 4], strides = [1, 1, 1]} : vector<8x20x4xbf16> to vector<4x16x4xbf16>
    %252 = vector.shape_cast %251 : vector<4x16x4xbf16> to vector<64x4xbf16>
    %c23 = arith.constant 23 : index
    %c0_135 = arith.constant 0 : index
    %c0_136 = arith.constant 0 : index
    %253 = vector.load %arg6[%c23, %c0_135, %c0_136] : memref<25x4x8xbf16, #tpu.memory_space<vmem>>, vector<1x4x8xbf16>
    %254 = vector.shape_cast %253 : vector<1x4x8xbf16> to vector<4x8xbf16>
    %cst_137 = arith.constant dense<0.000000e+00> : vector<64x8xf32>
    %255 = tpu.matmul %252, %254, %cst_137 {dimension_numbers = #tpu.dot_dimension_numbers<[1], [0], [0], [1], [0, 0, 1, 1], [], []>} : vector<64x4xbf16>, vector<4x8xbf16>, vector<64x8xf32> -> vector<64x8xf32>
    %256 = arith.addf %250, %255 : vector<64x8xf32>
    %257 = vector.extract_strided_slice %34 {offsets = [4, 4, 0], sizes = [4, 16, 4], strides = [1, 1, 1]} : vector<8x20x4xbf16> to vector<4x16x4xbf16>
    %258 = vector.shape_cast %257 : vector<4x16x4xbf16> to vector<64x4xbf16>
    %c24 = arith.constant 24 : index
    %c0_138 = arith.constant 0 : index
    %c0_139 = arith.constant 0 : index
    %259 = vector.load %arg6[%c24, %c0_138, %c0_139] : memref<25x4x8xbf16, #tpu.memory_space<vmem>>, vector<1x4x8xbf16>
    %260 = vector.shape_cast %259 : vector<1x4x8xbf16> to vector<4x8xbf16>
    %cst_140 = arith.constant dense<0.000000e+00> : vector<64x8xf32>
    %261 = tpu.matmul %258, %260, %cst_140 {dimension_numbers = #tpu.dot_dimension_numbers<[1], [0], [0], [1], [0, 0, 1, 1], [], []>} : vector<64x4xbf16>, vector<4x8xbf16>, vector<64x8xf32> -> vector<64x8xf32>
    %262 = arith.addf %256, %261 : vector<64x8xf32>
    %c0_141 = arith.constant 0 : index
    %c12_142 = arith.constant 12 : index
    %263 = vector.load %arg9[%c0_141, %c12_142] : memref<1x24xf32, #tpu.memory_space<vmem>>, vector<1x8xf32>
    %264 = vector.broadcast %263 : vector<1x8xf32> to vector<64x8xf32>
    %265 = arith.addf %262, %264 : vector<64x8xf32>
    %cst_143 = arith.constant 0.000000e+00 : f32
    %266 = vector.broadcast %cst_143 : f32 to vector<64x8xf32>
    %267 = arith.maximumf %265, %266 : vector<64x8xf32>
    %268 = vector.shape_cast %267 : vector<64x8xf32> to vector<4x16x8xf32>
    %c0_144 = arith.constant 0 : index
    %c0_145 = arith.constant 0 : index
    %c0_146 = arith.constant 0 : index
    %c12_147 = arith.constant 12 : index
    %269 = vector.load %arg10[%c0_144, %c0_145, %c0_146, %c12_147] : memref<1x4x16x24xf32, #tpu.memory_space<vmem>>, vector<1x4x16x8xf32>
    %270 = vector.shape_cast %269 : vector<1x4x16x8xf32> to vector<4x16x8xf32>
    %271 = vector.shape_cast %268 : vector<4x16x8xf32> to vector<1x4x16x8xf32>
    tpu.vector_store %arg10[%c0_144, %c0_145, %c0_146, %c12_147], %271 {strides = array<i32>} : memref<1x4x16x24xf32, #tpu.memory_space<vmem>>, vector<1x4x16x8xf32>,
    %272 = arith.extf %3 : vector<8x20x4xbf16> to vector<8x20x4xf32>
    %cst_148 = arith.constant 0xFF800000 : f32
    %273 = vector.shape_cast %18 : vector<8x20x1xi1> to vector<8x20x1xi1>
    %274 = vector.broadcast %273 : vector<8x20x1xi1> to vector<8x20x4xi1>
    %275 = vector.broadcast %cst_148 : f32 to vector<8x20x4xf32>
    %276 = arith.select %274, %272, %275 : vector<8x20x4xi1>, vector<8x20x4xf32>
    %277 = vector.extract_strided_slice %276 {offsets = [0, 1, 0], sizes = [8, 16, 4], strides = [1, 1, 1]} : vector<8x20x4xf32> to vector<8x16x4xf32>
    %278 = vector.extract_strided_slice %276 {offsets = [0, 2, 0], sizes = [8, 16, 4], strides = [1, 1, 1]} : vector<8x20x4xf32> to vector<8x16x4xf32>
    %279 = arith.maximumf %277, %278 : vector<8x16x4xf32>
    %280 = vector.extract_strided_slice %276 {offsets = [0, 3, 0], sizes = [8, 16, 4], strides = [1, 1, 1]} : vector<8x20x4xf32> to vector<8x16x4xf32>
    %281 = arith.maximumf %279, %280 : vector<8x16x4xf32>
    %282 = vector.extract_strided_slice %281 {offsets = [1, 0, 0], sizes = [4, 16, 4], strides = [1, 1, 1]} : vector<8x16x4xf32> to vector<4x16x4xf32>
    %283 = vector.extract_strided_slice %281 {offsets = [2, 0, 0], sizes = [4, 16, 4], strides = [1, 1, 1]} : vector<8x16x4xf32> to vector<4x16x4xf32>
    %284 = arith.maximumf %282, %283 : vector<4x16x4xf32>
    %285 = vector.extract_strided_slice %281 {offsets = [3, 0, 0], sizes = [4, 16, 4], strides = [1, 1, 1]} : vector<8x16x4xf32> to vector<4x16x4xf32>
    %286 = arith.maximumf %284, %285 : vector<4x16x4xf32>
    %287 = arith.truncf %286 : vector<4x16x4xf32> to vector<4x16x4xbf16>
    %288 = vector.shape_cast %287 : vector<4x16x4xbf16> to vector<64x4xbf16>
    %c0_149 = arith.constant 0 : index
    %c0_150 = arith.constant 0 : index
    %289 = vector.load %arg7[%c0_149, %c0_150] : memref<4x4xbf16, #tpu.memory_space<vmem>>, vector<4x4xbf16>
    %cst_151 = arith.constant dense<0.000000e+00> : vector<64x4xf32>
    %290 = tpu.matmul %288, %289, %cst_151 {dimension_numbers = #tpu.dot_dimension_numbers<[1], [0], [0], [1], [0, 0, 1, 1], [], []>} : vector<64x4xbf16>, vector<4x4xbf16>, vector<64x4xf32> -> vector<64x4xf32>
    %c0_152 = arith.constant 0 : index
    %c20_153 = arith.constant 20 : index
    %291 = vector.load %arg9[%c0_152, %c20_153] : memref<1x24xf32, #tpu.memory_space<vmem>>, vector<1x4xf32>
    %292 = vector.broadcast %291 : vector<1x4xf32> to vector<64x4xf32>
    %293 = arith.addf %290, %292 : vector<64x4xf32>
    %cst_154 = arith.constant 0.000000e+00 : f32
    %294 = vector.broadcast %cst_154 : f32 to vector<64x4xf32>
    %295 = arith.maximumf %293, %294 : vector<64x4xf32>
    %296 = vector.shape_cast %295 : vector<64x4xf32> to vector<4x16x4xf32>
    %c0_155 = arith.constant 0 : index
    %c0_156 = arith.constant 0 : index
    %c0_157 = arith.constant 0 : index
    %c20_158 = arith.constant 20 : index
    %297 = vector.load %arg10[%c0_155, %c0_156, %c0_157, %c20_158] : memref<1x4x16x24xf32, #tpu.memory_space<vmem>>, vector<1x4x16x4xf32>
    %298 = vector.shape_cast %297 : vector<1x4x16x4xf32> to vector<4x16x4xf32>
    %299 = vector.shape_cast %296 : vector<4x16x4xf32> to vector<1x4x16x4xf32>
    tpu.vector_store %arg10[%c0_155, %c0_156, %c0_157, %c20_158], %299 {strides = array<i32>} : memref<1x4x16x24xf32, #tpu.memory_space<vmem>>, vector<1x4x16x4xf32>,
    return
  }
  func.func @transform_0(%arg0: i32, %arg1: i32) -> (i32, i32, i32, i32) {
    %c0_i32 = arith.constant 0 : i32
    %c0_i32_0 = arith.constant 0 : i32
    %c0_i32_1 = arith.constant 0 : i32
    %c0_i32_2 = arith.constant 0 : i32
    return %arg0, %c0_i32, %c0_i32_0, %c0_i32_1 : i32, i32, i32, i32
  }
  func.func @transform_1(%arg0: i32, %arg1: i32) -> (i32, i32) {
    %c0_i32 = arith.constant 0 : i32
    %c0_i32_0 = arith.constant 0 : i32
    %c0_i32_1 = arith.constant 0 : i32
    return %c0_i32, %c0_i32_0 : i32, i32
  }
  func.func @transform_2(%arg0: i32, %arg1: i32) -> (i32, i32) {
    %c0_i32 = arith.constant 0 : i32
    %c0_i32_0 = arith.constant 0 : i32
    %c0_i32_1 = arith.constant 0 : i32
    return %c0_i32, %c0_i32_0 : i32, i32
  }
  func.func @transform_3(%arg0: i32, %arg1: i32) -> (i32, i32, i32) {
    %c0_i32 = arith.constant 0 : i32
    %c0_i32_0 = arith.constant 0 : i32
    %c0_i32_1 = arith.constant 0 : i32
    %c0_i32_2 = arith.constant 0 : i32
    return %c0_i32, %c0_i32_0, %c0_i32_1 : i32, i32, i32
  }
  func.func @transform_4(%arg0: i32, %arg1: i32) -> (i32, i32, i32) {
    %c0_i32 = arith.constant 0 : i32
    %c0_i32_0 = arith.constant 0 : i32
    %c0_i32_1 = arith.constant 0 : i32
    %c0_i32_2 = arith.constant 0 : i32
    return %c0_i32, %c0_i32_0, %c0_i32_1 : i32, i32, i32
  }
  func.func @transform_5(%arg0: i32, %arg1: i32) -> (i32, i32) {
    %c0_i32 = arith.constant 0 : i32
    %c0_i32_0 = arith.constant 0 : i32
    %c0_i32_1 = arith.constant 0 : i32
    return %c0_i32, %c0_i32_0 : i32, i32
  }
  func.func @transform_6(%arg0: i32, %arg1: i32) -> (i32, i32) {
    %c0_i32 = arith.constant 0 : i32
    %c0_i32_0 = arith.constant 0 : i32
    %c0_i32_1 = arith.constant 0 : i32
    return %c0_i32, %c0_i32_0 : i32, i32
  }
  func.func @transform_7(%arg0: i32, %arg1: i32) -> (i32, i32) {
    %c0_i32 = arith.constant 0 : i32
    %c0_i32_0 = arith.constant 0 : i32
    %c0_i32_1 = arith.constant 0 : i32
    return %c0_i32, %c0_i32_0 : i32, i32
  }
  func.func @transform_8(%arg0: i32, %arg1: i32) -> (i32, i32, i32, i32) {
    %c0_i32 = arith.constant 0 : i32
    %c0_i32_0 = arith.constant 0 : i32
    %c0_i32_1 = arith.constant 0 : i32
    return %arg0, %arg1, %c0_i32, %c0_i32_0 : i32, i32, i32, i32
  }
}

</mosaic_0001>

<bundles_post_ra>
// kernel: inception_block.1
= control target key start
LH: loop header
LB: loop body
LE: loop exit
PB: predicated region body
PF: predicated region fallthrough
CT: control target
= control target key end

     0   :  { %s8103_s0 = inlined_call_operand.vmem [shape: bf16[2,20,20,4], index: 0, kind: input, shape index: {}]   ;;  %s8104_s1 = inlined_call_operand.vmem [shape: bf16[4,4], index: 1, kind: input, shape index: {}]   ;;  %s8105_s2 = inlined_call_operand.vmem [shape: bf16[4,8], index: 2, kind: input, shape index: {}]   ;;  %s8106_s3 = inlined_call_operand.vmem [shape: bf16[9,4,8], index: 3, kind: input, shape index: {}]   ;;  %s8107_s4 = inlined_call_operand.vmem [shape: bf16[25,4,8], index: 4, kind: input, shape index: {}]   ;;  %s8108_s5 = inlined_call_operand.vmem [shape: bf16[4,4], index: 5, kind: input, shape index: {}]   ;;  %s8109_s6 = inlined_call_operand.vmem [shape: f32[1,8], index: 6, kind: input, shape index: {}]   ;;  %s8110_s7 = inlined_call_operand.vmem [shape: f32[1,24], index: 7, kind: input, shape index: {}]   ;;  %s8111_s8 = inlined_call_operand.hbm [shape: f32[2,16,16,24], index: 8, kind: output, shape index: {}]  }
   0x1   :  { %8140 = sst [smem:[#allocation13_spill]] %s8103_s0 }
   0x2   :  { %13 = vsyncpa [#allocation3], 0 }
   0x3   :  { %15 = vsyncpa [#allocation3 + $0x1], 0  ;;  %s6391_s27 = smov 0   ;;  %s6393_s28 = smov 0  }
   0x4   :  { %s6395_s29 = smov 0   ;;  %s6397_s30 = smov 0  }
   0x5   :  { %s6399_s9 = smov 0   ;;  %s6401_s10 = smov 0  }
   0x6   :  { %s6403_s11 = smov 0   ;;  %s6405_s12 = smov 0  }
   0x7 LB: > { %s5045_s13 = sadd.s32 4294967295, %s6334_s12   ;;  %s5046_s14 = sadd.s32 4294967294, %s6334_s12   ;;  %s6334_s12 = sphi %s6405_s12, %s21_s12   ;;  %s6330_s11 = sphi %s6403_s11, %s8478_s11   ;;  %s6326_s10 = sphi %s6401_s10, %s8477_s10   ;;  %s6322_s9 = sphi %s6399_s9, %s8476_s9   ;;  %s6318_s30 = sphi %s6397_s30, %s8475_s30   ;;  %s6314_s29 = sphi %s6395_s29, %s8474_s29   ;;  %s6310_s28 = sphi %s6393_s28, %s8473_s28   ;;  %s6306_s27 = sphi %s6391_s27, %s8472_s27  }
   0x8   : > { %s30_s15 = sadd.s32 1, %s6326_s10  ;;  %s33_s16 = sadd.s32 1, %s6330_s11 }
   0x9   : > { %p31_p0 = scmp.ge.s32.totalorder %s30_s15, 4  ;;  %p225_p1 = scmp.ne.s32.totalorder %s6314_s29, %s6310_s28 }
   0xa   : > { %p226_p2 = scmp.eq.s32.totalorder %s5045_s13, 7  ;;  %p231_p5 = scmp.ne.s32.totalorder %s6310_s28, %s6306_s27 }
   0xb   : > { %s8480_s15 = smov (%p31_p0, %s30_s15), 0  ;;  %s8482_s16 = smov (!%p31_p0, %s33_s16), %s6330_s11 }
   0xc   : > { %s211_s17 = ssub.s32 %s6326_s10, %s8480_s15  ;;  %p6442_p3 = por %p226_p2, %p225_p1 }
   0xd   : > { %p35_p4 = scmp.ge.s32.totalorder %s8482_s16, 2  ;;  %p232_p6 = scmp.eq.s32.totalorder %s5046_s14, 7 }
   0xe   : > { %p5049_p7 = scmp.ge.s32.totalorder %s6334_s12, 1  ;;  %p279_p9 = scmp.lt.s32.totalorder %s6334_s12, 9 }
   0xf   : > { %s8484_s16 = smov (%p35_p4, %s8482_s16), 0  ;;  %p6451_p8 = por %p232_p6, %p231_p5 }
  0x10   : > { %s210_s20 = ssub.s32 %s6330_s11, %s8484_s16  ;;  %s215_s21 = sadd.s32 1, %s6314_s29 }
  0x11   : > { %s212_s22 = sor.u32 %s211_s17, %s210_s20  ;;  %p280_p10 = pnand %p5049_p7, %p279_p9 }
  0x12   : > { %p213_p11 = scmp.eq.s32.totalorder %s212_s22, 0 }
  0x13   : > { %283 = sbr.rel (%p280_p10) target bundleno = 1079 (0x437), region = 52 }
  0x14   : > { %s6460_s23 = scalar_select %p213_p11, %s6314_s29, %s215_s21  }
  0x1a   : > { %v646_v0 = vld [vmem:[%s8105_s2] sm:$0x3]  ;;  %vm8114_vm0 = vcmask 1041408   ;;  %p313_p12 = scmp.lt.s32.totalorder %s6322_s9, 1  ;;  %v356_v1 = vlaneseq  ;;  %v6336_v4 = vmov 1983009808  }
  0x1b   : > { %6098 = vmatprep.subr.msk.bf16.mxu1 %vm8114_vm0, %v646_v0  ;;  %v857_v2 = vsel %vm8114_vm0, %v646_v0, 0  ;;  %v486_v5 = vunpack.c.l.s4 %v6336_v4  ;;  %s5267_s13 = smul.u32 48, %s6318_s30  ;;  %s8143_s0 = sld [smem:[#allocation13_spill]]  ;;  %vm8115_vm1 = vcmask 31744   ;;  %vm1156_vm2 = vcmask 1042432  }
  0x1c   : > { %5461 = vmatpush3.bf16.msra.mxu1 %v857_v2  ;;  %s314_s26 = scalar_select %p313_p12, %s6322_s9, 1  ;;  %v6469_v3 = vshrl.u32 %v356_v1, 7  ;;  %vm1157_vm3 = vcmask 1046532  }
  0x1d   : > { %v487_v6 = vunpack.c.0.s8 %v486_v5  ;;  %vm6590_vm4 = vmor %vm1156_vm2, %vm1157_vm3  ;;  %s5052_s20 = sshll.u32 %s6318_s30, 2  ;;  %s6338_s25 = smov 116  }
  0x1e   : > { %s6135_s14 = smul.u32 240, %s314_s26  ;;  %vm8113_vm12 = vcmp.ge.s32.totalorder %v6469_v3, 2  ;;  %s6342_s26 = smov 12  }
  0x1f   : > { %v6476_v7 = vsub.s32 %v487_v6, %v6469_v3 }
  0x21   : > { %s317_s21 = scalar_lea.vmem %s8143_s0, %s6135_s14 }
  0x22   : > { %s6478_s22 = scalar_lea.vmem %s317_s21, %s5267_s13  ;;  %s6337_s21 = smov 124  }
  0x23   : > { %v5055_v8 = vld.sshfl [vmem:[%s6478_s22] sm:$0x33 pattern:$0x76325410]  ;;  %v6487_v19 = vld [vmem:[%s6478_s22 + $0x18] sm:$0xf] }
  0x24   : > { %v6234_v9 = vld.sshfl [vmem:[%s6478_s22 + $0xc] sm:$0x33 pattern:$0x76325410]  ;;  %v469_v11 = vcombine.high %v5055_v8, %v5055_v8  ;;  %v6490_v20 = vld [vmem:[%s6478_s22 + $0x1c] sm:$0xf]  ;;  %v514_v24 = vrot.slane %v6487_v19, %v6476_v7 }
  0x25   : > { %v5056_v10 = vld.sshfl [vmem:[%s6478_s22 + $0x4] sm:$0x33 pattern:$0x76325410]  ;;  %v492_v17 = vcombine.high %v6234_v9, %v6234_v9  ;;  %v6493_v21 = vld [vmem:[%s6478_s22 + $0x20] sm:$0x3]  ;;  %v522_v26 = vrot.slane %v6490_v20, %v6476_v7 }
  0x26   : > { %v6235_v12 = vld.sshfl [vmem:[%s6478_s22 + $0x10] sm:$0x33 pattern:$0x76325410]  ;;  %v477_v13 = vcombine.high %v5056_v10, %v5056_v10  ;;  %v654_v16 = vcombine.low %v5055_v8, %v469_v11  ;;  %v6498_v25 = vld [vmem:[%s6478_s22 + $0x24] sm:$0xf]  ;;  %v530_v31 = vrot.slane %v6493_v21, %v6476_v7  ;;  %v515_v33 = vcombine.high %v514_v24, %v514_v24 }
  0x27   : > { %v5057_v14 = vld.sshfl [vmem:[%s6478_s22 + $0x8] sm:$0x3 pattern:$0x76325410]  ;;  %v500_v23 = vcombine.high %v6235_v12, %v6235_v12  ;;  %v672_v29 = vcombine.low %v492_v17, %v6235_v12  ;;  %v523_v35 = vcombine.high %v522_v26, %v522_v26  ;;  %v537_v37 = vrot.slane %v6498_v25, %v6476_v7  ;;  %v6514_v38 = vld [vmem:[%s6478_s22 + $0x2c] sm:$0x3] }
  0x28   : > { %v6236_v15 = vld.sshfl [vmem:[%s6478_s22 + $0x14] sm:$0x3 pattern:$0x76325410]  ;;  %v671_v18 = vcombine.low %v5057_v14, %v6234_v9  ;;  %v655_v22 = vcombine.low %v5056_v10, %v477_v13  ;;  %v6503_v27 = vld [vmem:[%s6478_s22 + $0x28] sm:$0xf]  ;;  %v662_v28 = vrot.slane %v654_v16, %v6476_v7  ;;  %v689_v41 = vcombine.low %v514_v24, %v515_v33 }
  0x29   : > { %v688_v34 = vcombine.low %v500_v23, %v6236_v15  ;;  %v686_v36 = vrot.slane %v672_v29, %v6476_v7  ;;  %v545_v39 = vrot.slane %v6503_v27, %v6476_v7  ;;  %v705_v43 = vcombine.low %v522_v26, %v523_v35  ;;  %v6520_v44 = vld [vmem:[%s6478_s22 + $0x30] sm:$0xf]  ;;  %v6523_v49 = vld [vmem:[%s6478_s22 + $0x34] sm:$0xf]  ;;  %v6530_v52 = vld [vmem:[%s6478_s22 + $0x38] sm:$0x3] }
  0x2a   : > { %v679_v30 = vrot.slane %v671_v18, %v6476_v7  ;;  %v669_v32 = vrot.slane %v655_v22, %v6476_v7  ;;  %v706_v46 = vcombine.low %v530_v31, %v537_v37  ;;  %v538_v47 = vcombine.high %v537_v37, %v537_v37  ;;  %v6538_v57 = vld [vmem:[%s6478_s22 + $0x3c] sm:$0xf]  ;;  %v6541_v58 = vld [vmem:[%s6478_s22 + $0x40] sm:$0xf]  ;;  %v6557_v11 = vld [vmem:[%s6478_s22 + $0x44] sm:$0x3] }
  0x2b   : > { %v696_v42 = vrot.slane %v688_v34, %v6476_v7  ;;  %v546_v48 = vcombine.high %v545_v39, %v545_v39  ;;  %v703_v50 = vrot.slane %v689_v41, %v6476_v7  ;;  %v553_v51 = vrot.slane %v6514_v38, %v6476_v7  ;;  %v6237_v62 = vld.sshfl [vmem:[%s6478_s22 + $0x48] sm:$0x33 pattern:$0x76325410]  ;;  %s310_s13 = sand.u32 1, %s6310_s28  }
  0x2c   : > { %v670_v40 = vcombine.low %v662_v28, %v669_v32  ;;  %v687_v45 = vcombine.low %v679_v30, %v686_v36  ;;  %v713_v53 = vrot.slane %v705_v43, %v6476_v7  ;;  %v720_v54 = vrot.slane %v706_v46, %v6476_v7  ;;  %v6238_v63 = vld.sshfl [vmem:[%s6478_s22 + $0x4c] sm:$0x33 pattern:$0x76325410]  ;;  %s5050_s14 = sshll.u32 %s310_s13, 6 }
  0x2d   : > { %v722_v55 = vcombine.low %v538_v47, %v545_v39  ;;  %v560_v56 = vrot.slane %v6520_v44, %v6476_v7  ;;  %v704_v59 = vcombine.low %v696_v42, %v703_v50  ;;  %v723_v60 = vcombine.low %v546_v48, %v553_v51  ;;  %v6239_v16 = vld.sshfl [vmem:[%s6478_s22 + $0x50] sm:$0x3 pattern:$0x76325410]  ;;  %s7510_s17 = scalar_lea.vmem [#allocation2], %s5050_s14  ;;  %s6339_s14 = smov 108  }
  0x2e   : > { %5462 = vmatprep.mubr.msk.bf16.mxu1 %vm8115_vm1, %v670_v40  ;;  %v568_v61 = vrot.slane %v6523_v49, %v6476_v7  ;;  %v576_v2 = vrot.slane %v6530_v52, %v6476_v7  ;;  %v583_v6 = vrot.slane %v6538_v57, %v6476_v7  ;;  %v591_v8 = vrot.slane %v6541_v58, %v6476_v7  ;;  %v5058_v31 = vld.sshfl [vmem:[%s6478_s22 + $0x54] sm:$0x33 pattern:$0x76325410] }
  0x2f   : > { %5463 = vmatmul.mubr.msk.bf16.vlgmr.msra.gmra.mrb[0].mxu1 %vm8115_vm1, %v687_v45  ;;  %v730_v0 = vrot.slane %v722_v55, %v6476_v7  ;;  %v561_v1 = vcombine.high %v560_v56, %v560_v56  ;;  %v737_v4 = vrot.slane %v723_v60, %v6476_v7  ;;  %v721_v9 = vcombine.low %v713_v53, %v720_v54  ;;  %v5059_v39 = vld.sshfl [vmem:[%s6478_s22 + $0x58] sm:$0x33 pattern:$0x76325410] }
  0x30   : > { %5466 = vmatprep.mubr.msk.bf16.mxu1 %vm8115_vm1, %v704_v59  ;;  %v569_v5 = vcombine.high %v568_v61, %v568_v61  ;;  %v584_v14 = vcombine.high %v583_v6, %v583_v6  ;;  %v756_v15 = vcombine.low %v576_v2, %v583_v6  ;;  %v599_v18 = vrot.slane %v6557_v11, %v6476_v7  ;;  %v5060_v47 = vld.sshfl [vmem:[%s6478_s22 + $0x5c] sm:$0x3 pattern:$0x76325410] }
  0x31   : > { %v739_v10 = vcombine.low %v560_v56, %v561_v1  ;;  %v738_v12 = vcombine.low %v730_v0, %v737_v4  ;;  %v592_v24 = vcombine.high %v591_v8, %v591_v8  ;;  %v607_v26 = vcombine.high %v6237_v62, %v6237_v62 }
  0x32   : > { %v740_v13 = vcombine.low %v568_v61, %v569_v5  ;;  %v757_v17 = vcombine.low %v584_v14, %v591_v8  ;;  %v764_v28 = vrot.slane %v756_v15, %v6476_v7  ;;  %v615_v30 = vcombine.high %v6238_v63, %v6238_v63 }
  0x33   : > { %v747_v22 = vrot.slane %v739_v10, %v6476_v7  ;;  %v773_v33 = vcombine.low %v592_v24, %v599_v18  ;;  %v774_v34 = vcombine.low %v6237_v62, %v607_v26  ;;  %v791_v37 = vcombine.low %v6239_v16, %v5058_v31  ;;  %v1352_v18 = vld [vmem:[%s8106_s3] sm:$0x3] }
  0x34   : > { %v754_v23 = vrot.slane %v740_v13, %v6476_v7  ;;  %v771_v29 = vrot.slane %v757_v17, %v6476_v7  ;;  %v790_v36 = vcombine.low %v6238_v63, %v615_v30  ;;  %v630_v42 = vcombine.high %v5058_v31, %v5058_v31  ;;  %v6639_v24 = vld [vmem:[%s8109_s6] ss:$0 sm:$0xff] }
  0x35   : > { %v781_v40 = vrot.slane %v773_v33, %v6476_v7  ;;  %v788_v41 = vrot.slane %v774_v34, %v6476_v7  ;;  %v638_v43 = vcombine.high %v5059_v39, %v5059_v39  ;;  %v805_v46 = vrot.slane %v791_v37, %v6476_v7 }
  0x36   : > { %v755_v32 = vcombine.low %v747_v22, %v754_v23  ;;  %v772_v35 = vcombine.low %v764_v28, %v771_v29  ;;  %v798_v45 = vrot.slane %v790_v36, %v6476_v7  ;;  %v807_v50 = vcombine.low %v630_v42, %v5059_v39 }
  0x37   : > { %5467 = vmatmul.mubr.msk.bf16.gmra.mrb[4].mxu1 %vm8115_vm1, %v721_v9  ;;  %v789_v48 = vcombine.low %v781_v40, %v788_v41  ;;  %v808_v51 = vcombine.low %v638_v43, %v5060_v47  ;;  %v1168_v59 = vrot.slane %v6503_v27, 5  ;;  %v1161_v60 = vrot.slane %v6490_v20, 5 }
  0x38   : > { %5470 = vmatprep.mubr.msk.bf16.mxu1 %vm8115_vm1, %v738_v12  ;;  %v806_v53 = vcombine.low %v798_v45, %v805_v46  ;;  %v815_v54 = vrot.slane %v807_v50, %v6476_v7  ;;  %v5073_v61 = vrot.slane %v6498_v25, 9  ;;  %v1171_v63 = vrot.slane %v6514_v38, 5  ;;  %v6220_v46 = vld [vmem:[%s6478_s22 + $0x20] sm:$0x3] }
  0x39   : > { %v822_v55 = vrot.slane %v808_v51, %v6476_v7  ;;  %v1170_v62 = vrot.slane %v1168_v59, 4  ;;  %v5072_v0 = vrot.slane %v6487_v19, 9  ;;  %v1187_v7 = vld [vmem:[%s8104_s1] sm:$0x3]  ;;  %v1163_v27 = vrot.slane %v1161_v60, 4 }
  0x3a   : > { %v1164_v20 = vrot.slane %v6493_v21, 5  ;;  %6099 = vmatprep.subr.msk.bf16.mxu1 %vm8114_vm0, %v1187_v7  ;;  %v1220_v25 = vsel %vm8114_vm0, %v1187_v7, 0  ;;  %v1169_v2 = vsel %vm6590_vm4, %v5073_v61, %v1168_v59  ;;  %v1175_v21 = vrot.slane %v6523_v49, 5 }
  0x3b   : > { %v823_v56 = vcombine.low %v815_v54, %v822_v55  ;;  %5483 = vmatpush3.bf16.msra.mxu1 %v1220_v25  ;;  %v1162_v38 = vsel %vm6590_vm4, %v5072_v0, %v1161_v60  ;;  %v1172_v4 = vsel %vm6590_vm4, %v1170_v62, %v1171_v63  ;;  %v5074_v8 = vrot.slane %v6520_v44, 9  ;;  %v6675_v55 = vld [vmem:[%s8106_s3 + $0x6] sm:$0x3] }
  0x3c   : > { %v1165_v19 = vsel %vm6590_vm4, %v1163_v27, %v1164_v20  ;;  %v5078_v6 = vcombine.low %v1169_v2, %v1172_v4  ;;  %v1178_v9 = vrot.slane %v6530_v52, 5  ;;  %v1182_v10 = vrot.slane %v6541_v58, 5 }
  0x3d   : > { %v5077_v5 = vcombine.low %v1162_v38, %v1165_v19  ;;  %v1176_v12 = vsel %vm6590_vm4, %v5074_v8, %v1175_v21  ;;  %v1177_v13 = vrot.slane %v1175_v21, 4  ;;  %v5075_v14 = vrot.slane %v6538_v57, 9  ;;  %v5085_v57 = vld [vmem:[%s8106_s3 + $0x2] sm:$0x3] }
  0x3e   : > { %v1184_v15 = vrot.slane %v1182_v10, 4  ;;  %v1185_v16 = vrot.slane %v6557_v11, 5  ;;  %6100 = vmatprep.subr.msk.bf16.mxu1 %vm8114_vm0, %v5085_v57  ;;  %v1389_v11 = vsel %vm8114_vm0, %v5085_v57, 0  ;;  %v348_v22 = vstv %s5052_s20  ;;  %s5263_s20 = sshll.u32 %s6322_s9, 5 }
  0x3f   : > { %5471 = vmatmul.mubr.msk.bf16.gmra.mrb[8].mxu1 %vm8115_vm1, %v755_v32  ;;  %v1179_v17 = vsel %vm6590_vm4, %v1177_v13, %v1178_v9  ;;  %v1183_v44 = vsel %vm6590_vm4, %v5075_v14, %v1182_v10  ;;  %v6634_v23 = vadd.s32 16, %v6469_v3  ;;  %vm360_vm5 = vcmp.ge.s32.totalorder %v348_v22, 2 }
  0x40   : > { %5474 = vmatprep.mubr.msk.bf16.mxu1 %vm8115_vm1, %v772_v35  ;;  %v5079_v49 = vcombine.low %v1176_v12, %v1179_v17  ;;  %v1186_v52 = vsel %vm6590_vm4, %v1184_v15, %v1185_v16  ;;  %vm368_vm6 = vcmp.lt.s32.totalorder %v348_v22, 18  ;;  %v349_v26 = vadd.s32 1, %v348_v22 }
  0x41   : > { %v5080_v58 = vcombine.low %v1183_v44, %v1186_v52  ;;  %vm6641_vm7 = vmand %vm360_vm5, %vm368_vm6  ;;  %vm8112_vm8 = vcmp.lt.s32.totalorder %v6634_v23, 18  ;;  %v350_v30 = vadd.s32 2, %v348_v22  ;;  %v6654_v39 = vadd.s32 3, %v348_v22 }
  0x42   : > { %vm416_vm9 = vmand %vm6641_vm7, %vm8112_vm8  ;;  %vm361_vm10 = vcmp.ge.s32.totalorder %v349_v26, 2  ;;  %vm369_vm11 = vcmp.lt.s32.totalorder %v349_v26, 18  ;;  %v6657_v42 = vadd.s32 4, %v348_v22  ;;  %v6670_v54 = vadd.s32 5, %v348_v22 }
  0x43   : > { %vm362_vm13 = vcmp.ge.s32.totalorder %v350_v30, 2  ;;  %vm6659_vm14 = vmand %vm361_vm10, %vm369_vm11  ;;  %vm370_vm15 = vcmp.lt.s32.totalorder %v350_v30, 18  ;;  %vm363_vm3 = vcmp.ge.s32.totalorder %v6654_v39, 2  ;;  %vm371_vm4 = vcmp.lt.s32.totalorder %v6654_v39, 18 }
  0x44   : > { %vm6681_vm2 = vmand %vm6641_vm7, %vm8113_vm12  ;;  %v6687_v60 = vadd.s32 6, %v348_v22  ;;  %v6689_v61 = vadd.s32 7, %v348_v22  ;;  %v6692_v62 = vsel %vm8114_vm0, %v1352_v18, 0  ;;  %vm364_vm6 = vcmp.ge.s32.totalorder %v6657_v42, 2 }
  0x45   : > { %vm6698_vm5 = vmand %vm6659_vm14, %vm8113_vm12  ;;  %v6718_v4 = vsel %vm8114_vm0, %v6675_v55, 0  ;;  %vm8116_vm11 = vcmask 1046528  }
  0x46   : > { %vm6711_vm10 = vmand %vm362_vm13, %vm370_vm15 }
  0x47   : > { %5475 = vmatmul.mubr.msk.bf16.gmra.mrb[12].mxu1 %vm8115_vm1, %v789_v48  ;;  %v6666_v48 = vld [vmem:[%s8106_s3 + $0x4] sm:$0x3]  ;;  %vm6735_vm13 = vmand %vm6711_vm10, %vm8112_vm8 }
  0x48   : > { %5478 = vmatprep.mubr.msk.bf16.mxu1 %vm8115_vm1, %v806_v53  ;;  %v6706_v27 = vsel %vm8114_vm0, %v6666_v48, 0  ;;  %vm6777_vm15 = vmand %vm6711_vm10, %vm8113_vm12 }
  0x4f   : > { %5479 = vmatmul.mubr.msk.bf16.gmra.mrb[16].mxu1 %vm8115_vm1, %v823_v56 }
  0x50   : > { %5484 = vmatprep.mubr.msk.bf16.mxu1 %vm8115_vm1, %v5077_v5 }
  0x57   : > { %5485 = vmatmul.mubr.msk.bf16.vlgmr.msra.gmra.mrb[20].mxu1 %vm8115_vm1, %v5078_v6 }
  0x58   : > { %5488 = vmatprep.mubr.msk.bf16.mxu1 %vm8115_vm1, %v5079_v49  ;;  %5493 = vmatpush3.bf16.msra.mxu1 %v1389_v11  ;;  %v6225_v49 = vld [vmem:[%s6478_s22 + $0x30] sm:$0xf] }
  0x59   : > { %6101 = vmatprep.subr.msk.bf16.mxu1 %vm8114_vm0, %v1352_v18  ;;  %v6222_v18 = vld [vmem:[%s6478_s22 + $0x24] sm:$0xf] }
  0x5f   : > { %5489 = vmatmul.mubr.msk.bf16.gmra.mrb[24].mxu1 %vm8115_vm1, %v5080_v58 }
 0x102   : > { %v5464_v29 = vpop.f32.mrb[0].mxu1 }
 0x103   : > { %v902_v31 = vadd.f32 %v5464_v29, %v6639_v24  ;;  %v893_v32 = vpop.f32.mrb[1].mxu1 }
 0x104   : > { %v894_v33 = vadd.f32 %v6639_v24, %v893_v32  ;;  %v5465_v34 = vpop.f32.mrb[2].mxu1 }
 0x105   : > { %v974_v35 = vmax.f32 %v902_v31, 0.0  ;;  %v905_v36 = vadd.f32 %v5465_v34, %v6639_v24  ;;  %v896_v37 = vpop.f32.mrb[3].mxu1 }
 0x106   : > { %v972_v40 = vmax.f32 %v894_v33, 0.0  ;;  %v897_v41 = vadd.f32 %v6639_v24, %v896_v37 }
 0x107   : > { %v1014_v43 = vcombine.high %v974_v35, %v974_v35  ;;  %v1118_v45 = vsel %vm416_vm9, %v974_v35, 0.0  ;;  %v975_v47 = vmax.f32 %v905_v36, 0.0  ;;  %vm372_vm9 = vcmp.lt.s32.totalorder %v6657_v42, 18  ;;  %v6809_v42 = vld [vmem:[%s8107_s4 + $0xc] sm:$0x3] }
 0x108   : > { %v6668_v50 = vpack.c.bf16 %v1118_v45, %v1118_v45  ;;  %v1012_v51 = vcombine.high %v972_v40, %v972_v40  ;;  %v973_v53 = vmax.f32 %v897_v41, 0.0  ;;  %6115 = vmatprep.subr.msk.bf16.mxu0 %vm8114_vm0, %v6809_v42 }
 0x109   : > { %v1086_v59 = vcombine.low %v1014_v43, %v975_v47  ;;  %v1015_v25 = vcombine.high %v975_v47, %v975_v47 }
 0x10a   : > { %v1084_v63 = vcombine.low %v972_v40, %v1012_v51  ;;  %v1013_v7 = vcombine.high %v973_v53, %v973_v53  ;;  %v5468_v1 = vpop.f32.mrb[4].mxu1  ;;  %v2276_v20 = vshll.u32 %v6668_v50, 16  ;;  %v2564_v5 = vshrl.u32 %v6668_v50, 16 }
 0x10b   : > { %v918_v19 = vadd.f32 %v5468_v1, %v6639_v24  ;;  %v909_v2 = vpop.f32.mrb[5].mxu1  ;;  %v1119_v12 = vsel %vm6698_vm5, %v1086_v59, 0.0 }
 0x10c   : > { %v1116_v6 = vsel %vm6681_vm2, %v1084_v63, 0.0  ;;  %v1085_v21 = vcombine.low %v973_v53, %v1013_v7  ;;  %v910_v8 = vadd.f32 %v6639_v24, %v909_v2  ;;  %v5469_v9 = vpop.f32.mrb[6].mxu1  ;;  %v6740_v58 = vrot.slane %v2276_v20, 1  ;;  %vm6787_vm2 = vmand %vm363_vm3, %vm371_vm4 }
 0x10d   : > { %v978_v13 = vmax.f32 %v918_v19, 0.0  ;;  %v921_v14 = vadd.f32 %v5469_v9, %v6639_v24  ;;  %v912_v15 = vpop.f32.mrb[7].mxu1  ;;  %v6752_v26 = vrot.slane %v2564_v5, 1  ;;  %v6756_v31 = vrot.slane %v2276_v20, 2 }
 0x10e   : > { %v1117_v17 = vsel %vm6641_vm7, %v1085_v21, 0.0  ;;  %v976_v44 = vmax.f32 %v910_v8, 0.0  ;;  %v913_v52 = vadd.f32 %v6639_v24, %v912_v15  ;;  %vm6748_vm7 = vmand %vm6659_vm14, %vm8112_vm8  ;;  %v8164_v2 = vmov 0 }
 0x10f   : > { %v6742_v57 = vpack.c.bf16 %v1117_v17, %v1116_v6  ;;  %v1018_v11 = vcombine.high %v978_v13, %v978_v13  ;;  %v979_v22 = vmax.f32 %v921_v14, 0.0  ;;  %vm6797_vm8 = vmand %vm364_vm6, %vm372_vm9  ;;  %vm8171_vm9 = vcmp.lt.s32.totalorder %v6634_v23, 18 }
 0x110   : > { %v1016_v28 = vcombine.high %v976_v44, %v976_v44  ;;  %v1087_v29 = vcombine.low %v1015_v25, %v976_v44  ;;  %v977_v30 = vmax.f32 %v913_v52, 0.0  ;;  %v8165_v2 = vsel %vm6797_vm8, 4294967295, %v8164_v2  ;;  %vm6823_vm6 = vmand %vm6787_vm2, %vm8113_vm12  ;;  %v7637_v44 = vld [vmem:[%s8107_s4 + $0x1e] sm:$0x3] }
 0x111   : > { %v1089_v32 = vcombine.low %v978_v13, %v1018_v11  ;;  %v1019_v33 = vcombine.high %v979_v22, %v979_v22  ;;  %v1124_v34 = vsel %vm6735_vm13, %v979_v22, 0.0  ;;  %8166 = vst [vmem:[#allocation5_spill] sm:$0xff] %v8165_v2  ;;  %vm6834_vm3 = vmand %vm6797_vm8, %vm8113_vm12  ;;  %v8169_v22 = vmov 0 }
 0x112   : > { %v1120_v36 = vsel %vm6659_vm14, %v1087_v29, 0.0  ;;  %v1121_v37 = vsel %vm6748_vm7, %v1016_v28, 0.0  ;;  %v6765_v40 = vpack.c.bf16 %v1124_v34, %v1124_v34  ;;  %v1017_v41 = vcombine.high %v977_v30, %v977_v30  ;;  %v5472_v43 = vpop.f32.mrb[8].mxu1  ;;  %vm6845_vm4 = vmand %vm6787_vm2, %vm8171_vm9 }
 0x113   : > { %v1123_v45 = vsel %vm6711_vm10, %v1089_v32, 0.0  ;;  %v6769_v47 = vpack.c.bf16 %v1120_v36, %v1119_v12  ;;  %v6771_v51 = vpack.c.bf16 %v1121_v37, %v1121_v37  ;;  %v934_v56 = vadd.f32 %v5472_v43, %v6639_v24  ;;  %v925_v59 = vpop.f32.mrb[9].mxu1 }
 0x114   : > { %v1366_v63 = vrot.slane %v6765_v40, 1  ;;  %v1088_v7 = vcombine.low %v977_v30, %v1017_v41  ;;  %v926_v20 = vadd.f32 %v6639_v24, %v925_v59  ;;  %v5473_v25 = vpop.f32.mrb[10].mxu1  ;;  %v8120_v19 = vshll.u32 %v6765_v40, 16 }
 0x115   : > { %v982_v5 = vmax.f32 %v934_v56, 0.0  ;;  %v937_v39 = vadd.f32 %v5473_v25, %v6639_v24  ;;  %v928_v6 = vpop.f32.mrb[11].mxu1  ;;  %v1362_v21 = vrot.slane %v6769_v47, 1  ;;  %v1363_v8 = vrot.slane %v6771_v51, 1 }
 0x116   : > { %v1122_v9 = vsel %vm6777_vm15, %v1088_v7, 0.0  ;;  %v980_v12 = vmax.f32 %v926_v20, 0.0  ;;  %v929_v13 = vadd.f32 %v6639_v24, %v928_v6  ;;  %v8124_v14 = vshrl.u32 %v6769_v47, 16 }
 0x117   : > { %v6817_v15 = vpack.c.bf16 %v1123_v45, %v1122_v9  ;;  %v1022_v17 = vcombine.high %v982_v5, %v982_v5  ;;  %v983_v52 = vmax.f32 %v937_v39, 0.0  ;;  %v6828_v11 = vsel %vm8116_vm11, %v1362_v21, %v1363_v8 }
 0x118   : > { %v8170_v22 = vsel %vm6834_vm3, 4294967295, %v8169_v22  ;;  %v1020_v28 = vcombine.high %v980_v12, %v980_v12  ;;  %v1090_v29 = vcombine.low %v1019_v33, %v980_v12  ;;  %v981_v30 = vmax.f32 %v929_v13, 0.0  ;;  %5494 = vmatprep.mubr.msk.bf16.mxu1 %vm8115_vm1, %v6828_v11 }
 0x119   : > { %v8123_v32 = vshll.u32 %v6769_v47, 16  ;;  %v1092_v34 = vcombine.low %v982_v5, %v1022_v17  ;;  %v1023_v36 = vcombine.high %v983_v52, %v983_v52  ;;  %v8172_v37 = vmov 0 }
 0x11a   : > { %v8173_v37 = vsel %vm6845_vm4, 4294967295, %v8172_v37  ;;  %v1365_v41 = vrot.slane %v6817_v15, 1  ;;  %v8122_v33 = vshll.u32 %v6771_v51, 16  ;;  %v1125_v43 = vsel %vm6823_vm6, %v1090_v29, 0.0  ;;  %v5476_v59 = vpop.f32.mrb[12].mxu1 }
 0x11b   : > { %v1021_v45 = vcombine.high %v981_v30, %v981_v30  ;;  %v1091_v56 = vcombine.low %v1020_v28, %v981_v30  ;;  %v1309_v7 = vrot.slane %v8123_v32, 1  ;;  %v1128_v20 = vsel %vm6834_vm3, %v1092_v34, 0.0  ;;  %v941_v6 = vpop.f32.mrb[13].mxu1 }
 0x11c   : > { %v1093_v25 = vcombine.low %v983_v52, %v1023_v36  ;;  %vm8174_vm9 = vcmp.lt.s32.totalorder %v6670_v54, 18  ;;  %vm8175_vm12 = vcmp.ge.s32.totalorder %v6670_v54, 2  ;;  %v8176_v5 = vmov 0  ;;  %v5477_v13 = vpop.f32.mrb[14].mxu1 }
 0x11d   : > { %vm6861_vm0 = vmand %vm8175_vm12, %vm8174_vm9  ;;  %v950_v39 = vadd.f32 %v5476_v59, %v6639_v24  ;;  %v6867_v21 = vsel %vm8116_vm11, %v1365_v41, %v1366_v63  ;;  %v1126_v8 = vsel %vm6787_vm2, %v1091_v56, 0.0  ;;  %v1127_v9 = vsel %vm6845_vm4, %v1021_v45, 0.0  ;;  %v944_v30 = vpop.f32.mrb[15].mxu1 }
 0x11e   : > { %v8177_v5 = vsel %vm6861_vm0, 4294967295, %v8176_v5  ;;  %v942_v12 = vadd.f32 %v6639_v24, %v941_v6  ;;  %5495 = vmatmul.mubr.msk.bf16.vlgmr.msra.gmra.mrb[28].mxu1 %vm8115_vm1, %v6867_v21  ;;  %v1310_v54 = vor.u32 %v1309_v7, %v8124_v14  ;;  %v1129_v17 = vsel %vm6797_vm8, %v1093_v25, 0.0 }
 0x11f   : > { %8178 = vst [vmem:[#allocation6_spill] sm:$0xff] %v8177_v5  ;;  %v6880_v63 = vpack.c.bf16 %v1126_v8, %v1125_v43  ;;  %v6882_v52 = vpack.c.bf16 %v1127_v9, %v1127_v9  ;;  %v986_v28 = vmax.f32 %v950_v39, 0.0  ;;  %vm8179_vm12 = vcmp.lt.s32.totalorder %v6634_v23, 18  ;;  %5503 = vmatpush3.bf16.msra.mxu1 %v6692_v62 }
 0x120   : > { %vm6888_vm9 = vmand %vm6797_vm8, %vm8179_vm12  ;;  %v8180_v29 = vmov 0  ;;  %v6895_v34 = vpack.c.bf16 %v1129_v17, %v1128_v20  ;;  %v8184_v36 = vmov 0  ;;  %v984_v41 = vmax.f32 %v942_v12, 0.0 }
 0x121   : > { %v8181_v29 = vsel %vm6888_vm9, 4294967295, %v8180_v29  ;;  %vm8183_vm3 = vmmov %vm8179_vm12  ;;  %v953_v43 = vadd.f32 %v5477_v13, %v6639_v24  ;;  %v1314_v45 = vrot.slane %v8122_v33, 1  ;;  %vm8187_vm12 = vcmask 1041408  }
 0x122   : > { %8182 = vst [vmem:[#allocation7_spill] sm:$0xff] %v8181_v29  ;;  %vm6901_vm4 = vmand %vm6861_vm0, %vm8183_vm3  ;;  %6102 = vmatprep.subr.msk.bf16.mxu1 %vm8187_vm12, %v6666_v48  ;;  %v1026_v62 = vcombine.high %v986_v28, %v986_v28  ;;  %v945_v56 = vadd.f32 %v6639_v24, %v944_v30  ;;  %v8128_v59 = vshrl.u32 %v6817_v15, 16  ;;  %v8121_v7 = vshll.u32 %v6817_v15, 16 }
 0x123   : > { %v8185_v36 = vsel %vm6901_vm4, 4294967295, %v8184_v36  ;;  %v1024_v20 = vcombine.high %v984_v41, %v984_v41  ;;  %v1130_v25 = vsel %vm6888_vm9, %v984_v41, 0.0  ;;  %vm8188_vm3 = vcmp.lt.s32.totalorder %v6687_v60, 18  ;;  %v5480_v41 = vpop.f32.mrb[16].mxu1 }
 0x124   : > { %8186 = vst [vmem:[#allocation8_spill] sm:$0xff] %v8185_v36  ;;  %vm8189_vm1 = vcmp.ge.s32.totalorder %v6687_v60, 2  ;;  %v8190_v39 = vmov 0  ;;  %v987_v48 = vmax.f32 %v953_v43, 0.0  ;;  %vm8193_vm12 = vsmask.f32 7424 }
 0x125   : > { %vm6919_vm11 = vmand %vm8189_vm1, %vm8188_vm3  ;;  %v6924_v6 = vsel %vm8193_vm12, %v1310_v54, %v1314_v45  ;;  %v1133_v8 = vsel %vm6901_vm4, %v1026_v62, 0.0  ;;  %v6928_v9 = vpack.c.bf16 %v1130_v25, %v1130_v25  ;;  %v985_v12 = vmax.f32 %v945_v56, 0.0  ;;  %v957_v16 = vpop.f32.mrb[17].mxu1 }
 0x126   : > { %v8191_v39 = vsel %vm6919_vm11, 4294967295, %v8190_v39  ;;  %2284 = vrot.lane.b32.xlu0 %v6924_v6, %s6337_s21  ;;  %v1321_v60 = vrot.slane %v8121_v7, 1  ;;  %v6934_v13 = vpack.c.bf16 %v1133_v8, %v1133_v8  ;;  %v1027_v17 = vcombine.high %v987_v48, %v987_v48  ;;  %v5481_v7 = vpop.f32.mrb[18].mxu1 }
 0x127   : > { %8192 = vst [vmem:[#allocation9_spill] sm:$0xff] %v8191_v39  ;;  %vm8194_vm1 = vcmp.ge.s32.totalorder %v6469_v3, 2  ;;  %v8195_v54 = vmov 0  ;;  %v1326_v30 = vrot.slane %v8120_v19, 1  ;;  %v1368_v43 = vrot.slane %v6880_v63, 1 }
 0x128   : > { %vm6940_vm3 = vmand %vm6861_vm0, %vm8194_vm1  ;;  %v8199_v45 = vmov 0  ;;  %v1025_v62 = vcombine.high %v985_v12, %v985_v12  ;;  %v1094_v56 = vcombine.low %v1024_v20, %v985_v12  ;;  %v1322_v25 = vor.u32 %v1321_v60, %v8128_v59  ;;  %v960_v60 = vpop.f32.mrb[19].mxu1 }
 0x129   : > { %v8196_v54 = vsel %vm6940_vm3, 4294967295, %v8195_v54  ;;  %vm8198_vm12 = vmmov %vm8194_vm1  ;;  %v966_v8 = vadd.f32 %v5480_v41, %v6639_v24  ;;  %v1096_v10 = vcombine.low %v987_v48, %v1027_v17  ;;  %v1369_v35 = vrot.slane %v6882_v52, 1 }
 0x12a   : > { %8197 = vst [vmem:[#allocation10_spill] sm:$0xff] %v8196_v54  ;;  %vm6951_vm4 = vmand %vm6919_vm11, %vm8198_vm12  ;;  %v958_v19 = vadd.f32 %v6639_v24, %v957_v16  ;;  %v1329_v33 = vshrl.u32 %v6880_v63, 16  ;;  %v1095_v32 = vcombine.low %v1025_v62, %v986_v28  ;;  %v1131_v14 = vsel %vm6940_vm3, %v1094_v56, 0.0 }
 0x12b   : > { %v8200_v45 = vsel %vm6951_vm4, 4294967295, %v8199_v45  ;;  %vm8202_vm1 = vsmask.f32 7424  ;;  %v990_v12 = vmax.f32 %v966_v8, 0.0  ;;  %v1134_v41 = vsel %vm6951_vm4, %v1096_v10, 0.0 }
 0x12c   : > { %8201 = vst [vmem:[#allocation11_spill] sm:$0xff] %v8200_v45  ;;  %v6964_v20 = vsel %vm8202_vm1, %v1322_v25, %v1326_v30  ;;  %vm8203_vm12 = vcmask 1046528   ;;  %v988_v48 = vmax.f32 %v958_v19, 0.0  ;;  %v969_v28 = vadd.f32 %v5481_v7, %v6639_v24 }
 0x12d   : > { %2286 = vrot.lane.b32.xlu0 %v6964_v20, %s6337_s21  ;;  %v6971_v16 = vsel %vm8203_vm12, %v1368_v43, %v1369_v35  ;;  %v1132_v17 = vsel %vm6861_vm0, %v1095_v32, 0.0  ;;  %v1030_v62 = vcombine.high %v990_v12, %v990_v12  ;;  %vm8204_vm1 = vcmask 31744  }
 0x12e   : > { %5498 = vmatprep.mubr.msk.bf16.mxu1 %vm8204_vm1, %v6971_v16  ;;  %v1331_v30 = vshll.u32 %v6880_v63, 16  ;;  %v1336_v10 = vshll.u32 %v6882_v52, 16  ;;  %v6980_v56 = vpack.c.bf16 %v1132_v17, %v1131_v14  ;;  %v1028_v25 = vcombine.high %v988_v48, %v988_v48 }
 0x12f   : > { %vm8205_vm12 = vcmp.lt.s32.totalorder %v6689_v61, 18  ;;  %vm8206_vm4 = vcmp.ge.s32.totalorder %v6689_v61, 2  ;;  %v991_v19 = vmax.f32 %v969_v28, 0.0  ;;  %v1371_v32 = vrot.slane %v6895_v34, 1 }
 0x130   : > { %vm6986_vm3 = vmand %vm8206_vm4, %vm8205_vm12  ;;  %vm8209_vm1 = vcmp.lt.s32.totalorder %v6634_v23, 18  ;;  %v1333_v14 = vrot.slane %v1331_v30, 1  ;;  %v1338_v43 = vrot.slane %v1336_v10, 1  ;;  %v1372_v8 = vrot.slane %v6928_v9, 1 }
 0x131   : > { %vm6995_vm0 = vmand %vm6986_vm3, %vm8209_vm1  ;;  %v961_v61 = vadd.f32 %v6639_v24, %v960_v60  ;;  %v1097_v17 = vcombine.low %v988_v48, %v1028_v25  ;;  %2467 = vrot.lane.b32.xlu0 %v6828_v11, %s6337_s21  ;;  %v1031_v28 = vcombine.high %v991_v19, %v991_v19  ;;  %v1099_v59 = vcombine.low %v1030_v62, %v991_v19 }
 0x132   : > { %v1341_v45 = vshrl.u32 %v6895_v34, 16  ;;  %v1334_v36 = vor.u32 %v1333_v14, %v1329_v33  ;;  %vm8212_vm4 = vcmask 1046528   ;;  %vm8213_vm12 = vmmov %vm8209_vm1  ;;  %v8214_v5 = vmov 0 }
 0x133   : > { %v7005_v54 = vsel %vm8212_vm4, %v1371_v32, %v1372_v8  ;;  %vm7011_vm1 = vmand %vm6919_vm11, %vm8213_vm12  ;;  %v989_v24 = vmax.f32 %v961_v61, 0.0  ;;  %v1343_v60 = vshll.u32 %v6895_v34, 16  ;;  %v1135_v11 = vsel %vm6919_vm11, %v1097_v17, 0.0 }
 0x134   : > { %v8215_v5 = vsel %vm7011_vm1, 4294967295, %v8214_v5  ;;  %v1138_v48 = vsel %vm6986_vm3, %v1099_v59, 0.0  ;;  %v1139_v62 = vsel %vm6995_vm0, %v1031_v28, 0.0  ;;  %vm8217_vm4 = vcmask 31744  }
 0x135   : > { %8216 = vst [vmem:[#allocation12_spill] sm:$0xff] %v8215_v5  ;;  %5499 = vmatmul.mubr.msk.bf16.gmra.mrb[32].mxu1 %vm8217_vm4, %v7005_v54  ;;  %v1348_v23 = vshll.u32 %v6928_v9, 16  ;;  %vm1536_vm12 = vsmask.f32 6400  ;;  %v7025_v25 = vpack.c.bf16 %v1135_v11, %v1134_v41  ;;  %v7027_v19 = vpack.c.bf16 %v1139_v62, %v1139_v62  ;;  %vm8219_vm11 = vmmov %vm8217_vm4  ;;  %2471 = vrot.lane.b32.xlu0 %v6971_v16, %s6337_s21 }
 0x136   : > { %vm8218_vm9 = vsmask.f32 7424  ;;  %v1029_v14 = vcombine.high %v989_v24, %v989_v24  ;;  %5504 = vmatprep.mubr.msk.bf16.mxu1 %vm8219_vm11, %v6924_v6  ;;  %vm8220_vm0 = vcmp.ge.s32.totalorder %v6469_v3, 2  ;;  %v1136_v41 = vsel %vm7011_vm1, %v989_v24, 0.0 }
 0x137   : > { %v7030_v32 = vsel %vm8218_vm9, %v1334_v36, %v1338_v43  ;;  %vm7040_vm4 = vmand %vm6986_vm3, %vm8220_vm0  ;;  %v1345_v36 = vrot.slane %v1343_v60, 1  ;;  %v1350_v7 = vrot.slane %v1348_v23, 1  ;;  %v8223_v6 = vshrl.u32 %v6769_v47, 16 }
 0x138   : > { %2288 = vrot.lane.b32.xlu1 %v7030_v32, %s6337_s21  ;;  %v1098_v8 = vcombine.low %v1029_v14, %v990_v12  ;;  %v7050_v61 = vpack.c.bf16 %v1136_v41, %v1136_v41  ;;  %v8224_v3 = vshll.u32 %v6769_v47, 16  ;;  %v1540_v17 = vshrl.u32 %v6771_v51, 16  ;;  %vm8226_vm11 = vmmov %vm8218_vm9 }
 0x139   : > { %v1537_v43 = vrot.slane %v8223_v6, 1  ;;  %v1346_v28 = vor.u32 %v1345_v36, %v1341_v45  ;;  %v8225_v11 = vshll.u32 %v6771_v51, 16  ;;  %v1555_v62 = vrot.slane %v1329_v33, 1 }
 0x13a   : > { %v1538_v35 = vrot.slane %v8224_v3, 2  ;;  %v1556_v5 = vrot.slane %v1331_v30, 2  ;;  %v1137_v39 = vsel %vm7040_vm4, %v1098_v8, 0.0  ;;  %v1542_v2 = vrot.slane %v1540_v17, 1 }
 0x13b   : > { %v1543_v24 = vrot.slane %v8225_v11, 2  ;;  %v1558_v12 = vshrl.u32 %v6882_v52, 16  ;;  %v7060_v14 = vpack.c.bf16 %v1138_v48, %v1137_v39  ;;  %v7063_v41 = vsel %vm8226_vm11, %v1346_v28, %v1350_v7 }
 0x13c   : > { %v1539_v29 = vor.u32 %v1538_v35, %v1537_v43  ;;  %v1557_v6 = vor.u32 %v1556_v5, %v1555_v62  ;;  %v1561_v3 = vrot.slane %v1336_v10, 2  ;;  %2864 = vrot.lane.b32.xlu1 %v7063_v41, %s6337_s21  ;;  %v2672_v30 = vrot.slane %v6769_v47, 2 }
 0x13d   : > { %v1544_v36 = vor.u32 %v1543_v24, %v1542_v2  ;;  %v1560_v33 = vrot.slane %v1558_v12, 1  ;;  %v2673_v59 = vrot.slane %v6771_v51, 2  ;;  %vm8227_vm9 = vcmask 31744  }
 0x13e   : > { %5505 = vmatmul.mubr.msk.bf16.vlgmr.msra.gmra.mrb[28].mxu1 %vm8227_vm9, %v6964_v20  ;;  %v8228_v39 = vshrl.u32 %v6817_v15, 16  ;;  %v8229_v7 = vshll.u32 %v6817_v15, 16  ;;  %v1549_v5 = vshrl.u32 %v6765_v40, 16  ;;  %v8230_v10 = vshll.u32 %v6765_v40, 16  ;;  %vm8231_vm3 = vmmov %vm8227_vm9 }
 0x13f   : > { %v1545_v2 = vsel %vm1536_vm12, %v1539_v29, %v1544_v36  ;;  %5508 = vmatprep.mubr.msk.bf16.mxu1 %vm8231_vm3, %v7030_v32  ;;  %v1562_v51 = vor.u32 %v1561_v3, %v1560_v33  ;;  %vm8232_vm0 = vcmask 1045504   ;;  %v2678_v17 = vrot.slane %v6880_v63, 2  ;;  %5513 = vmatpush3.bf16.msra.mxu1 %v6706_v27 }
 0x140   : > { %v1546_v48 = vrot.slane %v8228_v39, 1  ;;  %v1547_v43 = vrot.slane %v8229_v7, 2  ;;  %v1552_v8 = vrot.slane %v8230_v10, 2  ;;  %v2674_v35 = vsel %vm8232_vm0, %v2672_v30, %v2673_v59  ;;  %2574 = vrot.lane.b32.xlu0 %v1545_v2, %s6337_s21  ;;  %2469 = vrot.lane.b32.xlu1 %v6867_v21, %s6337_s21  ;;  %vm8234_vm11 = vmmov %vm8232_vm0 }
 0x141   : > { %v1551_v11 = vrot.slane %v1549_v5, 1  ;;  %v2679_v24 = vrot.slane %v6882_v52, 2  ;;  %v1564_v62 = vrot.slane %v1341_v45, 1  ;;  %vm8233_vm4 = vcmask 1041408   ;;  %vm8235_vm9 = vmmov %vm8232_vm0 }
 0x142   : > { %v1548_v28 = vor.u32 %v1547_v43, %v1546_v48  ;;  %6103 = vmatprep.subr.msk.bf16.mxu1 %vm8233_vm4, %v6675_v55  ;;  %v7091_v29 = vsel %vm1536_vm12, %v1557_v6, %v1562_v51  ;;  %v1565_v12 = vrot.slane %v1343_v60, 2  ;;  %v1567_v3 = vshrl.u32 %v6928_v9, 16  ;;  %vm8236_vm3 = vmmov %vm8232_vm0 }
 0x143   : > { %v1570_v27 = vrot.slane %v1348_v23, 2  ;;  %v1553_v36 = vor.u32 %v1552_v8, %v1551_v11  ;;  %v2680_v33 = vsel %vm8234_vm11, %v2678_v17, %v2679_v24  ;;  %v2675_v30 = vrot.slane %v6817_v15, 2 }
 0x144   : > { %v2676_v52 = vrot.slane %v6765_v40, 2  ;;  %v1566_v45 = vor.u32 %v1565_v12, %v1564_v62  ;;  %v1569_v59 = vrot.slane %v1567_v3, 1  ;;  %v3111_v55 = vrot.slane %v6895_v34, 2  ;;  %2578 = vrot.lane.b32.xlu0 %v7091_v29, %s6337_s21  ;;  %2947 = vrot.lane.b32.xlu1 %v7005_v54, %s6337_s21 }
 0x145   : > { %v3112_v39 = vrot.slane %v6928_v9, 2  ;;  %v7102_v60 = vsel %vm1536_vm12, %v1548_v28, %v1553_v36  ;;  %v1664_v6 = vshrl.u32 %v6980_v56, 16  ;;  %v1666_v48 = vshll.u32 %v6980_v56, 16 }
 0x146   : > { %v7105_v23 = vsel %vm8235_vm9, %v2675_v30, %v2676_v52  ;;  %v1571_v40 = vor.u32 %v1570_v27, %v1569_v59  ;;  %v1671_v9 = vshll.u32 %v6934_v13, 16  ;;  %v1845_v43 = vshrl.u32 %v6934_v13, 16 }
 0x147   : > { %v7112_v7 = vsel %vm8236_vm3, %v3111_v55, %v3112_v39  ;;  %vm8237_vm0 = vcmask 31744   ;;  %v1668_v5 = vrot.slane %v1666_v48, 1  ;;  %v1842_v10 = vrot.slane %v1664_v6, 1 }
 0x148   : > { %5509 = vmatmul.mubr.msk.bf16.gmra.mrb[32].mxu1 %vm8237_vm0, %v7063_v41  ;;  %v1843_v8 = vrot.slane %v1666_v48, 2  ;;  %v1758_v51 = vrot.slane %v6980_v56, 1  ;;  %vm8238_vm4 = vmmov %vm8237_vm0  ;;  %v7121_v17 = vsel %vm1536_vm12, %v1566_v45, %v1571_v40  ;;  %v1673_v28 = vrot.slane %v1671_v9, 1  ;;  %2685 = vrot.lane.b32.xlu0 %v2674_v35, %s6337_s21 }
 0x149   : > { %5514 = vmatprep.mubr.msk.bf16.mxu1 %vm8238_vm4, %v1545_v2  ;;  %v1847_v11 = vrot.slane %v1845_v43, 1  ;;  %v1848_v24 = vrot.slane %v1671_v9, 2  ;;  %v1669_v62 = vor.u32 %v1668_v5, %v1664_v6  ;;  %v1759_v3 = vrot.slane %v6934_v13, 1  ;;  %2576 = vrot.lane.b32.xlu1 %v7102_v60, %s6337_s21 }
 0x14a   : > { %v1844_v12 = vor.u32 %v1843_v8, %v1842_v10  ;;  %v2027_v27 = vrot.slane %v7025_v25, 1  ;;  %v2028_v2 = vrot.slane %v7050_v61, 1  ;;  %v3529_v30 = vrot.slane %v6980_v56, 2 }
 0x14b   : > { %v1849_v36 = vor.u32 %v1848_v24, %v1847_v11  ;;  %v3530_v52 = vrot.slane %v6934_v13, 2  ;;  %vm8239_vm11 = vsmask.f32 7424  ;;  %vm8240_vm9 = vcmask 1046528  }
 0x14c   : > { %v7132_v45 = vsel %vm8239_vm11, %v1669_v62, %v1673_v28  ;;  %v7135_v35 = vsel %vm8240_vm9, %v1758_v51, %v1759_v3  ;;  %v1933_v59 = vshrl.u32 %v7025_v25, 16  ;;  %v1935_v55 = vshll.u32 %v7025_v25, 16  ;;  %vm8241_vm3 = vmmov %vm8240_vm9  ;;  %2689 = vrot.lane.b32.xlu0 %v2680_v33, %s6337_s21  ;;  %v5104_v51 = vld [vmem:[%s8106_s3 + $0x8] sm:$0x3] }
 0x14d   : > { %v7140_v39 = vsel %vm1536_vm12, %v1844_v12, %v1849_v36  ;;  %v7143_v6 = vsel %vm8241_vm3, %v2027_v27, %v2028_v2  ;;  %vm8242_vm0 = vcmask 1045504   ;;  %v1940_v13 = vshll.u32 %v7050_v61, 16  ;;  %3030 = vrot.lane.b32.xlu1 %v7121_v17, %s6337_s21  ;;  %vm8244_vm11 = vmmov %vm8238_vm4 }
 0x14e   : > { %v7146_v48 = vsel %vm8242_vm0, %v3529_v30, %v3530_v52  ;;  %v2111_v40 = vrot.slane %v1933_v59, 1  ;;  %v2112_v9 = vrot.slane %v1935_v55, 2  ;;  %v2114_v43 = vshrl.u32 %v7050_v61, 16  ;;  %vm8246_vm9 = vmmov %vm8241_vm3 }
 0x14f   : > { %v1937_v5 = vrot.slane %v1935_v55, 1  ;;  %v2117_v10 = vrot.slane %v1940_v13, 2  ;;  %v1942_v8 = vrot.slane %v1940_v13, 1  ;;  %v2271_v28 = vshll.u32 %v6742_v57, 16 }
 0x150   : > { %v2460_v11 = vrot.slane %v6742_v57, 1  ;;  %5515 = vmatmul.mubr.msk.bf16.vlgmr.msra.gmra.mrb[28].mxu1 %vm8238_vm4, %v7102_v60  ;;  %v2113_v33 = vor.u32 %v2112_v9, %v2111_v40  ;;  %v2116_v24 = vrot.slane %v2114_v43, 1  ;;  %v8243_v12 = vshrl.u32 %v6742_v57, 16  ;;  %2375 = vrot.lane.b32.xlu0 %v6817_v15, %s6337_s21  ;;  %v7182_v40 = vld [vmem:[%s8107_s4 + $0xe] sm:$0x3] }
 0x151   : > { %v1938_v62 = vor.u32 %v1937_v5, %v1933_v59  ;;  %5518 = vmatprep.mubr.msk.bf16.mxu1 %vm8244_vm11, %v7091_v29  ;;  %5523 = vmatpush3.bf16.msra.mxu1 %v6718_v4  ;;  %v2273_v27 = vrot.slane %v2271_v28, 1  ;;  %v8245_v36 = vrot.slane %v6668_v50, 1  ;;  %v2562_v30 = vrot.slane %v2271_v28, 2 }
 0x152   : > { %v2561_v3 = vrot.slane %v8243_v12, 1  ;;  %v3947_v52 = vrot.slane %v7025_v25, 2  ;;  %v2118_v59 = vor.u32 %v2117_v10, %v2116_v24  ;;  %vm8247_vm3 = vsmask.f32 7424  ;;  %2687 = vrot.lane.b32.xlu1 %v7105_v23, %s6337_s21 }
 0x153   : > { %v7168_v2 = vsel %vm8246_vm9, %v2460_v11, %v8245_v36  ;;  %v7174_v55 = vsel %vm8247_vm3, %v1938_v62, %v1942_v8  ;;  %vm8248_vm0 = vcmask 1041408   ;;  %v3948_v4 = vrot.slane %v7050_v61, 2 }
 0x154   : > { %6104 = vmatprep.subr.msk.bf16.mxu1 %vm8248_vm0, %v5104_v51  ;;  %v2669_v13 = vrot.slane %v6742_v57, 2  ;;  %v8249_v15 = vmov %v8243_v12  ;;  %v2563_v43 = vor.u32 %v2562_v30, %v2561_v3  ;;  %v2568_v5 = vor.u32 %v6756_v31, %v6752_v26  ;;  %vm8250_vm4 = vmmov %vm8248_vm0  ;;  %2781 = vrot.lane.b32.xlu0 %v6895_v34, %s6337_s21 }
 0x155   : > { %v2274_v9 = vor.u32 %v2273_v27, %v8249_v15  ;;  %v2870_v61 = vsel %vm8250_vm4, %v6809_v42, 0  ;;  %v7193_v10 = vsel %vm1536_vm12, %v2113_v33, %v2118_v59  ;;  %vm8251_vm11 = vcmask 1045504  }
 0x156   : > { %v3949_v8 = vsel %vm8251_vm11, %v3947_v52, %v3948_v4  ;;  %v8252_v28 = vrot.slane %v6668_v50, 2  ;;  %vm8253_vm9 = vmmov %vm8251_vm11  ;;  %5643 = vmatpush3.bf16.msra.mxu0 %v2870_v61  ;;  %v2569_v24 = vsel %vm1536_vm12, %v2563_v43, %v2568_v5  ;;  %v4118_v26 = vshrl.u32 %v7060_v14, 16  ;;  %3116 = vrot.lane.b32.xlu1 %v7112_v7, %s6337_s21  ;;  %v5109_v43 = vld [vmem:[%s8106_s3 + $0xa] sm:$0x3]  ;;  %v5174_v61 = vld [vmem:[%s8107_s4 + $0x12] sm:$0x3] }
 0x157   : > { %v2279_v23 = vsel %vm8247_vm3, %v2274_v9, %v6740_v58  ;;  %6116 = vmatprep.subr.msk.bf16.mxu0 %vm8248_vm0, %v7182_v40  ;;  %v4120_v31 = vshll.u32 %v7060_v14, 16  ;;  %v4125_v50 = vshll.u32 %v7027_v19, 16  ;;  %v4213_v42 = vrot.slane %v7060_v14, 1 }
 0x158   : > { %v2671_v11 = vsel %vm8253_vm9, %v2669_v13, %v8252_v28  ;;  %v4214_v58 = vrot.slane %v7027_v19, 1  ;;  %v4391_v33 = vrot.slane %v7060_v14, 2  ;;  %v4392_v62 = vrot.slane %v7027_v19, 2  ;;  %3282 = vrot.lane.b32.xlu0 %v7132_v45, %s6337_s21 }
 0x159   : > { %v4299_v12 = vrot.slane %v4118_v26, 1  ;;  %vm8254_vm4 = vcmask 31744   ;;  %v4122_v34 = vrot.slane %v4120_v31, 1  ;;  %v4127_v3 = vrot.slane %v4125_v50, 1 }
 0x15a   : > { %5519 = vmatmul.mubr.msk.bf16.gmra.mrb[32].mxu1 %vm8254_vm4, %v7121_v17  ;;  %v4300_v27 = vrot.slane %v4120_v31, 2  ;;  %v4302_v36 = vshrl.u32 %v7027_v19, 16  ;;  %vm8255_vm11 = vmmov %vm8254_vm4  ;;  %vm8256_vm9 = vcmask 1046528   ;;  %vm8257_vm3 = vcmask 1045504   ;;  %2377 = vrot.lane.b32.xlu1 %v6880_v63, %s6337_s21 }
 0x15b   : > { %5524 = vmatprep.mubr.msk.bf16.mxu1 %vm8255_vm11, %v6964_v20  ;;  %v4215_v7 = vsel %vm8256_vm9, %v4213_v42, %v4214_v58  ;;  %v4393_v30 = vsel %vm8257_vm3, %v4391_v33, %v4392_v62  ;;  %v4305_v52 = vrot.slane %v4125_v50, 2  ;;  %v4123_v59 = vor.u32 %v4122_v34, %v4118_v26  ;;  %vm8260_vm9 = vmmov %vm8255_vm11  ;;  %v5179_v50 = vld [vmem:[%s8107_s4 + $0x14] sm:$0x3] }
 0x15c   : > { %v4301_v4 = vor.u32 %v4300_v27, %v4299_v12  ;;  %v4304_v13 = vrot.slane %v4302_v36, 1  ;;  %vm8258_vm0 = vsmask.f32 7424  ;;  %3448 = vrot.lane.b32.xlu0 %v7140_v39, %s6337_s21  ;;  %vm8259_vm4 = vcmask 1041408   ;;  %v5184_v27 = vld [vmem:[%s8107_s4 + $0x16] sm:$0x3] }
 0x15d   : > { %v4128_v15 = vsel %vm8258_vm0, %v4123_v59, %v4127_v3  ;;  %v1767_v20 = vsel %vm8259_vm4, %v5104_v51, 0  ;;  %vm8261_vm3 = vmmov %vm8259_vm4 }
 0x15e   : > { %v4306_v19 = vor.u32 %v4305_v52, %v4304_v13  ;;  %3199 = vrot.lane.b32.xlu1 %v6980_v56, %s6337_s21  ;;  %vm8263_vm0 = vmmov %vm8260_vm9  ;;  %v5114_v56 = vld [vmem:[%s8106_s3 + $0xc] sm:$0x3] }
 0x15f   : > { %vm8264_vm4 = vmmov %vm8261_vm3 }
 0x160   : > { %v4307_v9 = vsel %vm1536_vm12, %v4301_v4, %v4306_v19  ;;  %3617 = vrot.lane.b32.xlu0 %v7025_v25, %s6337_s21  ;;  %vm8262_vm12 = vmmov %vm8260_vm9  ;;  %v1857_v63 = vsel %vm8264_vm4, %v5109_v43, 0  ;;  %v5124_v25 = vld [vmem:[%s8106_s3 + $0x10] sm:$0x3]  ;;  %v5139_v4 = vld [vmem:[%s8107_s4 + $0x4] sm:$0x3] }
 0x161   : > { %vm8268_vm4 = vmmov %vm8261_vm3  ;;  %v5189_v19 = vld [vmem:[%s8107_s4 + $0x18] sm:$0x3] }
 0x162   : > { %5525 = vmatmul.mubr.msk.bf16.vlgmr.msra.gmra.mrb[28].mxu1 %vm8255_vm11, %v7030_v32  ;;  %3365 = vrot.lane.b32.xlu1 %v7135_v35, %s6337_s21  ;;  %vm8265_vm11 = vmmov %vm8263_vm0 }
 0x163   : > { %5528 = vmatprep.mubr.msk.bf16.mxu1 %vm8260_vm9, %v7063_v41  ;;  %5533 = vmatpush3.bf16.msra.mxu1 %v1767_v20  ;;  %vm8266_vm9 = vmmov %vm8263_vm0 }
 0x164   : > { %6105 = vmatprep.subr.msk.bf16.mxu1 %vm8261_vm3, %v5109_v43  ;;  %3783 = vrot.lane.b32.xlu0 %v7143_v6, %s6337_s21 }
 0x166   : > { %3534 = vrot.lane.b32.xlu1 %v7146_v48, %s6337_s21  ;;  %v5169_v48 = vld [vmem:[%s8107_s4 + $0x10] sm:$0x3] }
 0x168   : > { %3866 = vrot.lane.b32.xlu0 %v7193_v10, %s6337_s21 }
 0x16a   : > { %5529 = vmatmul.mubr.msk.bf16.gmra.mrb[32].mxu1 %vm8262_vm12, %v7132_v45  ;;  %3700 = vrot.lane.b32.xlu1 %v7174_v55, %s6337_s21  ;;  %vm8267_vm12 = vmmov %vm8263_vm0 }
 0x16b   : > { %5534 = vmatprep.mubr.msk.bf16.mxu1 %vm8263_vm0, %v6867_v21 }
 0x16c   : > { %2373 = vrot.lane.b32.xlu0 %v6769_v47, %s6337_s21  ;;  %v1950_v47 = vsel %vm8268_vm4, %v5114_v56, 0  ;;  %vm8272_vm4 = vmmov %vm8261_vm3 }
 0x16e   : > { %2282 = vrot.lane.b32.xlu1 %v2279_v23, %s6337_s21 }
 0x170   : > { %2465 = vrot.lane.b32.xlu0 %v7168_v2, %s6337_s21 }
 0x172   : > { %5535 = vmatmul.mubr.msk.bf16.vlgmr.msra.gmra.mrb[28].mxu1 %vm8265_vm11, %v6971_v16  ;;  %2371 = vrot.lane.b32.xlu1 %v6742_v57, %s6337_s21  ;;  %v5119_v57 = vld [vmem:[%s8106_s3 + $0xe] sm:$0x3]  ;;  %vm8269_vm11 = vmmov %vm8263_vm0 }
 0x173   : > { %5538 = vmatprep.mubr.msk.bf16.mxu1 %vm8266_vm9, %v7005_v54  ;;  %5543 = vmatpush3.bf16.msra.mxu1 %v1857_v63  ;;  %vm8270_vm9 = vmmov %vm8263_vm0  ;;  %v2036_v21 = vsel %vm8272_vm4, %v5119_v57, 0 }
 0x174   : > { %6106 = vmatprep.subr.msk.bf16.mxu1 %vm8261_vm3, %v5114_v56  ;;  %2572 = vrot.lane.b32.xlu0 %v2569_v24, %s6337_s21  ;;  %vm8276_vm4 = vmmov %vm8261_vm3  ;;  %v5144_v56 = vld [vmem:[%s8107_s4 + $0x6] sm:$0x3] }
 0x176   : > { %3952 = vrot.lane.b32.xlu1 %v3949_v8, %s6337_s21 }
 0x178   : > { %2683 = vrot.lane.b32.xlu0 %v2671_v11, %s6337_s21 }
 0x17a   : > { %5539 = vmatmul.mubr.msk.bf16.gmra.mrb[32].mxu1 %vm8267_vm12, %v7135_v35  ;;  %4036 = vrot.lane.b32.xlu1 %v7060_v14, %s6337_s21  ;;  %vm8271_vm12 = vmmov %vm8263_vm0  ;;  %v7311_v14 = vld [vmem:[%s8110_s7] ss:$0 sm:$0xff] }
 0x17b   : > { %5544 = vmatprep.mubr.msk.bf16.mxu1 %vm8263_vm0, %v7102_v60  ;;  %v5130_v60 = vld [vmem:[%s8107_s4 + $0x2] sm:$0x3] }
 0x17c   : > { %4310 = vrot.lane.b32.xlu0 %v4307_v9, %s6337_s21 }
 0x17e   : > { %4131 = vrot.lane.b32.xlu1 %v4128_v15, %s6337_s21 }
 0x180   : > { %2207 = vrot.lane.b32.xlu0 %v7311_v14, %s6337_s21 }
 0x182   : > { %5545 = vmatmul.mubr.msk.bf16.vlgmr.msra.gmra.mrb[28].mxu1 %vm8269_vm11, %v7091_v29  ;;  %4218 = vrot.lane.b32.xlu1 %v4215_v7, %s6337_s21  ;;  %vm8273_vm11 = vmmov %vm8263_vm0 }
 0x183   : > { %5548 = vmatprep.mubr.msk.bf16.mxu1 %vm8270_vm9, %v7121_v17  ;;  %5553 = vmatpush3.bf16.msra.mxu1 %v1950_v47  ;;  %vm8274_vm9 = vmmov %vm8263_vm0 }
 0x184   : > { %6107 = vmatprep.subr.msk.bf16.mxu1 %vm8261_vm3, %v5119_v57  ;;  %v5194_v57 = vld [vmem:[%s8107_s4 + $0x1a] sm:$0x3]  ;;  %4818 = vrot.lane.b32.xlu0 %v7311_v14, %s6339_s14  ;;  %s5268_s14 = sshll.u32 %s6318_s30, 3 }
 0x185   : > { %s4964_s24 = sadd.s32 %s5268_s14, %s5263_s20  ;;  %s6343_s20 = smov [#allocation2]  }
 0x186   : > { %4396 = vrot.lane.b32.xlu1 %v4393_v30, %s6337_s21  ;;  %s5264_s21 = sshll.u32 %s4964_s24, 7  ;;  %s6244_s24 = sshll.u32 %s6343_s20, 4  ;;  %s6245_s24 = int_to_ptr.vmem [resolvable:$false] %s6244_s24 }
 0x187   : > { %s6246_s0 = scalar_lea.vmem %s6245_s24, 2048 }
 0x18a   : > { %5549 = vmatmul.mubr.msk.bf16.gmra.mrb[32].mxu1 %vm8271_vm12, %v7140_v39  ;;  %vm8275_vm12 = vmmov %vm8263_vm0  ;;  %4483 = vrot.lane.b32.xlu1 %v7311_v14, %s6338_s25  ;;  %s4967_s25 = sshll.u32 %s7510_s17, 4  ;;  %s8038_s25 = int_to_ptr.vmem [resolvable:$true] %s4967_s25 }
 0x18b   : > { %5554 = vmatprep.mubr.msk.bf16.mxu1 %vm8263_vm0, %v7030_v32  ;;  %v2126_v32 = vsel %vm8276_vm4, %v5124_v25, 0  ;;  %s6240_s14 = scalar_lea.vmem %s8038_s25, 1024  ;;  %p6247_p2 = scmp.lt.s32.totalorder %s8038_s25, %s6245_s24 }
 0x18c   : > { %p6241_p13 = scmp.ne.s32.totalorder %s8038_s25, %s6240_s14  ;;  %p6248_p4 = scmp.lt.s32.totalorder %s6246_s0, %s6240_s14 }
 0x18e   : > { %p6242_p0 = pnand %p6241_p13, %p6442_p3  ;;  %p6249_p5 = por %p6248_p4, %p6247_p2 }
 0x190   : > { %p6243_p1 = pneg %p6242_p0 }
 0x192   : > { %5555 = vmatmul.mubr.msk.bf16.vlgmr.msra.gmra.mrb[28].mxu1 %vm8273_vm11, %v7063_v41  ;;  %vm8277_vm11 = vmmov %vm8263_vm0  ;;  %p6250_p6 = pnand %p6249_p5, %p6243_p1 }
 0x193   : > { %5558 = vmatprep.mubr.msk.bf16.mxu1 %vm8274_vm9, %v7132_v45  ;;  %5563 = vmatpush3.bf16.msra.mxu1 %v2036_v21  ;;  %vm8278_vm9 = vmmov %vm8263_vm0  ;;  %v5486_v21 = vpop.f32.mrb[20].mxu1 }
 0x194   : > { %6108 = vmatprep.subr.msk.bf16.mxu1 %vm8261_vm3, %v5124_v25  ;;  %vm8279_vm3 = vmmov %vm8263_vm0 }
 0x198   : > { %v7320_v41 = vpop.permute.xlu0 %2284 }
 0x199   : > { %5644 = vmatprep.mubr.msk.bf16.mxu0 %vm8278_vm9, %v7320_v41  ;;  %vm8284_vm9 = vmmov %vm8279_vm3 }
 0x19a   : > { %5559 = vmatmul.mubr.msk.bf16.gmra.mrb[32].mxu1 %vm8275_vm12, %v7174_v55  ;;  %vm8280_vm12 = vmmov %vm8276_vm4  ;;  %v2267_v55 = vld [vmem:[%s8107_s4] sm:$0x3] }
 0x19b   : > { %5564 = vmatprep.mubr.msk.bf16.mxu1 %vm8263_vm0, %v6971_v16  ;;  %vm8281_vm0 = vmmov %vm8276_vm4 }
 0x19c   : > { %v2953_v16 = vsel %vm8281_vm0, %v7182_v40, 0  ;;  %vm8282_vm4 = vmmov %vm8279_vm3  ;;  %v2303_v2 = vsel %vm8281_vm0, %v5130_v60, 0 }
 0x19f   : > { %v7334_v45 = vpop.permute.xlu0 %2286 }
 0x1a0   : > { %5645 = vmatmul.mubr.msk.bf16.vlgmr.msra.gmra.mrb[0].mxu0 %vm8282_vm4, %v7334_v45  ;;  %vm8286_vm4 = vmmov %vm8279_vm3 }
 0x1a1   : > { %5653 = vmatpush3.bf16.msra.mxu0 %v2953_v16 }
 0x1a2   : > { %5565 = vmatmul.mubr.msk.bf16.vlgmr.msra.gmra.mrb[28].mxu1 %vm8277_vm11, %v7005_v54  ;;  %vm8283_vm11 = vmmov %vm8281_vm0 }
 0x1a3   : > { %5568 = vmatprep.mubr.msk.bf16.mxu1 %vm8279_vm3, %v7135_v35  ;;  %5573 = vmatpush3.bf16.msra.mxu1 %v2126_v32  ;;  %v7342_v54 = vpop.permute.xlu0 %2467  ;;  %v1265_v32 = vadd.f32 %v5486_v21, %v7311_v14 }
 0x1a4   : > { %6109 = vmatprep.subr.msk.bf16.mxu1 %vm8280_vm12, %v5130_v60  ;;  %6117 = vmatprep.subr.msk.bf16.mxu0 %vm8283_vm11, %v5169_v48  ;;  %vm8285_vm12 = vmmov %vm8279_vm3 }
 0x1a5   : > { %vm8287_vm11 = vmmov %vm8279_vm3 }
 0x1a7   : > { %v7352_v51 = vpop.permute.xlu0 %2471 }
 0x1aa   : > { %5569 = vmatmul.mubr.msk.bf16.gmra.mrb[32].mxu1 %vm8284_vm9, %v7143_v6  ;;  %v7348_v35 = vpop.permute.xlu1 %2288  ;;  %vm8288_vm9 = vmmov %vm8279_vm3 }
 0x1ab   : > { %5574 = vmatprep.mubr.msk.bf16.mxu1 %vm8279_vm3, %v7091_v29  ;;  %5648 = vmatprep.mubr.msk.bf16.mxu0 %vm8285_vm12, %v7348_v35  ;;  %vm8289_vm3 = vmmov %vm8281_vm0 }
 0x1ac   : > { %vm8290_vm12 = vmmov %vm8286_vm4 }
 0x1ae   : > { %v7360_v6 = vpop.permute.xlu1 %2864 }
 0x1af   : > { %5649 = vmatmul.mubr.msk.bf16.gmra.mrb[4].mxu0 %vm8288_vm9, %v7360_v6  ;;  %vm8292_vm9 = vmmov %vm8286_vm4 }
 0x1b0   : > { %5654 = vmatprep.mubr.msk.bf16.mxu0 %vm8290_vm12, %v7342_v54  ;;  %vm8294_vm12 = vmmov %vm8286_vm4 }
 0x1b2   : > { %5575 = vmatmul.mubr.msk.bf16.vlgmr.msra.gmra.mrb[28].mxu1 %vm8286_vm4, %v7121_v17  ;;  %v7369_v29 = vpop.permute.xlu0 %2574  ;;  %v7371_v40 = vpop.permute.xlu1 %2469  ;;  %v3036_v17 = vsel %vm8281_vm0, %v5169_v48, 0 }
 0x1b3   : > { %5578 = vmatprep.mubr.msk.bf16.mxu1 %vm8287_vm11, %v7140_v39  ;;  %5583 = vmatpush3.bf16.msra.mxu1 %v2303_v2  ;;  %vm8291_vm11 = vmmov %vm8286_vm4 }
 0x1b4   : > { %6110 = vmatprep.subr.msk.bf16.mxu1 %vm8289_vm3, %v2267_v55  ;;  %vm8293_vm3 = vmmov %vm8281_vm0 }
 0x1b5   : > { %vm8295_vm0 = vmmov %vm8286_vm4 }
 0x1b6   : > { %v7373_v5 = vpop.permute.xlu0 %2578  ;;  %v7378_v39 = vpop.permute.xlu1 %2947 }
 0x1b7   : > { %5655 = vmatmul.mubr.msk.bf16.vlgmr.msra.gmra.mrb[0].mxu0 %vm8291_vm11, %v7371_v40  ;;  %vm8297_vm11 = vmmov %vm8295_vm0 }
 0x1b8   : > { %5663 = vmatpush3.bf16.msra.mxu0 %v3036_v17  ;;  %5658 = vmatprep.mubr.msk.bf16.mxu0 %vm8292_vm9, %v7352_v51  ;;  %vm8298_vm9 = vmmov %vm8295_vm0 }
 0x1b9   : > { %6118 = vmatprep.subr.msk.bf16.mxu0 %vm8293_vm3, %v5174_v61 }
 0x1ba   : > { %5579 = vmatmul.mubr.msk.bf16.gmra.mrb[32].mxu1 %vm8286_vm4, %v7193_v10  ;;  %v7388_v8 = vpop.permute.xlu0 %2685  ;;  %vm8296_vm4 = vmmov %vm8293_vm3 }
 0x1bb   : > { %v7390_v28 = vpop.permute.xlu1 %2576  ;;  %v3122_v24 = vsel %vm8296_vm4, %v5174_v61, 0  ;;  %vm8300_vm4 = vmmov %vm8293_vm3 }
 0x1bc   : > { %v3205_v34 = vsel %vm8300_vm4, %v5179_v50, 0  ;;  %vm8304_vm4 = vmmov %vm8295_vm0 }
 0x1be   : > { %v7396_v11 = vpop.permute.xlu0 %2689 }
 0x1bf   : > { %v7392_v10 = vpop.permute.xlu1 %3030  ;;  %5659 = vmatmul.mubr.msk.bf16.gmra.mrb[4].mxu0 %vm8294_vm12, %v7378_v39  ;;  %vm8299_vm12 = vmmov %vm8295_vm0 }
 0x1c0   : > { %5664 = vmatprep.mubr.msk.bf16.mxu0 %vm8295_vm0, %v7369_v29 }
 0x1c2   : > { %v7403_v26 = vpop.permute.xlu0 %2375 }
 0x1c4   : > { %v7400_v23 = vpop.permute.xlu1 %2687 }
 0x1c6   : > { %v7417_v58 = vpop.permute.xlu0 %2781 }
 0x1c7   : > { %5665 = vmatmul.mubr.msk.bf16.vlgmr.msra.gmra.mrb[0].mxu0 %vm8297_vm11, %v7390_v28  ;;  %vm8301_vm11 = vmmov %vm8295_vm0 }
 0x1c8   : > { %v7405_v31 = vpop.permute.xlu1 %3116  ;;  %5673 = vmatpush3.bf16.msra.mxu0 %v3122_v24  ;;  %5668 = vmatprep.mubr.msk.bf16.mxu0 %vm8298_vm9, %v7373_v5  ;;  %vm8302_vm9 = vmmov %vm8295_vm0 }
 0x1c9   : > { %6119 = vmatprep.subr.msk.bf16.mxu0 %vm8293_vm3, %v5179_v50 }
 0x1ca   : > { %v7425_v62 = vpop.permute.xlu0 %3282 }
 0x1cc   : > { %v7415_v42 = vpop.permute.xlu1 %2377 }
 0x1ce   : > { %v7437_v36 = vpop.permute.xlu0 %3448 }
 0x1cf   : > { %5669 = vmatmul.mubr.msk.bf16.gmra.mrb[4].mxu0 %vm8299_vm12, %v7392_v10  ;;  %vm8303_vm12 = vmmov %vm8293_vm3 }
 0x1d0   : > { %v7419_v33 = vpop.permute.xlu1 %3199  ;;  %5674 = vmatprep.mubr.msk.bf16.mxu0 %vm8295_vm0, %v7388_v8  ;;  %v2392_v59 = vsel %vm8303_vm12, %v2267_v55, 0 }
 0x1d2   : > { %v7444_v30 = vpop.permute.xlu0 %3617 }
 0x1d4   : > { %v7427_v12 = vpop.permute.xlu1 %3365 }
 0x1d6   : > { %v7460_v13 = vpop.permute.xlu0 %3783 }
 0x1d7   : > { %5675 = vmatmul.mubr.msk.bf16.vlgmr.msra.gmra.mrb[0].mxu0 %vm8301_vm11, %v7400_v23  ;;  %vm8305_vm11 = vmmov %vm8295_vm0 }
 0x1d8   : > { %v7430_v3 = vpop.permute.xlu1 %3534  ;;  %5683 = vmatpush3.bf16.msra.mxu0 %v3205_v34  ;;  %5678 = vmatprep.mubr.msk.bf16.mxu0 %vm8302_vm9, %v7396_v11  ;;  %vm8306_vm9 = vmmov %vm8295_vm0 }
 0x1d9   : > { %6120 = vmatprep.subr.msk.bf16.mxu0 %vm8293_vm3, %v5184_v27  ;;  %vm8307_vm3 = vmmov %vm8295_vm0 }
 0x1da   : > { %v7473_v9 = vpop.permute.xlu0 %3866 }
 0x1dc   : > { %v7442_v7 = vpop.permute.xlu1 %3700 }
 0x1de   : > { %v7479_v63 = vpop.permute.xlu0 %2373 }
 0x1df   : > { %5679 = vmatmul.mubr.msk.bf16.gmra.mrb[4].mxu0 %vm8304_vm4, %v7405_v31  ;;  %vm8309_vm4 = vmmov %vm8307_vm3 }
 0x1e0   : > { %v2283_v52 = vpop.permute.xlu1 %2282  ;;  %5684 = vmatprep.mubr.msk.bf16.mxu0 %vm8305_vm11, %v7403_v26  ;;  %vm8310_vm11 = vmmov %vm8307_vm3 }
 0x1e1   : > { %5584 = vmatprep.mubr.msk.bf16.mxu1 %vm8295_vm0, %v2283_v52  ;;  %vm8308_vm0 = vmmov %vm8303_vm12 }
 0x1e2   : > { %5585 = vmatmul.mubr.msk.bf16.vlgmr.msra.gmra.mrb[36].mxu1 %vm8306_vm9, %v7320_v41  ;;  %v3288_v15 = vsel %vm8308_vm0, %v5184_v27, 0  ;;  %vm8311_vm9 = vmmov %vm8307_vm3  ;;  %v2466_v25 = vpop.permute.xlu0 %2465  ;;  %v1256_v41 = vpop.f32.mrb[21].mxu1 }
 0x1e3   : > { %5588 = vmatprep.mubr.msk.bf16.mxu1 %vm8307_vm3, %v7334_v45  ;;  %5593 = vmatpush3.bf16.msra.mxu1 %v2392_v59  ;;  %vm8312_vm3 = vmmov %vm8308_vm0  ;;  %v1257_v60 = vadd.f32 %v7311_v14, %v1256_v41  ;;  %v5487_v16 = vpop.f32.mrb[22].mxu1  ;;  %v6217_v41 = vld [vmem:[%s6478_s22 + $0xc] sm:$0xf] }
 0x1e4   : > { %6111 = vmatprep.subr.msk.bf16.mxu1 %vm8303_vm12, %v5139_v4  ;;  %v2372_v20 = vpop.permute.xlu1 %2371  ;;  %vm8313_vm12 = vmmov %vm8309_vm4  ;;  %v1268_v48 = vadd.f32 %v5487_v16, %v7311_v14  ;;  %v1259_v2 = vpop.f32.mrb[23].mxu1 }
 0x1e5   : > { %vm8314_vm0 = vmmov %vm8309_vm4  ;;  %v1287_v55 = vmax.f32 %v1257_v60, 0.0  ;;  %v1260_v17 = vadd.f32 %v7311_v14, %v1259_v2  ;;  %v5490_v61 = vpop.f32.mrb[24].mxu1  ;;  %v4543_v60 = vunpack.c.l.bf16 %v6217_v41  ;;  %v4552_v41 = vunpack.c.l.bf16 %v6225_v49 }
 0x1e6   : > { %vm8315_vm1 = vmmov %vm8312_vm3  ;;  %v1290_v24 = vmax.f32 %v1268_v48, 0.0  ;;  %v1281_v50 = vadd.f32 %v5490_v61, %v7311_v14  ;;  %v1272_v59 = vpop.f32.mrb[25].mxu1  ;;  %v2573_v48 = vpop.permute.xlu0 %2572 }
 0x1e7   : > { %5685 = vmatmul.mubr.msk.bf16.vlgmr.msra.gmra.mrb[0].mxu0 %vm8309_vm4, %v7415_v42  ;;  %v2486_v43 = vsel %vm8315_vm1, %v5139_v4, 0  ;;  %vm8316_vm4 = vmmov %vm8314_vm0  ;;  %v3371_v47 = vsel %vm8315_vm1, %v5189_v19, 0  ;;  %v1288_v34 = vmax.f32 %v1260_v17, 0.0  ;;  %v5149_v4 = vld [vmem:[%s8107_s4 + $0x8] sm:$0x3] }
 0x1e8   : > { %5693 = vmatpush3.bf16.msra.mxu0 %v3288_v15  ;;  %5688 = vmatprep.mubr.msk.bf16.mxu0 %vm8310_vm11, %v7417_v58  ;;  %vm8317_vm11 = vmmov %vm8314_vm0  ;;  %v1293_v52 = vmax.f32 %v1281_v50, 0.0  ;;  %v1273_v15 = vadd.f32 %v7311_v14, %v1272_v59  ;;  %v6219_v17 = vld [vmem:[%s6478_s22 + $0x1c] sm:$0xf]  ;;  %v6221_v50 = vld [vmem:[%s6478_s22 + $0x18] sm:$0xf] }
 0x1e9   : > { %6121 = vmatprep.subr.msk.bf16.mxu0 %vm8312_vm3, %v5189_v19  ;;  %vm8319_vm3 = vmmov %vm8315_vm1  ;;  %v5491_v19 = vpop.f32.mrb[26].mxu1  ;;  %v4547_v61 = vunpack.c.l.bf16 %v6219_v17 }
 0x1ea   : > { %5589 = vmatmul.mubr.msk.bf16.gmra.mrb[40].mxu1 %vm8311_vm9, %v7348_v35  ;;  %vm8318_vm9 = vmmov %vm8314_vm0 }
 0x1eb   : > { %5594 = vmatprep.mubr.msk.bf16.mxu1 %vm8313_vm12, %v2372_v20  ;;  %vm8320_vm12 = vmmov %vm8314_vm0  ;;  %v1284_v20 = vadd.f32 %v5491_v19, %v7311_v14 }
 0x1ed   : > { %v1294_v21 = vmax.f32 %v1284_v20, 0.0  ;;  %v7590_v20 = vld [vmem:[%s8107_s4 + $0xa] sm:$0x3] }
 0x1ef   : > { %5689 = vmatmul.mubr.msk.bf16.gmra.mrb[4].mxu0 %vm8314_vm0, %v7419_v33 }
 0x1f0   : > { %5694 = vmatprep.mubr.msk.bf16.mxu0 %vm8316_vm4, %v7334_v45  ;;  %vm8321_vm4 = vmmov %vm8314_vm0  ;;  %v1289_v45 = vmax.f32 %v1265_v32, 0.0 }
 0x1f2   : > { %5595 = vmatmul.mubr.msk.bf16.vlgmr.msra.gmra.mrb[36].mxu1 %vm8317_vm11, %v7479_v63  ;;  %vm8322_vm11 = vmmov %vm8315_vm1 }
 0x1f3   : > { %5598 = vmatprep.mubr.msk.bf16.mxu1 %vm8318_vm9, %v7403_v26  ;;  %5603 = vmatpush3.bf16.msra.mxu1 %v2486_v43  ;;  %vm8323_vm9 = vmmov %vm8314_vm0  ;;  %v1275_v43 = vpop.f32.mrb[27].mxu1 }
 0x1f4   : > { %6112 = vmatprep.subr.msk.bf16.mxu1 %vm8319_vm3, %v5144_v56  ;;  %vm8324_vm3 = vmmov %vm8314_vm0 }
 0x1f5   : > { %1297 = vst.msk [vmem:[%s7510_s17 + $0x10] sm:$0xff] %vm8324_vm3, %v1289_v45  ;;  %vm8325_vm1 = vmmov %vm8314_vm0 }
 0x1f6   : > { %1295 = vst.msk [vmem:[%s7510_s17] sm:$0xff] %vm8325_vm1, %v1287_v55  ;;  %vm8331_vm3 = vmmov %vm8325_vm1  ;;  %v6218_v55 = vld [vmem:[%s6478_s22 + $0x14] sm:$0x3] }
 0x1f7   : > { %5695 = vmatmul.mubr.msk.bf16.vlgmr.msra.gmra.mrb[0].mxu0 %vm8320_vm12, %v7348_v35  ;;  %vm8326_vm12 = vmmov %vm8314_vm0  ;;  %1301 = vst.msk [vmem:[%s7510_s17 + $0x30] sm:$0xff] %vm8325_vm1, %v1293_v52  ;;  %v4545_v0 = vunpack.c.l.bf16 %v6218_v55 }
 0x1f8   : > { %5703 = vmatpush3.bf16.msra.mxu0 %v3371_v47  ;;  %5698 = vmatprep.mubr.msk.bf16.mxu0 %vm8314_vm0, %v7360_v6  ;;  %vm8327_vm0 = vmmov %vm8322_vm11  ;;  %v1276_v47 = vadd.f32 %v7311_v14, %v1275_v43 }
 0x1f9   : > { %6122 = vmatprep.subr.msk.bf16.mxu0 %vm8322_vm11, %v5194_v57  ;;  %v2593_v27 = vsel %vm8327_vm0, %v5144_v56, 0  ;;  %vm8329_vm11 = vmmov %vm8325_vm1  ;;  %v1291_v56 = vmax.f32 %v1273_v15, 0.0  ;;  %v7583_v19 = vsel %vm6748_vm7, %v4545_v0, -inf }
 0x1fa   : > { %5599 = vmatmul.mubr.msk.bf16.gmra.mrb[40].mxu1 %vm8321_vm4, %v7415_v42  ;;  %vm8328_vm4 = vmmov %vm8325_vm1  ;;  %v4601_v38 = vrot.slane %v7583_v19, 1 }
 0x1fb   : > { %5604 = vmatprep.mubr.msk.bf16.mxu1 %vm8323_vm9, %v2466_v25  ;;  %1298 = vst.msk [vmem:[%s7510_s17 + $0x18] sm:$0xff] %vm8328_vm4, %v1290_v24  ;;  %vm8330_vm9 = vmmov %vm8325_vm1  ;;  %v6216_v25 = vld [vmem:[%s6478_s22 + $0x10] sm:$0xf]  ;;  %v4548_v24 = vunpack.c.l.bf16 %v6220_v46 }
 0x1fc   : > { %1296 = vst.msk [vmem:[%s7510_s17 + $0x8] sm:$0xff] %vm8330_vm9, %v1288_v34  ;;  %vm8333_vm4 = vmmov %vm8325_vm1  ;;  %v4544_v32 = vunpack.c.l.bf16 %v6216_v25  ;;  %v4546_v34 = vunpack.c.l.bf16 %v6221_v50 }
 0x1fd   : > { %1299 = vst.msk [vmem:[%s7510_s17 + $0x20] sm:$0xff] %vm8333_vm4, %v1291_v56  ;;  %vm8335_vm9 = vmmov %vm8325_vm1  ;;  %v4566_v43 = vsel %vm6735_vm13, %v4548_v24, -inf  ;;  %v4549_v56 = vunpack.c.l.bf16 %v6222_v18  ;;  %vm8348_vm13 = vcmask 1045504   ;;  %v6227_v24 = vld [vmem:[%s6478_s22 + $0x38] sm:$0x3] }
 0x1fe   : > { %1302 = vst.msk [vmem:[%s7510_s17 + $0x38] sm:$0xff] %vm8335_vm9, %v1294_v21  ;;  %v7563_v45 = vsel %vm6659_vm14, %v4544_v32, -inf  ;;  %vm8343_vm9 = vcmask 1046528   ;;  %v7608_v32 = vsel %vm6777_vm15, %v4546_v34, -inf  ;;  %v4554_v50 = vunpack.c.l.bf16 %v6227_v24 }
 0x1ff   : > { %5699 = vmatmul.mubr.msk.bf16.gmra.mrb[4].mxu0 %vm8326_vm12, %v7425_v62  ;;  %vm8332_vm12 = vmmov %vm8325_vm1  ;;  %v4599_v2 = vrot.slane %v7563_v45, 1  ;;  %v4666_v15 = vrot.slane %v7563_v45, 2  ;;  %v7620_v53 = vsel %vm6823_vm6, %v4549_v56, -inf  ;;  %v4673_v34 = vrot.slane %v4566_v43, 2 }
 0x200   : > { %5704 = vmatprep.mubr.msk.bf16.mxu0 %vm8329_vm11, %v7371_v40  ;;  %vm8334_vm11 = vmmov %vm8327_vm0  ;;  %v4608_v18 = vrot.slane %v7620_v53, 1  ;;  %v7660_v56 = vmax.f32 %v7583_v19, %v4601_v38 }
 0x201   : > { %v3454_v16 = vsel %vm8334_vm11, %v5194_v57, 0  ;;  %v7559_v57 = vsel %vm6698_vm5, %v4543_v60, -inf  ;;  %vm8339_vm4 = vmmov %vm8334_vm11  ;;  %v6226_v60 = vld [vmem:[%s6478_s22 + $0x34] sm:$0xf] }
 0x202   : > { %5605 = vmatmul.mubr.msk.bf16.vlgmr.msra.gmra.mrb[36].mxu1 %vm8331_vm3, %v7342_v54  ;;  %v1292_v54 = vmax.f32 %v1276_v47, 0.0  ;;  %vm8336_vm3 = vmmov %vm8325_vm1  ;;  %v4598_v14 = vrot.slane %v7559_v57, 1  ;;  %v4665_v59 = vrot.slane %v7559_v57, 2  ;;  %v6223_v47 = vld [vmem:[%s6478_s22 + $0x28] sm:$0xf] }
 0x203   : > { %5608 = vmatprep.mubr.msk.bf16.mxu1 %vm8332_vm12, %v7371_v40  ;;  %5613 = vmatpush3.bf16.msra.mxu1 %v2593_v27  ;;  %v5199_v40 = vld [vmem:[%s8107_s4 + $0x1c] sm:$0x3]  ;;  %vm8337_vm12 = vmmov %vm8325_vm1  ;;  %v4550_v21 = vunpack.c.l.bf16 %v6223_v47  ;;  %v4670_v47 = vrot.slane %v7608_v32, 2 }
 0x204   : > { %6113 = vmatprep.subr.msk.bf16.mxu1 %vm8327_vm0, %v5149_v4  ;;  %1300 = vst.msk [vmem:[%s7510_s17 + $0x28] sm:$0xff] %vm8336_vm3, %v1292_v54  ;;  %vm8338_vm0 = vmmov %vm8325_vm1  ;;  %v4600_v52 = vsel %vm8343_vm9, %v4598_v14, %v4599_v2  ;;  %v6224_v54 = vld [vmem:[%s6478_s22 + $0x2c] sm:$0x3]  ;;  %v4606_v14 = vrot.slane %v4566_v43, 1 }
 0x205   : > { %vm8340_vm11 = vmmov %vm8338_vm0  ;;  %v4551_v25 = vunpack.c.l.bf16 %v6224_v54  ;;  %v7624_v0 = vsel %vm6787_vm2, %v4550_v21, -inf  ;;  %vm8352_vm2 = vnez %v8170_v22  ;;  %v2684_v54 = vpop.permute.xlu0 %2683 }
 0x206   : > { %vm8341_vm14 = vmmov %vm8338_vm0 }
 0x207   : > { %5705 = vmatmul.mubr.msk.bf16.vlgmr.msra.gmra.mrb[0].mxu0 %vm8325_vm1, %v7352_v51  ;;  %vm8342_vm5 = vmmov %vm8339_vm4 }
 0x208   : > { %5713 = vmatpush3.bf16.msra.mxu0 %v3454_v16  ;;  %5708 = vmatprep.mubr.msk.bf16.mxu0 %vm8337_vm12, %v7378_v39  ;;  %v2704_v27 = vsel %vm8342_vm5, %v5149_v4, 0  ;;  %vm8344_vm3 = vmmov %vm8338_vm0  ;;  %v7594_v4 = vsel %vm6711_vm10, %v4547_v61, -inf  ;;  %v4553_v16 = vunpack.c.l.bf16 %v6226_v60  ;;  %v4668_v61 = vrot.slane %v7583_v19, 2  ;;  %v8387_v19 = vld [vmem:[#allocation9_spill] sm:$0xff] }
 0x209   : > { %6123 = vmatprep.subr.msk.bf16.mxu0 %vm8339_vm4, %v5199_v40  ;;  %vm8345_vm7 = vmmov %vm8338_vm0  ;;  %v4671_v55 = vrot.slane %v7594_v4, 2  ;;  %vm8350_vm12 = vnez %v8173_v37 }
 0x20a   : > { %5609 = vmatmul.mubr.msk.bf16.gmra.mrb[40].mxu1 %vm8338_vm0, %v7352_v51  ;;  %vm8346_vm1 = vmmov %vm8338_vm0  ;;  %v7631_v46 = vsel %vm8350_vm12, %v4551_v25, -inf  ;;  %v7648_v37 = vsel %vm6797_vm8, %v4553_v16, -inf }
 0x20b   : > { %5614 = vmatprep.mubr.msk.bf16.mxu1 %vm8340_vm11, %v2573_v48  ;;  %vm8347_vm10 = vmmov %vm8339_vm4  ;;  %v4667_v48 = vsel %vm8348_vm13, %v4665_v59, %v4666_v15  ;;  %v4651_v59 = vmax.f32 %v4566_v43, %v4606_v14  ;;  %v4611_v21 = vrot.slane %v7631_v46, 1  ;;  %v4614_v49 = vrot.slane %v7648_v37, 1 }
 0x20c   : > { %vm8349_vm15 = vmmov %vm8339_vm4 }
 0x20d   : > { %v3540_v17 = vsel %vm8349_vm15, %v5199_v40, 0  ;;  %vm8351_vm6 = vmmov %vm8343_vm9  ;;  %v7644_v40 = vsel %vm8352_vm2, %v4552_v41, -inf  ;;  %v8359_v41 = vld [vmem:[#allocation7_spill] sm:$0xff] }
 0x20e   : > { %v7640_v1 = vsel %vm8351_vm6, %v4599_v2, %v4601_v38  ;;  %vm8354_vm4 = vmmov %vm8351_vm6  ;;  %v4609_v2 = vrot.slane %v7624_v0, 1  ;;  %v4613_v25 = vrot.slane %v7644_v40, 1  ;;  %vm8360_vm9 = vnez %v8359_v41  ;;  %v6230_v41 = vld [vmem:[%s6478_s22 + $0x44] sm:$0x3] }
 0x20f   : > { %5709 = vmatmul.mubr.msk.bf16.gmra.mrb[4].mxu0 %vm8341_vm14, %v7427_v12  ;;  %vm8355_vm11 = vmmov %vm8338_vm0  ;;  %v7673_v38 = vsel %vm8360_vm9, %v4554_v50, -inf  ;;  %v4647_v60 = vmax.f32 %v7563_v45, %v7640_v1 }
 0x210   : > { %5714 = vmatprep.mubr.msk.bf16.mxu0 %vm8344_vm3, %v7390_v28  ;;  %vm8356_vm8 = vmmov %vm8338_vm0  ;;  %v4616_v50 = vrot.slane %v7673_v38, 1 }
 0x211   : > { %vm8357_vm14 = vmmov %vm8342_vm5 }
 0x212   : > { %5615 = vmatmul.mubr.msk.bf16.vlgmr.msra.gmra.mrb[36].mxu1 %vm8345_vm7, %v7369_v29  ;;  %v4646_v29 = vmax.f32 %v7559_v57, %v4600_v52  ;;  %v4603_v57 = vrot.slane %v7608_v32, 1  ;;  %vm8358_vm5 = vmmov %vm8354_vm4 }
 0x213   : > { %5618 = vmatprep.mubr.msk.bf16.mxu1 %vm8346_vm1, %v7390_v28  ;;  %5623 = vmatpush3.bf16.msra.mxu1 %v2704_v27  ;;  %v4604_v28 = vrot.slane %v7594_v4, 1  ;;  %vm8361_vm3 = vmmov %vm8338_vm0  ;;  %v4681_v27 = vrot.slane %v7648_v37, 2 }
 0x214   : > { %6114 = vmatprep.subr.msk.bf16.mxu1 %vm8347_vm10, %v7590_v20  ;;  %v7657_v22 = vmax.f32 %v4646_v29, %v4667_v48  ;;  %vm8362_vm7 = vmmov %vm8348_vm13 }
 0x215   : > { %v4607_v52 = vsel %vm8354_vm4, %v4604_v28, %v4606_v14  ;;  %v4605_v43 = vsel %vm8358_vm5, %v4603_v57, %v4604_v28  ;;  %v4669_v16 = vsel %vm8362_vm7, %v4666_v15, %v4668_v61  ;;  %vm8363_vm1 = vmmov %vm8362_vm7  ;;  %v7683_v28 = vmax.f32 %v4651_v59, %v4673_v34  ;;  %v6228_v59 = vld [vmem:[%s6478_s22 + $0x40] sm:$0xf] }
 0x216   : > { %v4650_v29 = vmax.f32 %v7594_v4, %v4607_v52  ;;  %v4674_v48 = vsel %vm8363_vm1, %v4671_v55, %v4673_v34  ;;  %vm8364_vm10 = vmmov %vm8354_vm4  ;;  %v4676_v57 = vrot.slane %v7624_v0, 2  ;;  %v4649_v45 = vmax.f32 %v7608_v32, %v4605_v43  ;;  %v6229_v32 = vld [vmem:[%s6478_s22 + $0x3c] sm:$0xf] }
 0x217   : > { %5715 = vmatmul.mubr.msk.bf16.vlgmr.msra.gmra.mrb[0].mxu0 %vm8338_vm0, %v7373_v5  ;;  %v4610_v14 = vsel %vm8364_vm10, %v4608_v18, %v4609_v2  ;;  %vm8365_vm13 = vmmov %vm8354_vm4  ;;  %v4678_v15 = vrot.slane %v7631_v46, 2  ;;  %v4680_v34 = vrot.slane %v7644_v40, 2  ;;  %v4556_v18 = vunpack.c.l.bf16 %v6228_v59 }
 0x218   : > { %5723 = vmatpush3.bf16.msra.mxu0 %v3540_v17  ;;  %5718 = vmatprep.mubr.msk.bf16.mxu0 %vm8355_vm11, %v7392_v10  ;;  %v4675_v17 = vrot.slane %v7620_v53, 2  ;;  %v4612_v24 = vsel %vm8365_vm13, %v4609_v2, %v4611_v21  ;;  %vm8366_vm15 = vmmov %vm8363_vm1  ;;  %v4652_v52 = vmax.f32 %v7620_v53, %v4610_v14  ;;  %v4555_v2 = vunpack.c.l.bf16 %v6229_v32  ;;  %v8379_v32 = vld [vmem:[#allocation10_spill] sm:$0xff] }
 0x219   : > { %6124 = vmatprep.subr.msk.bf16.mxu0 %vm8357_vm14, %v7637_v44  ;;  %v4672_v4 = vsel %vm8366_vm15, %v4670_v47, %v4671_v55  ;;  %vm8367_vm12 = vmmov %vm8354_vm4  ;;  %v7703_v47 = vmax.f32 %v4650_v29, %v4674_v48  ;;  %v4653_v43 = vmax.f32 %v7624_v0, %v4612_v24  ;;  %v4557_v14 = vunpack.c.l.bf16 %v6230_v41  ;;  %v6231_v29 = vld [vmem:[%s6478_s22 + $0x4c] sm:$0xf] }
 0x21a   : > { %5619 = vmatmul.mubr.msk.bf16.gmra.mrb[40].mxu1 %vm8356_vm8, %v7373_v5  ;;  %v4615_v1 = vsel %vm8367_vm12, %v4613_v25, %v4614_v49  ;;  %vm8368_vm6 = vmmov %vm8338_vm0  ;;  %v4654_v25 = vmax.f32 %v7631_v46, %v4611_v21  ;;  %v4559_v0 = vunpack.c.l.bf16 %v6231_v29  ;;  %v7717_v48 = vmax.f32 %v4649_v45, %v4672_v4 }
 0x21b   : > { %5624 = vmatprep.mubr.msk.bf16.mxu1 %vm8361_vm3, %v2684_v54  ;;  %vm8369_vm2 = vmmov %vm8357_vm14  ;;  %v4655_v46 = vmax.f32 %v7644_v40, %v4615_v1  ;;  %vm8380_vm7 = vnez %v8379_v32  ;;  %vm8388_vm12 = vnez %v8387_v19 }
 0x21c   : > { %v2787_v55 = vsel %vm8369_vm2, %v7590_v20, 0  ;;  %vm8370_vm0 = vmmov %vm8363_vm1  ;;  %v4683_v20 = vrot.slane %v7673_v38, 2  ;;  %v7732_v45 = vsel %vm8380_vm7, %v4555_v2, -inf  ;;  %v7736_v40 = vmax.f32 %v4654_v25, %v4678_v15  ;;  %v7754_v25 = vld [vmem:[%s8107_s4 + $0x20] sm:$0x3] }
 0x21d   : > { %v4677_v54 = vsel %vm8370_vm0, %v4675_v17, %v4676_v57  ;;  %vm8371_vm4 = vmmov %vm8361_vm3  ;;  %v4714_v2 = vmax.f32 %v4647_v60, %v4669_v16  ;;  %v4685_v32 = vrot.slane %v7732_v45, 2 }
 0x21e   : > { %vm8372_vm11 = vmmov %vm8370_vm0  ;;  %v7723_v17 = vmax.f32 %v4652_v52, %v4677_v54  ;;  %v8381_v52 = vld [vmem:[#allocation8_spill] sm:$0xff]  ;;  %v4736_v29 = vmax.f32 %v7683_v28, %v7736_v40 }
 0x21f   : > { %5719 = vmatmul.mubr.msk.bf16.gmra.mrb[4].mxu0 %vm8368_vm6, %v7437_v36  ;;  %v4679_v53 = vsel %vm8372_vm11, %v4676_v57, %v4678_v15  ;;  %vm8373_vm8 = vmmov %vm8358_vm5  ;;  %vm8382_vm1 = vnez %v8381_v52  ;;  %v4715_v15 = vmax.f32 %v7660_v56, %v4668_v61  ;;  %v7766_v61 = vsel %vm8388_vm12, %v4559_v0, -inf }
 0x220   : > { %5724 = vmatprep.mubr.msk.bf16.mxu0 %vm8371_vm4, %v7400_v23  ;;  %v4617_v59 = vsel %vm8373_vm8, %v4614_v49, %v4616_v50  ;;  %vm8374_vm14 = vmmov %vm8361_vm3  ;;  %v8377_v49 = vld [vmem:[#allocation6_spill] sm:$0xff]  ;;  %v7734_v4 = vmax.f32 %v4653_v43, %v4679_v53  ;;  %v8390_v53 = vld [vmem:[#allocation12_spill] sm:$0xff] }
 0x221   : > { %vm8375_vm5 = vmmov %vm8370_vm0  ;;  %v4656_v1 = vmax.f32 %v7648_v37, %v4617_v59  ;;  %v4618_v37 = vrot.slane %v7732_v45, 1  ;;  %v4811_v59 = vld [vmem:[%s8108_s5] sm:$0x3] }
 0x222   : > { %5625 = vmatmul.mubr.msk.bf16.vlgmr.msra.gmra.mrb[36].mxu1 %vm8374_vm14, %v7388_v8  ;;  %v4682_v21 = vsel %vm8375_vm5, %v4680_v34, %v4681_v27  ;;  %vm8376_vm9 = vmmov %vm8361_vm3  ;;  %vm8378_vm3 = vnez %v8377_v49  ;;  %v6232_v8 = vld [vmem:[%s6478_s22 + $0x48] sm:$0xf]  ;;  %v4735_v56 = vmax.f32 %v7703_v47, %v7734_v4 }
 0x223   : > { %5628 = vmatprep.mubr.msk.bf16.mxu1 %vm8376_vm9, %v7400_v23  ;;  %5633 = vmatpush3.bf16.msra.mxu1 %v2787_v55  ;;  %v7727_v57 = vsel %vm8378_vm3, %v4556_v18, -inf  ;;  %v4558_v24 = vunpack.c.l.bf16 %v6232_v8  ;;  %v6233_v23 = vld [vmem:[%s6478_s22 + $0x50] sm:$0x3]  ;;  %v4575_v55 = vsel %vm8382_vm1, %v4557_v14, -inf  ;;  %v4657_v18 = vmax.f32 %v7673_v38, %v4616_v50  ;;  %vm8383_vm10 = vmmov %vm8370_vm0  ;;  %s6340_s22 = smov 4  }
 0x224   : > { %v4560_v34 = vunpack.c.l.bf16 %v6233_v23  ;;  %v4684_v54 = vsel %vm8383_vm10, %v4681_v27, %v4683_v20  ;;  %vm8384_vm13 = vmmov %vm8369_vm2  ;;  %v4619_v43 = vrot.slane %v7727_v57, 1  ;;  %v7756_v38 = vmax.f32 %v4655_v46, %v4682_v21 }
 0x225   : > { %v3623_v41 = vsel %vm8384_vm13, %v7637_v44, 0  ;;  %v4734_v50 = vmax.f32 %v7717_v48, %v7723_v17  ;;  %v8385_v44 = vld [vmem:[#allocation11_spill] sm:$0xff]  ;;  %vm8389_vm6 = vmmov %vm8371_vm4  ;;  %v4621_v16 = vrot.slane %v4575_v55, 1  ;;  %v7772_v27 = vmax.f32 %v4656_v1, %v4684_v54 }
 0x226   : > { %vm8386_vm15 = vnez %v8385_v44  ;;  %vm8391_vm2 = vnez %v8390_v53  ;;  %vm8392_vm0 = vmmov %vm8371_vm4  ;;  %v4686_v0 = vrot.slane %v7727_v57, 2  ;;  %v4688_v46 = vrot.slane %v4575_v55, 2 }
 0x227   : > { %v7762_v60 = vsel %vm8386_vm15, %v4558_v24, -inf  ;;  %5725 = vmatmul.mubr.msk.bf16.vlgmr.msra.gmra.mrb[0].mxu0 %vm8389_vm6, %v7396_v11  ;;  %v7776_v14 = vsel %vm8391_vm2, %v4560_v34, -inf  ;;  %v7786_v21 = vmax.f32 %v4657_v18, %v4683_v20  ;;  %vm8393_vm4 = vmmov %vm8392_vm0  ;;  %v4624_v8 = vrot.slane %v7766_v61, 1 }
 0x228   : > { %5733 = vmatpush3.bf16.msra.mxu0 %v3623_v41  ;;  %5728 = vmatprep.mubr.msk.bf16.mxu0 %vm8392_vm0, %v7405_v31  ;;  %vm8394_vm11 = vmmov %vm8384_vm13  ;;  %v4623_v49 = vrot.slane %v7762_v60, 1  ;;  %v4620_v24 = vsel %vm8373_vm8, %v4618_v37, %v4619_v43  ;;  %v4732_v20 = vmax.f32 %v4714_v2, %v7703_v47  ;;  %v4733_v1 = vmax.f32 %v4715_v15, %v7683_v28 }
 0x229   : > { %6125 = vmatprep.subr.msk.bf16.mxu0 %vm8394_vm11, %v7754_v25  ;;  %vm8395_vm14 = vmmov %vm8392_vm0  ;;  %v4626_v23 = vrot.slane %v7776_v14, 1  ;;  %v4731_v34 = vmax.f32 %v7657_v22, %v7717_v48  ;;  %v4746_v52 = vmax.f32 %v4734_v50, %v7756_v38  ;;  %v4747_v54 = vmax.f32 %v4735_v56, %v7772_v27 }
 0x22a   : > { %5629 = vmatmul.mubr.msk.bf16.gmra.mrb[40].mxu1 %vm8393_vm4, %v7396_v11  ;;  %vm8396_vm5 = vmmov %vm8394_vm11  ;;  %v4660_v41 = vmax.f32 %v4575_v55, %v4621_v16  ;;  %v4748_v37 = vmax.f32 %v4736_v29, %v7786_v21  ;;  %v4658_v47 = vmax.f32 %v7732_v45, %v4620_v24  ;;  %v4690_v2 = vrot.slane %v7762_v60, 2 }
 0x22b   : > { %5634 = vmatprep.mubr.msk.bf16.mxu1 %vm8395_vm14, %v7479_v63  ;;  %6134 = vmatprep.subr.msk.bf16.mxu1 %vm8396_vm5, %v4811_v59  ;;  %vm8397_vm9 = vmmov %vm8373_vm8  ;;  %v4691_v15 = vrot.slane %v7766_v61, 2  ;;  %v4693_v55 = vrot.slane %v7776_v14, 2  ;;  %v4743_v45 = vmax.f32 %v4731_v34, %v7723_v17  ;;  %v4744_v44 = vmax.f32 %v4732_v20, %v7734_v4 }
 0x22c   : > { %v4622_v18 = vsel %vm8397_vm9, %v4619_v43, %v4621_v16  ;;  %vm8398_vm3 = vmmov %vm8383_vm10  ;;  %v4745_v19 = vmax.f32 %v4733_v1, %v7736_v40  ;;  %v4757_v56 = vpack.c.bf16 %v4747_v54, %v4746_v52  ;;  %v4758_v29 = vpack.c.bf16 %v4748_v37, %v4748_v37 }
 0x22d   : > { %v4689_v63 = vsel %vm8398_vm3, %v4686_v0, %v4688_v46  ;;  %vm8399_vm7 = vmmov %vm8373_vm8  ;;  %v4659_v48 = vmax.f32 %v7727_v57, %v4622_v18  ;;  %v4727_v57 = vmax.f32 %v4660_v41, %v4688_v46  ;;  %v4737_v46 = vmax.f32 %v7723_v17, %v7756_v38  ;;  %v5214_v17 = vld [vmem:[%s8107_s4 + $0x22] sm:$0x3] }
 0x22e   : > { %v4625_v28 = vsel %vm8399_vm7, %v4623_v49, %v4624_v8  ;;  %vm8400_vm1 = vmmov %vm8398_vm3  ;;  %v4756_v49 = vpack.c.bf16 %v4745_v19, %v4745_v19  ;;  %v4783_v54 = vshll.u32 %v4758_v29, 16  ;;  %vm8413_vm3 = vsmask.f32 7424 }
 0x22f   : > { %v4687_v22 = vsel %vm8400_vm1, %v4685_v32, %v4686_v0  ;;  %vm8401_vm10 = vmmov %vm8399_vm7  ;;  %v4661_v16 = vmax.f32 %v7762_v60, %v4625_v28  ;;  %v4755_v0 = vpack.c.bf16 %v4744_v44, %v4743_v45  ;;  %v4726_v24 = vmax.f32 %v4659_v48, %v4689_v63 }
 0x230   : > { %v4627_v43 = vsel %vm8401_vm10, %v4624_v8, %v4626_v23  ;;  %vm8402_vm13 = vmmov %vm8392_vm0  ;;  %v4725_v53 = vmax.f32 %v4658_v47, %v4687_v22  ;;  %v4778_v8 = vshll.u32 %v4757_v56, 16  ;;  %v4663_v32 = vmax.f32 %v7776_v14, %v4626_v23 }
 0x231   : > { %5729 = vmatmul.mubr.msk.bf16.gmra.mrb[4].mxu0 %vm8402_vm13, %v7430_v3  ;;  %vm8403_vm15 = vmmov %vm8396_vm5  ;;  %v4662_v60 = vmax.f32 %v7766_v61, %v4627_v43  ;;  %v4764_v20 = vshrl.u32 %v4755_v0, 16  ;;  %v4766_v1 = vshll.u32 %v4755_v0, 16  ;;  %v4771_v34 = vshll.u32 %v4756_v49, 16 }
 0x232   : > { %v4834_v50 = vsel %vm8403_vm15, %v4811_v59, 0  ;;  %vm8404_vm12 = vmmov %vm8392_vm0  ;;  %v4776_v63 = vshrl.u32 %v4757_v56, 16  ;;  %v4780_v14 = vrot.slane %v4778_v8, 1  ;;  %v4730_v37 = vmax.f32 %v4663_v32, %v4693_v55 }
 0x233   : > { %5734 = vmatprep.mubr.msk.bf16.mxu0 %vm8404_vm12, %v7415_v42  ;;  %vm8405_vm6 = vmmov %vm8392_vm0  ;;  %v4768_v41 = vrot.slane %v4766_v1, 1  ;;  %v4773_v61 = vrot.slane %v4771_v34, 1  ;;  %v4749_v47 = vmax.f32 %v4737_v46, %v4725_v53  ;;  %v4785_v28 = vrot.slane %v4783_v54, 1  ;;  %v5219_v1 = vld [vmem:[%s8107_s4 + $0x24] sm:$0x3]  ;;  %v7915_v54 = vpop.permute.xlu0 %4310 }
 0x234   : > { %5635 = vmatmul.mubr.msk.bf16.vlgmr.msra.gmra.mrb[36].mxu1 %vm8405_vm6, %v7403_v26  ;;  %vm8406_vm2 = vmmov %vm8400_vm1  ;;  %v4742_v22 = vmax.f32 %v7786_v21, %v4727_v57  ;;  %v4781_v43 = vor.u32 %v4780_v14, %v4776_v63 }
 0x235   : > { %v4692_v59 = vsel %vm8406_vm2, %v4690_v2, %v4691_v15  ;;  %5638 = vmatprep.mubr.msk.bf16.mxu1 %vm8392_vm0, %v7415_v42  ;;  %5833 = vmatpush3.bf16.msra.mxu1 %v4834_v50  ;;  %vm8407_vm4 = vmmov %vm8400_vm1  ;;  %v4740_v42 = vmax.f32 %v7756_v38, %v4725_v53  ;;  %v4738_v38 = vmax.f32 %v7734_v4, %v7772_v27 }
 0x236   : > { %v4694_v26 = vsel %vm8407_vm4, %v4691_v15, %v4693_v55  ;;  %v4728_v52 = vmax.f32 %v4661_v16, %v4692_v59  ;;  %vm8408_vm11 = vmmov %vm8396_vm5  ;;  %v4739_v2 = vmax.f32 %v7736_v40, %v7786_v21  ;;  %v4741_v15 = vmax.f32 %v7772_v27, %v4726_v24 }
 0x237   : > { %v3706_v18 = vsel %vm8408_vm11, %v7754_v25, 0  ;;  %v4729_v23 = vmax.f32 %v4662_v60, %v4694_v26  ;;  %vm8409_vm8 = vmmov %vm8392_vm0  ;;  %v4769_v25 = vor.u32 %v4768_v41, %v4764_v20  ;;  %v4750_v55 = vmax.f32 %v4738_v38, %v4726_v24 }
 0x238   : > { %vm8410_vm14 = vmmov %vm8392_vm0  ;;  %v4752_v50 = vmax.f32 %v4740_v42, %v4728_v52  ;;  %v4751_v4 = vmax.f32 %v4739_v2, %v4727_v57  ;;  %v4754_v44 = vmax.f32 %v4742_v22, %v4730_v37  ;;  %v5224_v52 = vld [vmem:[%s8107_s4 + $0x26] sm:$0x3]  ;;  %v5229_v42 = vld [vmem:[%s8107_s4 + $0x28] sm:$0x3] }
 0x239   : > { %5735 = vmatmul.mubr.msk.bf16.vlgmr.msra.gmra.mrb[0].mxu0 %vm8409_vm8, %v7417_v58  ;;  %vm8411_vm5 = vmmov %vm8392_vm0  ;;  %v4774_v48 = vsel %vm8413_vm3, %v4769_v25, %v4773_v61  ;;  %v4753_v45 = vmax.f32 %v4741_v15, %v4729_v23  ;;  %v4759_v19 = vpack.c.bf16 %v4750_v55, %v4749_v47  ;;  %v5239_v15 = vld [vmem:[%s8107_s4 + $0x2c] sm:$0x3] }
 0x23a   : > { %5743 = vmatpush3.bf16.msra.mxu0 %v3706_v18  ;;  %5738 = vmatprep.mubr.msk.bf16.mxu0 %vm8410_vm14, %v7419_v33  ;;  %vm8412_vm9 = vmmov %vm8408_vm11  ;;  %v4760_v56 = vpack.c.bf16 %v4751_v4, %v4751_v4  ;;  %v4762_v53 = vpack.c.bf16 %v4754_v44, %v4754_v44  ;;  %v5234_v18 = vld [vmem:[%s8107_s4 + $0x2a] sm:$0x3] }
 0x23b   : > { %6126 = vmatprep.subr.msk.bf16.mxu0 %vm8412_vm9, %v5214_v17  ;;  %vm8414_vm7 = vmmov %vm8392_vm0  ;;  %v4761_v16 = vpack.c.bf16 %v4753_v45, %v4752_v50  ;;  %v4788_v29 = vshrl.u32 %v4759_v19, 16  ;;  %v4790_v27 = vshll.u32 %v4759_v19, 16 }
 0x23c   : > { %5639 = vmatmul.mubr.msk.bf16.gmra.mrb[40].mxu1 %vm8411_vm5, %v7417_v58  ;;  %vm8415_vm1 = vmmov %vm8413_vm3  ;;  %v4795_v21 = vshll.u32 %v4760_v56, 16  ;;  %v4807_v49 = vshll.u32 %v4762_v53, 16 }
 0x23d   : > { %5834 = vmatprep.mubr.msk.bf16.mxu1 %vm8414_vm7, %v4774_v48  ;;  %v4786_v40 = vsel %vm8415_vm1, %v4781_v43, %v4785_v28  ;;  %vm8416_vm10 = vmmov %vm8392_vm0  ;;  %v4800_v59 = vshrl.u32 %v4761_v16, 16  ;;  %v4802_v0 = vshll.u32 %v4761_v16, 16  ;;  %v4792_v57 = vrot.slane %v4790_v27, 1 }
 0x23e   : > { %vm8417_vm13 = vmmov %vm8392_vm0  ;;  %v4797_v8 = vrot.slane %v4795_v21, 1  ;;  %v4809_v60 = vrot.slane %v4807_v49, 1  ;;  %v5249_v21 = vld [vmem:[%s8107_s4 + $0x30] sm:$0x3] }
 0x23f   : > { %vm8418_vm15 = vmmov %vm8392_vm0  ;;  %v4804_v24 = vrot.slane %v4802_v0, 1  ;;  %v4793_v46 = vor.u32 %v4792_v57, %v4788_v29  ;;  %v5244_v29 = vld [vmem:[%s8107_s4 + $0x2e] sm:$0x3] }
 0x240   : > { %vm8419_vm12 = vmmov %vm8415_vm1 }
 0x241   : > { %5739 = vmatmul.mubr.msk.bf16.gmra.mrb[4].mxu0 %vm8416_vm10, %v7444_v30  ;;  %v4805_v32 = vor.u32 %v4804_v24, %v4800_v59  ;;  %v4798_v26 = vsel %vm8419_vm12, %v4793_v46, %v4797_v8  ;;  %vm8420_vm6 = vmmov %vm8412_vm9 }
 0x242   : > { %5744 = vmatprep.mubr.msk.bf16.mxu0 %vm8417_vm13, %v7348_v35  ;;  %v3789_v20 = vsel %vm8420_vm6, %v5214_v17, 0  ;;  %vm8421_vm2 = vmmov %vm8392_vm0  ;;  %v7917_v17 = vpop.permute.xlu1 %3952 }
 0x243   : > { %vm8422_vm0 = vmmov %vm8415_vm1 }
 0x244   : > { %5835 = vmatmul.mubr.msk.bf16.vlgmr.msra.gmra.mrb[44].mxu1 %vm8418_vm15, %v4786_v40  ;;  %v4810_v35 = vsel %vm8422_vm0, %v4805_v32, %v4809_v60  ;;  %vm8423_vm4 = vmmov %vm8421_vm2 }
 0x245   : > { %5838 = vmatprep.mubr.msk.bf16.mxu1 %vm8421_vm2, %v4798_v26  ;;  %vm8424_vm11 = vmmov %vm8421_vm2 }
 0x246   : > { %vm8425_vm8 = vmmov %vm8420_vm6  ;;  %v4037_v16 = vpop.permute.xlu1 %4036 }
 0x247   : > { %vm8426_vm14 = vmmov %vm8421_vm2 }
 0x248   : > { %vm8427_vm5 = vmmov %vm8421_vm2 }
 0x249   : > { %5745 = vmatmul.mubr.msk.bf16.vlgmr.msra.gmra.mrb[0].mxu0 %vm8423_vm4, %v7360_v6  ;;  %vm8428_vm9 = vmmov %vm8421_vm2 }
 0x24a   : > { %5753 = vmatpush3.bf16.msra.mxu0 %v3789_v20  ;;  %5748 = vmatprep.mubr.msk.bf16.mxu0 %vm8424_vm11, %v7425_v62  ;;  %vm8429_vm3 = vmmov %vm8420_vm6  ;;  %v4132_v27 = vpop.permute.xlu1 %4131 }
 0x24b   : > { %6127 = vmatprep.subr.msk.bf16.mxu0 %vm8425_vm8, %v5219_v1  ;;  %v3872_v34 = vsel %vm8429_vm3, %v5219_v1, 0  ;;  %vm8430_vm7 = vmmov %vm8421_vm2 }
 0x24c   : > { %5839 = vmatmul.mubr.msk.bf16.gmra.mrb[48].mxu1 %vm8426_vm14, %v4810_v35  ;;  %vm8431_vm1 = vmmov %vm8421_vm2 }
 0x24d   : > { %vm8432_vm10 = vmmov %vm8429_vm3 }
 0x24e   : > { %vm8433_vm13 = vmmov %vm8431_vm1 }
 0x24f   : > { %vm8434_vm15 = vmmov %vm8431_vm1 }
 0x250   : > { %vm8435_vm12 = vmmov %vm8429_vm3 }
 0x251   : > { %5749 = vmatmul.mubr.msk.bf16.gmra.mrb[4].mxu0 %vm8427_vm5, %v7442_v7  ;;  %vm8436_vm6 = vmmov %vm8431_vm1 }
 0x252   : > { %5754 = vmatprep.mubr.msk.bf16.mxu0 %vm8428_vm9, %v7352_v51  ;;  %v3958_v51 = vsel %vm8435_vm12, %v5224_v52, 0  ;;  %vm8437_vm2 = vmmov %vm8431_vm1 }
 0x253   : > { %vm8438_vm0 = vmmov %vm8429_vm3 }
 0x254   : > { %vm8439_vm4 = vmmov %vm8431_vm1 }
 0x255   : > { %vm8440_vm11 = vmmov %vm8431_vm1 }
 0x256   : > { %vm8441_vm8 = vmmov %vm8438_vm0 }
 0x257   : > { %vm8442_vm14 = vmmov %vm8431_vm1 }
 0x258   : > { %vm8443_vm5 = vmmov %vm8431_vm1 }
 0x259   : > { %5755 = vmatmul.mubr.msk.bf16.vlgmr.msra.gmra.mrb[0].mxu0 %vm8430_vm7, %v7378_v39  ;;  %vm8444_vm9 = vmmov %vm8438_vm0 }
 0x25a   : > { %5763 = vmatpush3.bf16.msra.mxu0 %v3872_v34  ;;  %5758 = vmatprep.mubr.msk.bf16.mxu0 %vm8431_vm1, %v7427_v12  ;;  %vm8445_vm3 = vmmov %vm8431_vm1 }
 0x25b   : > { %6128 = vmatprep.subr.msk.bf16.mxu0 %vm8432_vm10, %v5224_v52  ;;  %vm8446_vm7 = vmmov %vm8431_vm1 }
 0x25c   : > { %vm8447_vm1 = vmmov %vm8438_vm0 }
 0x25d   : > { %v4137_v2 = vsel %vm8447_vm1, %v5234_v18, 0  ;;  %vm8448_vm10 = vmmov %vm8437_vm2 }
 0x25e   : > { %vm8451_vm12 = vmmov %vm8437_vm2 }
 0x261   : > { %5759 = vmatmul.mubr.msk.bf16.gmra.mrb[4].mxu0 %vm8433_vm13, %v7460_v13  ;;  %vm8449_vm13 = vmmov %vm8437_vm2 }
 0x262   : > { %5764 = vmatprep.mubr.msk.bf16.mxu0 %vm8434_vm15, %v7373_v5  ;;  %v4042_v5 = vsel %vm8441_vm8, %v5229_v42, 0  ;;  %vm8450_vm15 = vmmov %vm8438_vm0 }
 0x269   : > { %5765 = vmatmul.mubr.msk.bf16.vlgmr.msra.gmra.mrb[0].mxu0 %vm8436_vm6, %v7392_v10  ;;  %vm8452_vm6 = vmmov %vm8437_vm2 }
 0x26a   : > { %5773 = vmatpush3.bf16.msra.mxu0 %v3958_v51  ;;  %5768 = vmatprep.mubr.msk.bf16.mxu0 %vm8437_vm2, %v7437_v36  ;;  %vm8453_vm2 = vmmov %vm8438_vm0 }
 0x26b   : > { %6129 = vmatprep.subr.msk.bf16.mxu0 %vm8438_vm0, %v5229_v42  ;;  %v4224_v40 = vsel %vm8453_vm2, %v5239_v15, 0  ;;  %vm8454_vm0 = vmmov %vm8445_vm3 }
 0x26c   : > { %vm8457_vm8 = vmmov %vm8454_vm0 }
 0x271   : > { %5769 = vmatmul.mubr.msk.bf16.gmra.mrb[4].mxu0 %vm8439_vm4, %v7473_v9  ;;  %vm8455_vm4 = vmmov %vm8454_vm0 }
 0x272   : > { %5774 = vmatprep.mubr.msk.bf16.mxu0 %vm8440_vm11, %v7396_v11  ;;  %v2208_v11 = vpop.permute.xlu0 %2207  ;;  %vm8456_vm11 = vmmov %vm8447_vm1 }
 0x279   : > { %5775 = vmatmul.mubr.msk.bf16.vlgmr.msra.gmra.mrb[0].mxu0 %vm8442_vm14, %v7405_v31  ;;  %vm8458_vm14 = vmmov %vm8454_vm0 }
 0x27a   : > { %5783 = vmatpush3.bf16.msra.mxu0 %v4042_v5  ;;  %5778 = vmatprep.mubr.msk.bf16.mxu0 %vm8443_vm5, %v7430_v3  ;;  %vm8459_vm5 = vmmov %vm8447_vm1 }
 0x27b   : > { %6130 = vmatprep.subr.msk.bf16.mxu0 %vm8444_vm9, %v5234_v18  ;;  %vm8460_vm9 = vmmov %vm8454_vm0 }
 0x281   : > { %5779 = vmatmul.mubr.msk.bf16.gmra.mrb[4].mxu0 %vm8445_vm3, %v7917_v17  ;;  %vm8461_vm3 = vmmov %vm8454_vm0 }
 0x282   : > { %5784 = vmatprep.mubr.msk.bf16.mxu0 %vm8446_vm7, %v7417_v58  ;;  %vm8462_vm7 = vmmov %vm8447_vm1 }
 0x283   : > { %vm8463_vm1 = vmmov %vm8454_vm0 }
 0x285   : > { %v5576_v41 = vpop.f32.mrb[28].mxu1 }
 0x286   : > { %v2162_v61 = vpop.f32.mrb[29].mxu1  ;;  %v2212_v63 = vadd.f32 %v5576_v41, %v2208_v11 }
 0x287   : > { %v5577_v14 = vpop.f32.mrb[30].mxu1  ;;  %v2210_v23 = vadd.f32 %v2208_v11, %v2162_v61 }
 0x288   : > { %v2213_v37 = vadd.f32 %v5577_v14, %v2208_v11  ;;  %v2165_v47 = vpop.f32.mrb[31].mxu1  ;;  %v2220_v25 = vmax.f32 %v2212_v63, 0.0 }
 0x289   : > { %v2211_v28 = vadd.f32 %v2208_v11, %v2165_v47  ;;  %v2218_v22 = vmax.f32 %v2210_v23, 0.0  ;;  %5785 = vmatmul.mubr.msk.bf16.vlgmr.msra.gmra.mrb[0].mxu0 %vm8448_vm10, %v7419_v33  ;;  %vm8464_vm10 = vmmov %vm8454_vm0 }
 0x28a   : > { %v2221_v38 = vmax.f32 %v2213_v37, 0.0  ;;  %2238 = vrot.lane.b32.xlu1 %v2220_v25, %s6340_s22  ;;  %5793 = vmatpush3.bf16.msra.mxu0 %v4137_v2 }
 0x28b   : > { %5788 = vmatprep.mubr.msk.bf16.mxu0 %vm8449_vm13, %v7444_v30  ;;  %v2219_v48 = vmax.f32 %v2211_v28, 0.0  ;;  %6131 = vmatprep.subr.msk.bf16.mxu0 %vm8450_vm15, %v5239_v15  ;;  %vm8465_vm13 = vmmov %vm8453_vm2 }
 0x28c   : > { %2240 = vrot.lane.b32.xlu0 %v2221_v38, %s6340_s22  ;;  %vm8466_vm15 = vmmov %vm8454_vm0 }
 0x28d   : > { %v5580_v58 = vpop.f32.mrb[32].mxu1  ;;  %vm8469_vm2 = vmmov %vm8454_vm0 }
 0x28e   : > { %v2216_v43 = vadd.f32 %v5580_v58, %v2208_v11  ;;  %v2178_v55 = vpop.f32.mrb[33].mxu1  ;;  %2234 = vrot.lane.b32.xlu1 %v2218_v22, %s6340_s22 }
 0x28f   : > { %v5581_v50 = vpop.f32.mrb[34].mxu1  ;;  %v2214_v45 = vadd.f32 %v2208_v11, %v2178_v55 }
 0x290   : > { %v2224_v4 = vmax.f32 %v2216_v43, 0.0  ;;  %v2217_v44 = vadd.f32 %v5581_v50, %v2208_v11  ;;  %v2181_v19 = vpop.f32.mrb[35].mxu1  ;;  %2236 = vrot.lane.b32.xlu0 %v2219_v48, %s6340_s22 }
 0x291   : > { %v2215_v33 = vadd.f32 %v2208_v11, %v2181_v19  ;;  %v2222_v53 = vmax.f32 %v2214_v45, 0.0  ;;  %5789 = vmatmul.mubr.msk.bf16.gmra.mrb[4].mxu0 %vm8451_vm12, %v4037_v16  ;;  %vm8467_vm12 = vmmov %vm8454_vm0 }
 0x292   : > { %v2225_v56 = vmax.f32 %v2217_v44, 0.0  ;;  %2246 = vrot.lane.b32.xlu1 %v2224_v4, %s6340_s22  ;;  %5794 = vmatprep.mubr.msk.bf16.mxu0 %vm8452_vm6, %v7360_v6  ;;  %v4316_v6 = vsel %vm8459_vm5, %v5244_v29, 0  ;;  %vm8468_vm6 = vmmov %vm8454_vm0  ;;  %vm4941_vm5 = vcmask 195744  }
 0x293   : > { %v2223_v30 = vmax.f32 %v2215_v33, 0.0 }
 0x294   : > { %2248 = vrot.lane.b32.xlu0 %v2225_v56, %s6340_s22 }
 0x296   : > { %2242 = vrot.lane.b32.xlu1 %v2222_v53, %s6340_s22 }
 0x298   : > { %2244 = vrot.lane.b32.xlu0 %v2223_v30, %s6340_s22  ;;  %s6341_s22 = smov 20  }
 0x299   : > { %5795 = vmatmul.mubr.msk.bf16.vlgmr.msra.gmra.mrb[0].mxu0 %vm8454_vm0, %v7425_v62  ;;  %v4219_v62 = vpop.permute.xlu1 %4218 }
 0x29a   : > { %5803 = vmatpush3.bf16.msra.mxu0 %v4224_v40  ;;  %5798 = vmatprep.mubr.msk.bf16.mxu0 %vm8455_vm4, %v7442_v7  ;;  %vm8470_vm4 = vmmov %vm8454_vm0 }
 0x29b   : > { %6132 = vmatprep.subr.msk.bf16.mxu0 %vm8456_vm11, %v5244_v29  ;;  %vm8471_vm11 = vmmov %vm8454_vm0 }
 0x2a1   : > { %5799 = vmatmul.mubr.msk.bf16.gmra.mrb[4].mxu0 %vm8457_vm8, %v4132_v27  ;;  %vm2258_vm8 = vcmask 97312  }
 0x2a2   : > { %5804 = vmatprep.mubr.msk.bf16.mxu0 %vm8458_vm14, %v7378_v39  ;;  %v4402_v39 = vsel %vm8465_vm13, %v5249_v21, 0  ;;  %vm4534_vm14 = vcmask 162912  }
 0x2a9   : > { %5805 = vmatmul.mubr.msk.bf16.vlgmr.msra.gmra.mrb[0].mxu0 %vm8460_vm9, %v7427_v12 }
 0x2aa   : > { %5813 = vmatpush3.bf16.msra.mxu0 %v4316_v6  ;;  %5808 = vmatprep.mubr.msk.bf16.mxu0 %vm8461_vm3, %v7460_v13 }
 0x2ab   : > { %6133 = vmatprep.subr.msk.bf16.mxu0 %vm8462_vm7, %v5249_v21 }
 0x2b1   : > { %5809 = vmatmul.mubr.msk.bf16.gmra.mrb[4].mxu0 %vm8463_vm1, %v4219_v62 }
 0x2b2   : > { %5814 = vmatprep.mubr.msk.bf16.mxu0 %vm8464_vm10, %v7392_v10  ;;  %v4397_v10 = vpop.permute.xlu1 %4396 }
 0x2b6   : > { %v7973_v12 = vpop.permute.xlu1 %4483 }
 0x2b9   : > { %5815 = vmatmul.mubr.msk.bf16.vlgmr.msra.gmra.mrb[0].mxu0 %vm8466_vm15, %v7437_v36  ;;  %v4819_v36 = vpop.permute.xlu0 %4818 }
 0x2ba   : > { %5823 = vmatpush3.bf16.msra.mxu0 %v4402_v39  ;;  %5818 = vmatprep.mubr.msk.bf16.mxu0 %vm8467_vm12, %v7473_v9 }
 0x2c1   : > { %5819 = vmatmul.mubr.msk.bf16.gmra.mrb[4].mxu0 %vm8468_vm6, %v7915_v54 }
 0x2c2   : > { %5824 = vmatprep.mubr.msk.bf16.mxu0 %vm8469_vm2, %v7405_v31 }
 0x2c9   : > { %5825 = vmatmul.mubr.msk.bf16.vlgmr.msra.gmra.mrb[0].mxu0 %vm8454_vm0, %v7430_v3 }
 0x2ca   : > { %5828 = vmatprep.mubr.msk.bf16.mxu0 %vm8470_vm4, %v7917_v17 }
 0x2d1   : > { %5829 = vmatmul.mubr.msk.bf16.gmra.mrb[4].mxu0 %vm8471_vm11, %v4397_v10 }
 0x2fc   : > { %v2239_v7 = vpop.permute.xlu1 %2238 }
 0x2fd   : > { %2261 = vst.msk [vmem:[%s7510_s17 + $0x10] sm:$0xff] %vm2258_vm8, %v2239_v7 }
 0x2fe   : > { %v2241_v31 = vpop.permute.xlu0 %2240 }
 0x2ff   : > { %2262 = vst.msk [vmem:[%s7510_s17 + $0x18] sm:$0xff] %vm2258_vm8, %v2241_v31 }
 0x300   : > { %v2235_v3 = vpop.permute.xlu1 %2234 }
 0x301   : > { %2259 = vst.msk [vmem:[%s7510_s17] sm:$0xff] %vm2258_vm8, %v2235_v3 }
 0x302   : > { %v2237_v13 = vpop.permute.xlu0 %2236 }
 0x303   : > { %2260 = vst.msk [vmem:[%s7510_s17 + $0x8] sm:$0xff] %vm2258_vm8, %v2237_v13 }
 0x304   : > { %v2247_v9 = vpop.permute.xlu1 %2246 }
 0x305   : > { %2265 = vst.msk [vmem:[%s7510_s17 + $0x30] sm:$0xff] %vm2258_vm8, %v2247_v9 }
 0x306   : > { %v2249_v59 = vpop.permute.xlu0 %2248 }
 0x307   : > { %2266 = vst.msk [vmem:[%s7510_s17 + $0x38] sm:$0xff] %vm2258_vm8, %v2249_v59  ;;  %v5636_v49 = vpop.f32.mrb[36].mxu1 }
 0x308   : > { %v2243_v0 = vpop.permute.xlu1 %2242  ;;  %v2823_v57 = vpop.f32.mrb[37].mxu1 }
 0x309   : > { %2263 = vst.msk [vmem:[%s7510_s17 + $0x20] sm:$0xff] %vm2258_vm8, %v2243_v0  ;;  %v5637_v24 = vpop.f32.mrb[38].mxu1 }
 0x30a   : > { %v2245_v8 = vpop.permute.xlu0 %2244  ;;  %v2826_v46 = vpop.f32.mrb[39].mxu1 }
 0x30b   : > { %2264 = vst.msk [vmem:[%s7510_s17 + $0x28] sm:$0xff] %vm2258_vm8, %v2245_v8 }
 0x30f   : > { %v5640_v60 = vpop.f32.mrb[40].mxu1 }
 0x310   : > { %v2839_v32 = vpop.f32.mrb[41].mxu1 }
 0x311   : > { %v5641_v26 = vpop.f32.mrb[42].mxu1 }
 0x312   : > { %v2842_v20 = vpop.f32.mrb[43].mxu1 }
 0x317   : > { %v5836_v1 = vpop.f32.mrb[44].mxu1 }
 0x318   : > { %v4879_v35 = vadd.f32 %v5836_v1, %v4819_v36  ;;  %v4870_v34 = vpop.f32.mrb[45].mxu1 }
 0x319   : > { %v4871_v52 = vadd.f32 %v4870_v34, %v4819_v36  ;;  %v5837_v51 = vpop.f32.mrb[46].mxu1 }
 0x31a   : > { %v4903_v42 = vmax.f32 %v4879_v35, 0.0  ;;  %v4882_v5 = vadd.f32 %v5837_v51, %v4819_v36  ;;  %v4873_v18 = vpop.f32.mrb[47].mxu1 }
 0x31b   : > { %v4874_v54 = vadd.f32 %v4873_v18, %v4819_v36  ;;  %v4901_v17 = vmax.f32 %v4871_v52, 0.0 }
 0x31c   : > { %v4904_v11 = vmax.f32 %v4882_v5, 0.0  ;;  %4921 = vrot.lane.b32.xlu1 %v4903_v42, %s6341_s22 }
 0x31d   : > { %v4902_v41 = vmax.f32 %v4874_v54, 0.0 }
 0x31e   : > { %4923 = vrot.lane.b32.xlu0 %v4904_v11, %s6341_s22 }
 0x31f   : > { %v5840_v61 = vpop.f32.mrb[48].mxu1 }
 0x320   : > { %v4895_v63 = vadd.f32 %v5840_v61, %v4819_v36  ;;  %v4886_v14 = vpop.f32.mrb[49].mxu1  ;;  %4917 = vrot.lane.b32.xlu1 %v4901_v17, %s6341_s22 }
 0x321   : > { %v4887_v23 = vadd.f32 %v4886_v14, %v4819_v36  ;;  %v5841_v37 = vpop.f32.mrb[50].mxu1 }
 0x322   : > { %v4898_v47 = vadd.f32 %v5841_v37, %v4819_v36  ;;  %v4889_v25 = vpop.f32.mrb[51].mxu1  ;;  %4919 = vrot.lane.b32.xlu0 %v4902_v41, %s6341_s22 }
 0x323   : > { %v4905_v38 = vmax.f32 %v4887_v23, 0.0  ;;  %v4890_v28 = vadd.f32 %v4889_v25, %v4819_v36 }
 0x325   : > { %v4906_v2 = vmax.f32 %v4890_v28, 0.0  ;;  %4925 = vrot.lane.b32.xlu1 %v4905_v38, %s6341_s22 }
 0x327   : > { %4927 = vrot.lane.b32.xlu0 %v4906_v2, %s6341_s22 }
 0x38e   : > { %v4922_v8 = vpop.permute.xlu1 %4921 }
 0x39c   : > { %v5826_v15 = vpop.f32.mrb[0].mxu0 }
 0x39d   : > { %v5842_v22 = vadd.f32 %v5826_v15, %v5636_v49  ;;  %v4438_v58 = vpop.f32.mrb[1].mxu0  ;;  %v4907_v49 = vmax.f32 %v4895_v63, 0.0 }
 0x39e   : > { %v5843_v48 = vadd.f32 %v4438_v58, %v2823_v57  ;;  %v5827_v43 = vpop.f32.mrb[2].mxu0  ;;  %v4908_v57 = vmax.f32 %v4898_v47, 0.0 }
 0x39f   : > { %v4488_v55 = vadd.f32 %v5842_v22, %v7973_v12  ;;  %v5844_v50 = vadd.f32 %v5827_v43, %v5637_v24  ;;  %v4441_v4 = vpop.f32.mrb[3].mxu0  ;;  %v4918_v24 = vpop.permute.xlu1 %4917 }
 0x3a0   : > { %v5845_v45 = vadd.f32 %v4441_v4, %v2826_v46  ;;  %v4486_v19 = vadd.f32 %v5843_v48, %v7973_v12 }
 0x3a1   : > { %v4496_v44 = vmax.f32 %v4488_v55, 0.0  ;;  %v4489_v56 = vadd.f32 %v5844_v50, %v7973_v12 }
 0x3a2   : > { %v4487_v16 = vadd.f32 %v5845_v45, %v7973_v12  ;;  %v4494_v30 = vmax.f32 %v4486_v19, 0.0 }
 0x3a3   : > { %v4497_v33 = vmax.f32 %v4489_v56, 0.0  ;;  %4514 = vrot.lane.b32.xlu1 %v4496_v44, %s6342_s26 }
 0x3a4   : > { %v5830_v53 = vpop.f32.mrb[4].mxu0  ;;  %v4495_v21 = vmax.f32 %v4487_v16, 0.0 }
 0x3a5   : > { %v5846_v40 = vadd.f32 %v5830_v53, %v5640_v60  ;;  %v4454_v29 = vpop.f32.mrb[5].mxu0  ;;  %4516 = vrot.lane.b32.xlu0 %v4497_v33, %s6342_s26  ;;  %v4926_v60 = vpop.permute.xlu1 %4925 }
 0x3a6   : > { %v5847_v27 = vadd.f32 %v4454_v29, %v2839_v32  ;;  %v5831_v6 = vpop.f32.mrb[6].mxu0 }
 0x3a7   : > { %v4492_v62 = vadd.f32 %v5846_v40, %v7973_v12  ;;  %v5848_v39 = vadd.f32 %v5831_v6, %v5641_v26  ;;  %v4457_v10 = vpop.f32.mrb[7].mxu0  ;;  %4510 = vrot.lane.b32.xlu1 %v4494_v30, %s6342_s26 }
 0x3a8   : > { %v5849_v36 = vadd.f32 %v4457_v10, %v2842_v20  ;;  %v4490_v31 = vadd.f32 %v5847_v27, %v7973_v12 }
 0x3a9   : > { %v4500_v7 = vmax.f32 %v4492_v62, 0.0  ;;  %v4493_v3 = vadd.f32 %v5848_v39, %v7973_v12  ;;  %4512 = vrot.lane.b32.xlu0 %v4495_v21, %s6342_s26 }
 0x3aa   : > { %v4491_v9 = vadd.f32 %v5849_v36, %v7973_v12  ;;  %v4498_v59 = vmax.f32 %v4490_v31, 0.0  ;;  %v4924_v12 = vpop.permute.xlu0 %4923 }
 0x3ab   : > { %v4501_v13 = vmax.f32 %v4493_v3, 0.0  ;;  %4522 = vrot.lane.b32.xlu1 %v4500_v7, %s6342_s26 }
 0x3ac   : > { %v4499_v0 = vmax.f32 %v4491_v9, 0.0 }
 0x3ad   : > { %4524 = vrot.lane.b32.xlu0 %v4501_v13, %s6342_s26 }
 0x3ae   : > { %v4920_v46 = vpop.permute.xlu0 %4919 }
 0x3af   : > { %4518 = vrot.lane.b32.xlu1 %v4498_v59, %s6342_s26 }
 0x3b1   : > { %4520 = vrot.lane.b32.xlu0 %v4499_v0, %s6342_s26  ;;  %s8051_s26 = scalar_lea.sflag [#allocation3], %s310_s13 }
 0x3b2   : > { %v4928_v32 = vpop.permute.xlu0 %4927 }
 0x3b3   : > { %4929 = vrot.lane.b32.xlu1 %v4907_v49, %s6341_s22 }
 0x3b5   : > { %4931 = vrot.lane.b32.xlu0 %v4908_v57, %s6341_s22  ;;  %s8045_s22 = scalar_lea.hbm %s8111_s8, %s5264_s21 }
 0x415   : > { %v4515_v26 = vpop.permute.xlu1 %4514 }
 0x416   : > { %4537 = vst.msk [vmem:[%s7510_s17 + $0x10] sm:$0xff] %vm4534_vm14, %v4515_v26 }
 0x417   : > { %4944 = vst.msk [vmem:[%s7510_s17 + $0x10] sm:$0xff] %vm4941_vm5, %v4922_v8  ;;  %v4517_v20 = vpop.permute.xlu0 %4516 }
 0x418   : > { %4538 = vst.msk [vmem:[%s7510_s17 + $0x18] sm:$0xff] %vm4534_vm14, %v4517_v20 }
 0x419   : > { %4945 = vst.msk [vmem:[%s7510_s17 + $0x18] sm:$0xff] %vm4941_vm5, %v4924_v12  ;;  %v4511_v1 = vpop.permute.xlu1 %4510 }
 0x41a   : > { %4535 = vst.msk [vmem:[%s7510_s17] sm:$0xff] %vm4534_vm14, %v4511_v1 }
 0x41b   : > { %4942 = vst.msk [vmem:[%s7510_s17] sm:$0xff] %vm4941_vm5, %v4918_v24  ;;  %v4513_v35 = vpop.permute.xlu0 %4512 }
 0x41c   : > { %4536 = vst.msk [vmem:[%s7510_s17 + $0x8] sm:$0xff] %vm4534_vm14, %v4513_v35 }
 0x41d   : > { %4943 = vst.msk [vmem:[%s7510_s17 + $0x8] sm:$0xff] %vm4941_vm5, %v4920_v46  ;;  %v4523_v34 = vpop.permute.xlu1 %4522 }
 0x41e   : > { %4541 = vst.msk [vmem:[%s7510_s17 + $0x30] sm:$0xff] %vm4534_vm14, %v4523_v34 }
 0x41f   : > { %v4525_v52 = vpop.permute.xlu0 %4524 }
 0x420   : > { %4542 = vst.msk [vmem:[%s7510_s17 + $0x38] sm:$0xff] %vm4534_vm14, %v4525_v52 }
 0x421   : > { %v4519_v51 = vpop.permute.xlu1 %4518 }
 0x422   : > { %4539 = vst.msk [vmem:[%s7510_s17 + $0x20] sm:$0xff] %vm4534_vm14, %v4519_v51 }
 0x423   : > { %4946 = vst.msk [vmem:[%s7510_s17 + $0x20] sm:$0xff] %vm4941_vm5, %v4926_v60  ;;  %v4521_v42 = vpop.permute.xlu0 %4520 }
 0x424   : > { %4540 = vst.msk [vmem:[%s7510_s17 + $0x28] sm:$0xff] %vm4534_vm14, %v4521_v42 }
 0x425   : > { %4947 = vst.msk [vmem:[%s7510_s17 + $0x28] sm:$0xff] %vm4941_vm5, %v4928_v32  ;;  %v4930_v5 = vpop.permute.xlu1 %4929 }
 0x426   : > { %4948 = vst.msk [vmem:[%s7510_s17 + $0x30] sm:$0xff] %vm4941_vm5, %v4930_v5 }
 0x427   : > { %v4932_v18 = vpop.permute.xlu0 %4931 }
 0x428   : > { %4949 = vst.msk [vmem:[%s7510_s17 + $0x38] sm:$0xff] %vm4941_vm5, %v4932_v18 }
 0x429   : > { %6253 = shalt.err (!%p6250_p6)
}
 0x42a   : > { %s6254_s13 = scalar_lea.hbm %s8045_s22, 1024  ;;  %s6258_s30 = scalar_lea.hbm %s8111_s8, 8192 }
 0x42b   : > { %p6255_p7 = scmp.ne.s32.totalorder %s8045_s22, %s6254_s13  ;;  %p6259_p11 = scmp.lt.u32.totalorder %s8045_s22, %s8111_s8 }
 0x42c   : > { %p6260_p12 = scmp.lt.u32.totalorder %s6258_s30, %s6254_s13  ;;  %p6262_p0 = scmp.lt.u32.totalorder %s6254_s13, %s8045_s22 }
 0x42d   : > { %p6256_p9 = pnand %p6255_p7, %p6442_p3 }
 0x42e   : > { %p6261_p13 = por %p6260_p12, %p6259_p11 }
 0x42f   : > { %p6257_p10 = pneg %p6256_p9 }
 0x430   : > { %p6263_p1 = por %p6262_p0, %p6261_p13 }
 0x432   : > { %p6264_p2 = pnand %p6263_p1, %p6257_p10 }
 0x434   : > { %6267 = shalt.err (!%p6264_p2)
}
 0x435   : > { %s6344_s0 = smov 128   ;;  %s6345_s14 = smov 8  }
 0x436   : > { %6136 = dma.vmem_to_hbm [thread:$0]  (%p6442_p3), %s8038_s25, 1024, %s8045_s22, %s8051_s26, %s6344_s0, %s6344_s0, %s6345_s14  }
 0x437 PF: > { %p6142_p4 = scmp.ge.s32.totalorder %s6334_s12, 2  ;;  %s4982_s24 = sand.u32 1, %s6306_s27  }
 0x438   : > { %s4983_s13 = scalar_lea.sflag [#allocation3], %s4982_s24 }
 0x439   : > { %p6139_p5 = pnand %p6142_p4, %p6451_p8 }
 0x43b   : > { %6301 = dma.done.wait (!%p6139_p5), %s4983_s13, 1024  }
 0x43c   : > { %6303 = vsyncadd (!%p6139_p5), %s4983_s13, 4294966272  ;;  %s21_s12 = sadd.s32 1, %s6334_s12   ;;  %s8472_s27 = smov %s6310_s28 }
 0x43d   : > { %p18_p6 = scmp.ge.s32.totalorder %s21_s12, 10   ;;  %s8473_s28 = smov %s6314_s29 }
 0x43e   : > { %s8474_s29 = smov %s6460_s23  ;;  %s8475_s30 = smov %s6326_s10 }
 0x43f   : > { %s8476_s9 = smov %s6330_s11  ;;  %s8477_s10 = smov %s8480_s15 }
 0x440   : > { %s8478_s11 = smov %s8484_s16  ;;  %20 = sbr.rel (!%p18_p6) target bundleno = 7 (0x7), region = 120 }
 0x447   :  { %4988 = vsyncpa [#allocation3], 1 }
 0x448   :  { %4990 = vsyncpa [#allocation3 + $0x1], 1 }

</bundles_post_ra>
